<compile_context>
chip_gen: v6e
topology: v6e:2x2x1
jax: 0.10.0
libtpu: 0.0.40
codegen_flags: <defaults>
</compile_context>

<pallas_src>
import jax
import jax.numpy as jnp
import numpy as np
from jax.experimental import pallas as pl
from jax.experimental.pallas import tpu as pltpu

# ---------------- model sizes ----------------
B, T = 2, 8                    # batch, time_sequence
C_IN, H, W = 4, 16, 16         # per-frame NCHW input
C_OUT, KH, KW, STRIDE = 8, 3, 3, 2
OH = (H - KH) // STRIDE + 1    # 7
OW = (W - KW) // STRIDE + 1    # 7
P = OH * OW                    # 49 spatial positions per frame
N = B * T                      # 16 frames
IN_FLAT = C_IN * H * W         # 1024 flattened input features per frame
CONV_COLS = P * C_OUT          # 392 conv activations per frame (position-major)
FEAT = 16                      # conv_head per-timestep feature size
STATE = 32                     # ltc_cell.state_size
BACKBONE = 32                  # CfC backbone units
MOTOR = 1                      # motor (steering) outputs per step

assert 4 * STATE == 128        # fused head matmul is exactly one lane-tile wide

# ---- cellpack layout (rows of a (88, 128) f32 array; matrices 8-aligned) ----
_WH_R0 = 0                     # rows  0..31 : wh  (BACKBONE, 4*STATE)
_BH_R = 32                     # row   32    : bh  (1, 4*STATE)
_BB_R = 33                     # row   33    : bb  (1, BACKBONE)   lanes 0:32
_FCB_R = 34                    # row   34    : fc_b(1, FEAT)       lanes 0:16
_WBI_R0 = 40                   # rows 40..55 : wbi (FEAT, BACKBONE) lanes 0:32
_WBH_R0 = 56                   # rows 56..87 : wbh (STATE, BACKBONE) lanes 0:32
_CELL_ROWS = 88


# ---------------- the fused forward kernel ----------------
def _forward_kernel(x_ref, wconv_ref, bconv_ref, fc_ref, cell_ref, out_ref):
    f32 = jnp.float32

    # ---- conv_head: Conv2d(stride 2)+ReLU for all frames as ONE dense matmul.
    # The im2col / stride pattern lives entirely in wconv (scattered once on
    # the host), so the intermediate is the fully lane-dense (N, 392) tile.
    conv = jnp.dot(x_ref[...], wconv_ref[...], preferred_element_type=f32)
    conv = jnp.maximum(conv + bconv_ref[...], 0.0)                  # (N, 392)

    # ---- fc + ReLU (PyTorch NCHW-flatten permutation pre-folded into fc rows)
    fc_b = cell_ref[_FCB_R:_FCB_R + 1, 0:FEAT]                      # (1, FEAT)
    feat = jnp.dot(conv, fc_ref[...], preferred_element_type=f32) + fc_b
    feat = jnp.maximum(feat, 0.0)                                    # (N, FEAT)

    # ---- hoisted input->backbone projection (off the serial recurrence path)
    wbi = cell_ref[_WBI_R0:_WBI_R0 + FEAT, 0:BACKBONE]               # (FEAT, BACKBONE)
    u = jnp.dot(feat, wbi, preferred_element_type=f32)               # (N, BACKBONE)

    # x rows arrive batch-major (n = b*T + t, a free reshape in the wrapper);
    # reorder the tiny projected activation to time-major once, in vregs.
    u_tm = jnp.concatenate(
        [u[b * T + t:b * T + t + 1, :] for t in range(T) for b in range(B)],
        axis=0)                                                      # (T*B, BACKBONE)

    wbh = cell_ref[_WBH_R0:_WBH_R0 + STATE, 0:BACKBONE]              # (STATE, BACKBONE)
    bb = cell_ref[_BB_R:_BB_R + 1, 0:BACKBONE]                       # (1, BACKBONE)
    wh = cell_ref[_WH_R0:_WH_R0 + BACKBONE, :]                       # (BACKBONE, 4*STATE)
    bh = cell_ref[_BH_R:_BH_R + 1, :]                                # (1, 4*STATE)

    # ---- CfC recurrence, fully unrolled; 2 dependent matmuls + EUP per step.
    h = jnp.zeros((B, STATE), f32)                                   # torch.zeros init
    hs = []
    for t in range(T):
        z = jnp.tanh(u_tm[t * B:(t + 1) * B, :]
                     + jnp.dot(h, wbh, preferred_element_type=f32) + bb)
        heads = jnp.dot(z, wh, preferred_element_type=f32) + bh      # (B, 4*STATE)
        ff1 = heads[:, 0 * STATE:1 * STATE]
        ff2 = heads[:, 1 * STATE:2 * STATE]
        ta = heads[:, 2 * STATE:3 * STATE]
        tb = heads[:, 3 * STATE:4 * STATE]
        gate = jax.nn.sigmoid(ta + tb)                # ts = 1.0 (timespans=None)
        h = ff1 * (1.0 - gate) + gate * ff2
        hs.append(h)

    # Single lane-dense store: (B, T*STATE) = (2, 256).
    out_ref[...] = jnp.concatenate(hs, axis=1)


# ---------------- one-time host-side weight packing ----------------
def pack_params(params):
    """Fold im2col + stride into a dense conv weight, fold the NCHW flatten
    permutation into the fc weight, fuse the four CfC heads into one 128-lane
    matmul, and pack all small operands into a single (88, 128) array."""
    conv_w = np.asarray(params["conv_w"], np.float32)   # (C_OUT, C_IN, KH, KW)
    conv_b = np.asarray(params["conv_b"], np.float32)   # (C_OUT,)
    fc_w = np.asarray(params["fc_w"], np.float32)       # (C_OUT*P, FEAT), rows co*P+p
    fc_b = np.asarray(params["fc_b"], np.float32)       # (FEAT,)
    (wbi, wbh, bb, wf1, bf1, wf2, bf2,
     wta, bta, wtb, btb) = [np.asarray(a, np.float32) for a in params["cell"]]

    # Dense conv-as-matmul weight: wconv[c*H*W + h*W + w, p*C_OUT + co].
    wconv = np.zeros((IN_FLAT, CONV_COLS), np.float32)
    for oh in range(OH):
        for ow in range(OW):
            p = oh * OW + ow
            for kh in range(KH):
                for kw in range(KW):
                    hh = oh * STRIDE + kh
                    ww = ow * STRIDE + kw
                    for c in range(C_IN):
                        wconv[c * H * W + hh * W + ww,
                              p * C_OUT:(p + 1) * C_OUT] = conv_w[:, c, kh, kw]
    bconv = np.tile(conv_b, P).reshape(1, CONV_COLS)    # bconv[0, p*C_OUT+co] = conv_b[co]

    # fc rows permuted from NCHW flatten (co*P+p) to the kernel's (p*C_OUT+co).
    fc_dense = fc_w.reshape(C_OUT, P, FEAT).transpose(1, 0, 2).reshape(CONV_COLS, FEAT)

    # Fused CfC heads.
    wh = np.concatenate([wf1, wf2, wta, wtb], axis=1)   # (BACKBONE, 4*STATE)
    bh = np.concatenate([bf1, bf2, bta, btb], axis=1)   # (1, 4*STATE)

    # Cell pack: every small operand in one VMEM input (one DMA).
    cell = np.zeros((_CELL_ROWS, 4 * STATE), np.float32)
    cell[_WH_R0:_WH_R0 + BACKBONE, :] = wh
    cell[_BH_R, :] = bh[0]
    cell[_BB_R, 0:BACKBONE] = bb[0]
    cell[_FCB_R, 0:FEAT] = fc_b
    cell[_WBI_R0:_WBI_R0 + FEAT, 0:BACKBONE] = wbi
    cell[_WBH_R0:_WBH_R0 + STATE, 0:BACKBONE] = wbh

    return {
        "wconv": jnp.asarray(wconv),
        "bconv": jnp.asarray(bconv),
        "fc": jnp.asarray(fc_dense),
        "cell": jnp.asarray(cell),
    }


# ---------------- JAX glue ----------------
def ncp_cfc_forward(x, pk):
    """Equivalent of NCPCfC_Model_smooth.forward (timespans=None)."""
    # Contiguous collapse only -> no wrapper transpose / im2col XLA kernels.
    x2 = x.reshape(N, IN_FLAT)
    hs = pl.pallas_call(
        _forward_kernel,
        out_shape=jax.ShapeDtypeStruct((B, T * STATE), jnp.float32),
        in_specs=[pl.BlockSpec(memory_space=pltpu.MemorySpace.VMEM)] * 5,
        out_specs=pl.BlockSpec(memory_space=pltpu.MemorySpace.VMEM),
    )(x2, pk["wconv"], pk["bconv"], pk["fc"], pk["cell"])
    # Lane-dense kernel output; the 1-lane motor slice (outputs.view(B, T, -1))
    # happens here on a tiny array.
    return hs.reshape(B, T, STATE)[:, :, :MOTOR]          # (B, T, MOTOR)


# ---------------- pure-JAX reference (independent path, high precision) ----------------
def reference_forward(x, params):
    hi = jax.lax.Precision.HIGHEST
    xf = x.reshape(B * T, C_IN, H, W)
    conv = jax.lax.conv_general_dilated(
        xf, params["conv_w"], window_strides=(STRIDE, STRIDE), padding="VALID",
        dimension_numbers=("NCHW", "OIHW", "NCHW"), precision=hi)
    conv = jnp.maximum(conv + params["conv_b"][None, :, None, None], 0.0)
    flat = conv.reshape(B * T, C_OUT * P)                  # PyTorch (C, OH, OW) flatten
    feat = jnp.maximum(jnp.dot(flat, params["fc_w"], precision=hi)
                       + params["fc_b"][None, :], 0.0)
    y = feat.reshape(B, T, FEAT)

    wbi, wbh, bb, wf1, bf1, wf2, bf2, wta, bta, wtb, btb = params["cell"]
    h = jnp.zeros((B, STATE), jnp.float32)
    outs = []
    for t in range(T):
        inp = y[:, t, :]
        z = jnp.tanh(jnp.dot(inp, wbi, precision=hi)
                     + jnp.dot(h, wbh, precision=hi) + bb)
        ff1 = jnp.dot(z, wf1, precision=hi) + bf1
        ff2 = jnp.dot(z, wf2, precision=hi) + bf2
        ta = jnp.dot(z, wta, precision=hi) + bta
        tb = jnp.dot(z, wtb, precision=hi) + btb
        gate = jax.nn.sigmoid(ta * 1.0 + tb)
        h = ff1 * (1.0 - gate) + gate * ff2
        outs.append(h[:, :MOTOR])
    return jnp.stack(outs, axis=1)                         # (B, T, MOTOR)


# ---------------- deterministic parameter init ----------------
def init_params(key):
    keys = jax.random.split(key, 16)

    def rnd(k, shape, scale):
        return (jax.random.normal(k, shape, jnp.float32) * scale).astype(jnp.float32)

    return {
        "conv_w": rnd(keys[0], (C_OUT, C_IN, KH, KW), 0.1),
        "conv_b": rnd(keys[1], (C_OUT,), 0.01),
        "fc_w": rnd(keys[2], (C_OUT * P, FEAT), 0.05),
        "fc_b": rnd(keys[3], (FEAT,), 0.01),
        "cell": [
            rnd(keys[4], (FEAT, BACKBONE), 0.2),     # wbi
            rnd(keys[5], (STATE, BACKBONE), 0.2),    # wbh
            rnd(keys[6], (1, BACKBONE), 0.01),       # bb
            rnd(keys[7], (BACKBONE, STATE), 0.2),    # wf1
            rnd(keys[8], (1, STATE), 0.01),          # bf1
            rnd(keys[9], (BACKBONE, STATE), 0.2),    # wf2
            rnd(keys[10], (1, STATE), 0.01),         # bf2
            rnd(keys[11], (BACKBONE, STATE), 0.2),   # wta
            rnd(keys[12], (1, STATE), 0.01),         # bta
            rnd(keys[13], (BACKBONE, STATE), 0.2),   # wtb
            rnd(keys[14], (1, STATE), 0.01),         # btb
        ],
    }


if __name__ == "__main__":
    root = jax.random.PRNGKey(0)
    xkey, pkey = jax.random.split(root)
    params = init_params(pkey)
    packed = pack_params(params)          # one-time packing (init, not per call)
    x = jax.random.normal(xkey, (B, T, C_IN, H, W), jnp.float32)

    fwd = jax.jit(ncp_cfc_forward)
    out = jax.block_until_ready(fwd(x, packed))
    assert out.shape == (B, T, MOTOR), out.shape
    assert bool(jnp.all(jnp.isfinite(out)))

    ref = reference_forward(x, params)
    assert bool(jnp.allclose(out, ref, atol=1e-2, rtol=1e-2)), (
        float(jnp.max(jnp.abs(out - ref))))

    # TODO(synk): training-side utilities (criterion / loss_smooth /
    # weighted_criterion / Adam optimizer / release / load / count_params /
    # nn_structure) are host-side PyTorch training code, not part of the
    # forward hot path, and are intentionally not ported.
    print("KERNEL_OK")
</pallas_src>

<mosaic_0001>
module attributes {stable_mosaic.version = 11 : i64} {
  func.func @_forward_kernel(%arg0: memref<16x1024xf32, #tpu.memory_space<vmem>>, %arg1: memref<1024x392xf32, #tpu.memory_space<vmem>>, %arg2: memref<1x392xf32, #tpu.memory_space<vmem>>, %arg3: memref<392x16xf32, #tpu.memory_space<vmem>>, %arg4: memref<88x128xf32, #tpu.memory_space<vmem>>, %arg5: memref<2x256xf32, #tpu.memory_space<vmem>>) attributes {dimension_semantics = [], scalar_prefetch = 0 : i64, scratch_operands = 0 : i64, tpu.core_type = #tpu.core_type<tc>} {
    %c0 = arith.constant 0 : index
    %c0_0 = arith.constant 0 : index
    %0 = vector.load %arg0[%c0, %c0_0] : memref<16x1024xf32, #tpu.memory_space<vmem>>, vector<16x1024xf32>
    %c0_1 = arith.constant 0 : index
    %c0_2 = arith.constant 0 : index
    %1 = vector.load %arg1[%c0_1, %c0_2] : memref<1024x392xf32, #tpu.memory_space<vmem>>, vector<1024x392xf32>
    %cst = arith.constant dense<0.000000e+00> : vector<16x392xf32>
    %2 = tpu.matmul %0, %1, %cst {dimension_numbers = #tpu.dot_dimension_numbers<[1], [0], [0], [1], [0, 0, 1, 1], [], []>} : vector<16x1024xf32>, vector<1024x392xf32>, vector<16x392xf32> -> vector<16x392xf32>
    %c0_3 = arith.constant 0 : index
    %c0_4 = arith.constant 0 : index
    %3 = vector.load %arg2[%c0_3, %c0_4] : memref<1x392xf32, #tpu.memory_space<vmem>>, vector<1x392xf32>
    %4 = vector.broadcast %3 : vector<1x392xf32> to vector<16x392xf32>
    %5 = arith.addf %2, %4 : vector<16x392xf32>
    %cst_5 = arith.constant 0.000000e+00 : f32
    %6 = vector.broadcast %cst_5 : f32 to vector<16x392xf32>
    %7 = arith.maximumf %5, %6 : vector<16x392xf32>
    %c34 = arith.constant 34 : index
    %c0_6 = arith.constant 0 : index
    %8 = vector.load %arg4[%c34, %c0_6] : memref<88x128xf32, #tpu.memory_space<vmem>>, vector<1x16xf32>
    %c0_7 = arith.constant 0 : index
    %c0_8 = arith.constant 0 : index
    %9 = vector.load %arg3[%c0_7, %c0_8] : memref<392x16xf32, #tpu.memory_space<vmem>>, vector<392x16xf32>
    %cst_9 = arith.constant dense<0.000000e+00> : vector<16x16xf32>
    %10 = tpu.matmul %7, %9, %cst_9 {dimension_numbers = #tpu.dot_dimension_numbers<[1], [0], [0], [1], [0, 0, 1, 1], [], []>} : vector<16x392xf32>, vector<392x16xf32>, vector<16x16xf32> -> vector<16x16xf32>
    %11 = vector.broadcast %8 : vector<1x16xf32> to vector<16x16xf32>
    %12 = arith.addf %10, %11 : vector<16x16xf32>
    %cst_10 = arith.constant 0.000000e+00 : f32
    %13 = vector.broadcast %cst_10 : f32 to vector<16x16xf32>
    %14 = arith.maximumf %12, %13 : vector<16x16xf32>
    %c40 = arith.constant 40 : index
    %c0_11 = arith.constant 0 : index
    %15 = vector.load %arg4[%c40, %c0_11] : memref<88x128xf32, #tpu.memory_space<vmem>>, vector<16x32xf32>
    %cst_12 = arith.constant dense<0.000000e+00> : vector<16x32xf32>
    %16 = tpu.matmul %14, %15, %cst_12 {dimension_numbers = #tpu.dot_dimension_numbers<[1], [0], [0], [1], [0, 0, 1, 1], [], []>} : vector<16x16xf32>, vector<16x32xf32>, vector<16x32xf32> -> vector<16x32xf32>
    %17 = vector.extract_strided_slice %16 {offsets = [0, 0], sizes = [1, 32], strides = [1, 1]} : vector<16x32xf32> to vector<1x32xf32>
    %18 = vector.extract_strided_slice %16 {offsets = [8, 0], sizes = [1, 32], strides = [1, 1]} : vector<16x32xf32> to vector<1x32xf32>
    %19 = vector.extract_strided_slice %16 {offsets = [1, 0], sizes = [1, 32], strides = [1, 1]} : vector<16x32xf32> to vector<1x32xf32>
    %20 = vector.extract_strided_slice %16 {offsets = [9, 0], sizes = [1, 32], strides = [1, 1]} : vector<16x32xf32> to vector<1x32xf32>
    %21 = vector.extract_strided_slice %16 {offsets = [2, 0], sizes = [1, 32], strides = [1, 1]} : vector<16x32xf32> to vector<1x32xf32>
    %22 = vector.extract_strided_slice %16 {offsets = [10, 0], sizes = [1, 32], strides = [1, 1]} : vector<16x32xf32> to vector<1x32xf32>
    %23 = vector.extract_strided_slice %16 {offsets = [3, 0], sizes = [1, 32], strides = [1, 1]} : vector<16x32xf32> to vector<1x32xf32>
    %24 = vector.extract_strided_slice %16 {offsets = [11, 0], sizes = [1, 32], strides = [1, 1]} : vector<16x32xf32> to vector<1x32xf32>
    %25 = vector.extract_strided_slice %16 {offsets = [4, 0], sizes = [1, 32], strides = [1, 1]} : vector<16x32xf32> to vector<1x32xf32>
    %26 = vector.extract_strided_slice %16 {offsets = [12, 0], sizes = [1, 32], strides = [1, 1]} : vector<16x32xf32> to vector<1x32xf32>
    %27 = vector.extract_strided_slice %16 {offsets = [5, 0], sizes = [1, 32], strides = [1, 1]} : vector<16x32xf32> to vector<1x32xf32>
    %28 = vector.extract_strided_slice %16 {offsets = [13, 0], sizes = [1, 32], strides = [1, 1]} : vector<16x32xf32> to vector<1x32xf32>
    %29 = vector.extract_strided_slice %16 {offsets = [6, 0], sizes = [1, 32], strides = [1, 1]} : vector<16x32xf32> to vector<1x32xf32>
    %30 = vector.extract_strided_slice %16 {offsets = [14, 0], sizes = [1, 32], strides = [1, 1]} : vector<16x32xf32> to vector<1x32xf32>
    %31 = vector.extract_strided_slice %16 {offsets = [7, 0], sizes = [1, 32], strides = [1, 1]} : vector<16x32xf32> to vector<1x32xf32>
    %32 = vector.extract_strided_slice %16 {offsets = [15, 0], sizes = [1, 32], strides = [1, 1]} : vector<16x32xf32> to vector<1x32xf32>
    %33 = tpu.concatenate %17, %18, %19, %20, %21, %22, %23, %24, %25, %26, %27, %28, %29, %30, %31, %32 in 0 : vector<1x32xf32>, vector<1x32xf32>, vector<1x32xf32>, vector<1x32xf32>, vector<1x32xf32>, vector<1x32xf32>, vector<1x32xf32>, vector<1x32xf32>, vector<1x32xf32>, vector<1x32xf32>, vector<1x32xf32>, vector<1x32xf32>, vector<1x32xf32>, vector<1x32xf32>, vector<1x32xf32>, vector<1x32xf32> -> vector<16x32xf32>
    %c56 = arith.constant 56 : index
    %c0_13 = arith.constant 0 : index
    %34 = vector.load %arg4[%c56, %c0_13] : memref<88x128xf32, #tpu.memory_space<vmem>>, vector<32x32xf32>
    %c33 = arith.constant 33 : index
    %c0_14 = arith.constant 0 : index
    %35 = vector.load %arg4[%c33, %c0_14] : memref<88x128xf32, #tpu.memory_space<vmem>>, vector<1x32xf32>
    %c0_15 = arith.constant 0 : index
    %c0_16 = arith.constant 0 : index
    %36 = vector.load %arg4[%c0_15, %c0_16] : memref<88x128xf32, #tpu.memory_space<vmem>>, vector<32x128xf32>
    %c32 = arith.constant 32 : index
    %c0_17 = arith.constant 0 : index
    %37 = vector.load %arg4[%c32, %c0_17] : memref<88x128xf32, #tpu.memory_space<vmem>>, vector<1x128xf32>
    %cst_18 = arith.constant 0.000000e+00 : f32
    %38 = vector.broadcast %cst_18 : f32 to vector<2x32xf32>
    %39 = vector.extract_strided_slice %33 {offsets = [0, 0], sizes = [2, 32], strides = [1, 1]} : vector<16x32xf32> to vector<2x32xf32>
    %cst_19 = arith.constant dense<0.000000e+00> : vector<2x32xf32>
    %40 = tpu.matmul %38, %34, %cst_19 {dimension_numbers = #tpu.dot_dimension_numbers<[1], [0], [0], [1], [0, 0, 1, 1], [], []>} : vector<2x32xf32>, vector<32x32xf32>, vector<2x32xf32> -> vector<2x32xf32>
    %41 = arith.addf %39, %40 : vector<2x32xf32>
    %42 = vector.broadcast %35 : vector<1x32xf32> to vector<2x32xf32>
    %43 = arith.addf %41, %42 : vector<2x32xf32>
    %44 = math.tanh %43 : vector<2x32xf32>
    %cst_20 = arith.constant dense<0.000000e+00> : vector<2x128xf32>
    %45 = tpu.matmul %44, %36, %cst_20 {dimension_numbers = #tpu.dot_dimension_numbers<[1], [0], [0], [1], [0, 0, 1, 1], [], []>} : vector<2x32xf32>, vector<32x128xf32>, vector<2x128xf32> -> vector<2x128xf32>
    %46 = vector.broadcast %37 : vector<1x128xf32> to vector<2x128xf32>
    %47 = arith.addf %45, %46 : vector<2x128xf32>
    %48 = vector.extract_strided_slice %47 {offsets = [0, 0], sizes = [2, 32], strides = [1, 1]} : vector<2x128xf32> to vector<2x32xf32>
    %49 = vector.extract_strided_slice %47 {offsets = [0, 32], sizes = [2, 32], strides = [1, 1]} : vector<2x128xf32> to vector<2x32xf32>
    %50 = vector.extract_strided_slice %47 {offsets = [0, 64], sizes = [2, 32], strides = [1, 1]} : vector<2x128xf32> to vector<2x32xf32>
    %51 = vector.extract_strided_slice %47 {offsets = [0, 96], sizes = [2, 32], strides = [1, 1]} : vector<2x128xf32> to vector<2x32xf32>
    %52 = arith.addf %50, %51 : vector<2x32xf32>
    %53 = arith.negf %52 : vector<2x32xf32>
    %54 = math.exp %53 : vector<2x32xf32>
    %cst_21 = arith.constant 1.000000e+00 : f32
    %55 = vector.broadcast %cst_21 : f32 to vector<2x32xf32>
    %56 = arith.addf %55, %54 : vector<2x32xf32>
    %57 = arith.divf %55, %56 : vector<2x32xf32>
    %cst_22 = arith.constant 1.000000e+00 : f32
    %58 = vector.broadcast %cst_22 : f32 to vector<2x32xf32>
    %59 = arith.subf %58, %57 : vector<2x32xf32>
    %60 = arith.mulf %48, %59 : vector<2x32xf32>
    %61 = arith.mulf %57, %49 : vector<2x32xf32>
    %62 = arith.addf %60, %61 : vector<2x32xf32>
    %63 = vector.extract_strided_slice %33 {offsets = [2, 0], sizes = [2, 32], strides = [1, 1]} : vector<16x32xf32> to vector<2x32xf32>
    %cst_23 = arith.constant dense<0.000000e+00> : vector<2x32xf32>
    %64 = tpu.matmul %62, %34, %cst_23 {dimension_numbers = #tpu.dot_dimension_numbers<[1], [0], [0], [1], [0, 0, 1, 1], [], []>} : vector<2x32xf32>, vector<32x32xf32>, vector<2x32xf32> -> vector<2x32xf32>
    %65 = arith.addf %63, %64 : vector<2x32xf32>
    %66 = vector.broadcast %35 : vector<1x32xf32> to vector<2x32xf32>
    %67 = arith.addf %65, %66 : vector<2x32xf32>
    %68 = math.tanh %67 : vector<2x32xf32>
    %cst_24 = arith.constant dense<0.000000e+00> : vector<2x128xf32>
    %69 = tpu.matmul %68, %36, %cst_24 {dimension_numbers = #tpu.dot_dimension_numbers<[1], [0], [0], [1], [0, 0, 1, 1], [], []>} : vector<2x32xf32>, vector<32x128xf32>, vector<2x128xf32> -> vector<2x128xf32>
    %70 = vector.broadcast %37 : vector<1x128xf32> to vector<2x128xf32>
    %71 = arith.addf %69, %70 : vector<2x128xf32>
    %72 = vector.extract_strided_slice %71 {offsets = [0, 0], sizes = [2, 32], strides = [1, 1]} : vector<2x128xf32> to vector<2x32xf32>
    %73 = vector.extract_strided_slice %71 {offsets = [0, 32], sizes = [2, 32], strides = [1, 1]} : vector<2x128xf32> to vector<2x32xf32>
    %74 = vector.extract_strided_slice %71 {offsets = [0, 64], sizes = [2, 32], strides = [1, 1]} : vector<2x128xf32> to vector<2x32xf32>
    %75 = vector.extract_strided_slice %71 {offsets = [0, 96], sizes = [2, 32], strides = [1, 1]} : vector<2x128xf32> to vector<2x32xf32>
    %76 = arith.addf %74, %75 : vector<2x32xf32>
    %77 = arith.negf %76 : vector<2x32xf32>
    %78 = math.exp %77 : vector<2x32xf32>
    %cst_25 = arith.constant 1.000000e+00 : f32
    %79 = vector.broadcast %cst_25 : f32 to vector<2x32xf32>
    %80 = arith.addf %79, %78 : vector<2x32xf32>
    %81 = arith.divf %79, %80 : vector<2x32xf32>
    %cst_26 = arith.constant 1.000000e+00 : f32
    %82 = vector.broadcast %cst_26 : f32 to vector<2x32xf32>
    %83 = arith.subf %82, %81 : vector<2x32xf32>
    %84 = arith.mulf %72, %83 : vector<2x32xf32>
    %85 = arith.mulf %81, %73 : vector<2x32xf32>
    %86 = arith.addf %84, %85 : vector<2x32xf32>
    %87 = vector.extract_strided_slice %33 {offsets = [4, 0], sizes = [2, 32], strides = [1, 1]} : vector<16x32xf32> to vector<2x32xf32>
    %cst_27 = arith.constant dense<0.000000e+00> : vector<2x32xf32>
    %88 = tpu.matmul %86, %34, %cst_27 {dimension_numbers = #tpu.dot_dimension_numbers<[1], [0], [0], [1], [0, 0, 1, 1], [], []>} : vector<2x32xf32>, vector<32x32xf32>, vector<2x32xf32> -> vector<2x32xf32>
    %89 = arith.addf %87, %88 : vector<2x32xf32>
    %90 = vector.broadcast %35 : vector<1x32xf32> to vector<2x32xf32>
    %91 = arith.addf %89, %90 : vector<2x32xf32>
    %92 = math.tanh %91 : vector<2x32xf32>
    %cst_28 = arith.constant dense<0.000000e+00> : vector<2x128xf32>
    %93 = tpu.matmul %92, %36, %cst_28 {dimension_numbers = #tpu.dot_dimension_numbers<[1], [0], [0], [1], [0, 0, 1, 1], [], []>} : vector<2x32xf32>, vector<32x128xf32>, vector<2x128xf32> -> vector<2x128xf32>
    %94 = vector.broadcast %37 : vector<1x128xf32> to vector<2x128xf32>
    %95 = arith.addf %93, %94 : vector<2x128xf32>
    %96 = vector.extract_strided_slice %95 {offsets = [0, 0], sizes = [2, 32], strides = [1, 1]} : vector<2x128xf32> to vector<2x32xf32>
    %97 = vector.extract_strided_slice %95 {offsets = [0, 32], sizes = [2, 32], strides = [1, 1]} : vector<2x128xf32> to vector<2x32xf32>
    %98 = vector.extract_strided_slice %95 {offsets = [0, 64], sizes = [2, 32], strides = [1, 1]} : vector<2x128xf32> to vector<2x32xf32>
    %99 = vector.extract_strided_slice %95 {offsets = [0, 96], sizes = [2, 32], strides = [1, 1]} : vector<2x128xf32> to vector<2x32xf32>
    %100 = arith.addf %98, %99 : vector<2x32xf32>
    %101 = arith.negf %100 : vector<2x32xf32>
    %102 = math.exp %101 : vector<2x32xf32>
    %cst_29 = arith.constant 1.000000e+00 : f32
    %103 = vector.broadcast %cst_29 : f32 to vector<2x32xf32>
    %104 = arith.addf %103, %102 : vector<2x32xf32>
    %105 = arith.divf %103, %104 : vector<2x32xf32>
    %cst_30 = arith.constant 1.000000e+00 : f32
    %106 = vector.broadcast %cst_30 : f32 to vector<2x32xf32>
    %107 = arith.subf %106, %105 : vector<2x32xf32>
    %108 = arith.mulf %96, %107 : vector<2x32xf32>
    %109 = arith.mulf %105, %97 : vector<2x32xf32>
    %110 = arith.addf %108, %109 : vector<2x32xf32>
    %111 = vector.extract_strided_slice %33 {offsets = [6, 0], sizes = [2, 32], strides = [1, 1]} : vector<16x32xf32> to vector<2x32xf32>
    %cst_31 = arith.constant dense<0.000000e+00> : vector<2x32xf32>
    %112 = tpu.matmul %110, %34, %cst_31 {dimension_numbers = #tpu.dot_dimension_numbers<[1], [0], [0], [1], [0, 0, 1, 1], [], []>} : vector<2x32xf32>, vector<32x32xf32>, vector<2x32xf32> -> vector<2x32xf32>
    %113 = arith.addf %111, %112 : vector<2x32xf32>
    %114 = vector.broadcast %35 : vector<1x32xf32> to vector<2x32xf32>
    %115 = arith.addf %113, %114 : vector<2x32xf32>
    %116 = math.tanh %115 : vector<2x32xf32>
    %cst_32 = arith.constant dense<0.000000e+00> : vector<2x128xf32>
    %117 = tpu.matmul %116, %36, %cst_32 {dimension_numbers = #tpu.dot_dimension_numbers<[1], [0], [0], [1], [0, 0, 1, 1], [], []>} : vector<2x32xf32>, vector<32x128xf32>, vector<2x128xf32> -> vector<2x128xf32>
    %118 = vector.broadcast %37 : vector<1x128xf32> to vector<2x128xf32>
    %119 = arith.addf %117, %118 : vector<2x128xf32>
    %120 = vector.extract_strided_slice %119 {offsets = [0, 0], sizes = [2, 32], strides = [1, 1]} : vector<2x128xf32> to vector<2x32xf32>
    %121 = vector.extract_strided_slice %119 {offsets = [0, 32], sizes = [2, 32], strides = [1, 1]} : vector<2x128xf32> to vector<2x32xf32>
    %122 = vector.extract_strided_slice %119 {offsets = [0, 64], sizes = [2, 32], strides = [1, 1]} : vector<2x128xf32> to vector<2x32xf32>
    %123 = vector.extract_strided_slice %119 {offsets = [0, 96], sizes = [2, 32], strides = [1, 1]} : vector<2x128xf32> to vector<2x32xf32>
    %124 = arith.addf %122, %123 : vector<2x32xf32>
    %125 = arith.negf %124 : vector<2x32xf32>
    %126 = math.exp %125 : vector<2x32xf32>
    %cst_33 = arith.constant 1.000000e+00 : f32
    %127 = vector.broadcast %cst_33 : f32 to vector<2x32xf32>
    %128 = arith.addf %127, %126 : vector<2x32xf32>
    %129 = arith.divf %127, %128 : vector<2x32xf32>
    %cst_34 = arith.constant 1.000000e+00 : f32
    %130 = vector.broadcast %cst_34 : f32 to vector<2x32xf32>
    %131 = arith.subf %130, %129 : vector<2x32xf32>
    %132 = arith.mulf %120, %131 : vector<2x32xf32>
    %133 = arith.mulf %129, %121 : vector<2x32xf32>
    %134 = arith.addf %132, %133 : vector<2x32xf32>
    %135 = vector.extract_strided_slice %33 {offsets = [8, 0], sizes = [2, 32], strides = [1, 1]} : vector<16x32xf32> to vector<2x32xf32>
    %cst_35 = arith.constant dense<0.000000e+00> : vector<2x32xf32>
    %136 = tpu.matmul %134, %34, %cst_35 {dimension_numbers = #tpu.dot_dimension_numbers<[1], [0], [0], [1], [0, 0, 1, 1], [], []>} : vector<2x32xf32>, vector<32x32xf32>, vector<2x32xf32> -> vector<2x32xf32>
    %137 = arith.addf %135, %136 : vector<2x32xf32>
    %138 = vector.broadcast %35 : vector<1x32xf32> to vector<2x32xf32>
    %139 = arith.addf %137, %138 : vector<2x32xf32>
    %140 = math.tanh %139 : vector<2x32xf32>
    %cst_36 = arith.constant dense<0.000000e+00> : vector<2x128xf32>
    %141 = tpu.matmul %140, %36, %cst_36 {dimension_numbers = #tpu.dot_dimension_numbers<[1], [0], [0], [1], [0, 0, 1, 1], [], []>} : vector<2x32xf32>, vector<32x128xf32>, vector<2x128xf32> -> vector<2x128xf32>
    %142 = vector.broadcast %37 : vector<1x128xf32> to vector<2x128xf32>
    %143 = arith.addf %141, %142 : vector<2x128xf32>
    %144 = vector.extract_strided_slice %143 {offsets = [0, 0], sizes = [2, 32], strides = [1, 1]} : vector<2x128xf32> to vector<2x32xf32>
    %145 = vector.extract_strided_slice %143 {offsets = [0, 32], sizes = [2, 32], strides = [1, 1]} : vector<2x128xf32> to vector<2x32xf32>
    %146 = vector.extract_strided_slice %143 {offsets = [0, 64], sizes = [2, 32], strides = [1, 1]} : vector<2x128xf32> to vector<2x32xf32>
    %147 = vector.extract_strided_slice %143 {offsets = [0, 96], sizes = [2, 32], strides = [1, 1]} : vector<2x128xf32> to vector<2x32xf32>
    %148 = arith.addf %146, %147 : vector<2x32xf32>
    %149 = arith.negf %148 : vector<2x32xf32>
    %150 = math.exp %149 : vector<2x32xf32>
    %cst_37 = arith.constant 1.000000e+00 : f32
    %151 = vector.broadcast %cst_37 : f32 to vector<2x32xf32>
    %152 = arith.addf %151, %150 : vector<2x32xf32>
    %153 = arith.divf %151, %152 : vector<2x32xf32>
    %cst_38 = arith.constant 1.000000e+00 : f32
    %154 = vector.broadcast %cst_38 : f32 to vector<2x32xf32>
    %155 = arith.subf %154, %153 : vector<2x32xf32>
    %156 = arith.mulf %144, %155 : vector<2x32xf32>
    %157 = arith.mulf %153, %145 : vector<2x32xf32>
    %158 = arith.addf %156, %157 : vector<2x32xf32>
    %159 = vector.extract_strided_slice %33 {offsets = [10, 0], sizes = [2, 32], strides = [1, 1]} : vector<16x32xf32> to vector<2x32xf32>
    %cst_39 = arith.constant dense<0.000000e+00> : vector<2x32xf32>
    %160 = tpu.matmul %158, %34, %cst_39 {dimension_numbers = #tpu.dot_dimension_numbers<[1], [0], [0], [1], [0, 0, 1, 1], [], []>} : vector<2x32xf32>, vector<32x32xf32>, vector<2x32xf32> -> vector<2x32xf32>
    %161 = arith.addf %159, %160 : vector<2x32xf32>
    %162 = vector.broadcast %35 : vector<1x32xf32> to vector<2x32xf32>
    %163 = arith.addf %161, %162 : vector<2x32xf32>
    %164 = math.tanh %163 : vector<2x32xf32>
    %cst_40 = arith.constant dense<0.000000e+00> : vector<2x128xf32>
    %165 = tpu.matmul %164, %36, %cst_40 {dimension_numbers = #tpu.dot_dimension_numbers<[1], [0], [0], [1], [0, 0, 1, 1], [], []>} : vector<2x32xf32>, vector<32x128xf32>, vector<2x128xf32> -> vector<2x128xf32>
    %166 = vector.broadcast %37 : vector<1x128xf32> to vector<2x128xf32>
    %167 = arith.addf %165, %166 : vector<2x128xf32>
    %168 = vector.extract_strided_slice %167 {offsets = [0, 0], sizes = [2, 32], strides = [1, 1]} : vector<2x128xf32> to vector<2x32xf32>
    %169 = vector.extract_strided_slice %167 {offsets = [0, 32], sizes = [2, 32], strides = [1, 1]} : vector<2x128xf32> to vector<2x32xf32>
    %170 = vector.extract_strided_slice %167 {offsets = [0, 64], sizes = [2, 32], strides = [1, 1]} : vector<2x128xf32> to vector<2x32xf32>
    %171 = vector.extract_strided_slice %167 {offsets = [0, 96], sizes = [2, 32], strides = [1, 1]} : vector<2x128xf32> to vector<2x32xf32>
    %172 = arith.addf %170, %171 : vector<2x32xf32>
    %173 = arith.negf %172 : vector<2x32xf32>
    %174 = math.exp %173 : vector<2x32xf32>
    %cst_41 = arith.constant 1.000000e+00 : f32
    %175 = vector.broadcast %cst_41 : f32 to vector<2x32xf32>
    %176 = arith.addf %175, %174 : vector<2x32xf32>
    %177 = arith.divf %175, %176 : vector<2x32xf32>
    %cst_42 = arith.constant 1.000000e+00 : f32
    %178 = vector.broadcast %cst_42 : f32 to vector<2x32xf32>
    %179 = arith.subf %178, %177 : vector<2x32xf32>
    %180 = arith.mulf %168, %179 : vector<2x32xf32>
    %181 = arith.mulf %177, %169 : vector<2x32xf32>
    %182 = arith.addf %180, %181 : vector<2x32xf32>
    %183 = vector.extract_strided_slice %33 {offsets = [12, 0], sizes = [2, 32], strides = [1, 1]} : vector<16x32xf32> to vector<2x32xf32>
    %cst_43 = arith.constant dense<0.000000e+00> : vector<2x32xf32>
    %184 = tpu.matmul %182, %34, %cst_43 {dimension_numbers = #tpu.dot_dimension_numbers<[1], [0], [0], [1], [0, 0, 1, 1], [], []>} : vector<2x32xf32>, vector<32x32xf32>, vector<2x32xf32> -> vector<2x32xf32>
    %185 = arith.addf %183, %184 : vector<2x32xf32>
    %186 = vector.broadcast %35 : vector<1x32xf32> to vector<2x32xf32>
    %187 = arith.addf %185, %186 : vector<2x32xf32>
    %188 = math.tanh %187 : vector<2x32xf32>
    %cst_44 = arith.constant dense<0.000000e+00> : vector<2x128xf32>
    %189 = tpu.matmul %188, %36, %cst_44 {dimension_numbers = #tpu.dot_dimension_numbers<[1], [0], [0], [1], [0, 0, 1, 1], [], []>} : vector<2x32xf32>, vector<32x128xf32>, vector<2x128xf32> -> vector<2x128xf32>
    %190 = vector.broadcast %37 : vector<1x128xf32> to vector<2x128xf32>
    %191 = arith.addf %189, %190 : vector<2x128xf32>
    %192 = vector.extract_strided_slice %191 {offsets = [0, 0], sizes = [2, 32], strides = [1, 1]} : vector<2x128xf32> to vector<2x32xf32>
    %193 = vector.extract_strided_slice %191 {offsets = [0, 32], sizes = [2, 32], strides = [1, 1]} : vector<2x128xf32> to vector<2x32xf32>
    %194 = vector.extract_strided_slice %191 {offsets = [0, 64], sizes = [2, 32], strides = [1, 1]} : vector<2x128xf32> to vector<2x32xf32>
    %195 = vector.extract_strided_slice %191 {offsets = [0, 96], sizes = [2, 32], strides = [1, 1]} : vector<2x128xf32> to vector<2x32xf32>
    %196 = arith.addf %194, %195 : vector<2x32xf32>
    %197 = arith.negf %196 : vector<2x32xf32>
    %198 = math.exp %197 : vector<2x32xf32>
    %cst_45 = arith.constant 1.000000e+00 : f32
    %199 = vector.broadcast %cst_45 : f32 to vector<2x32xf32>
    %200 = arith.addf %199, %198 : vector<2x32xf32>
    %201 = arith.divf %199, %200 : vector<2x32xf32>
    %cst_46 = arith.constant 1.000000e+00 : f32
    %202 = vector.broadcast %cst_46 : f32 to vector<2x32xf32>
    %203 = arith.subf %202, %201 : vector<2x32xf32>
    %204 = arith.mulf %192, %203 : vector<2x32xf32>
    %205 = arith.mulf %201, %193 : vector<2x32xf32>
    %206 = arith.addf %204, %205 : vector<2x32xf32>
    %207 = vector.extract_strided_slice %33 {offsets = [14, 0], sizes = [2, 32], strides = [1, 1]} : vector<16x32xf32> to vector<2x32xf32>
    %cst_47 = arith.constant dense<0.000000e+00> : vector<2x32xf32>
    %208 = tpu.matmul %206, %34, %cst_47 {dimension_numbers = #tpu.dot_dimension_numbers<[1], [0], [0], [1], [0, 0, 1, 1], [], []>} : vector<2x32xf32>, vector<32x32xf32>, vector<2x32xf32> -> vector<2x32xf32>
    %209 = arith.addf %207, %208 : vector<2x32xf32>
    %210 = vector.broadcast %35 : vector<1x32xf32> to vector<2x32xf32>
    %211 = arith.addf %209, %210 : vector<2x32xf32>
    %212 = math.tanh %211 : vector<2x32xf32>
    %cst_48 = arith.constant dense<0.000000e+00> : vector<2x128xf32>
    %213 = tpu.matmul %212, %36, %cst_48 {dimension_numbers = #tpu.dot_dimension_numbers<[1], [0], [0], [1], [0, 0, 1, 1], [], []>} : vector<2x32xf32>, vector<32x128xf32>, vector<2x128xf32> -> vector<2x128xf32>
    %214 = vector.broadcast %37 : vector<1x128xf32> to vector<2x128xf32>
    %215 = arith.addf %213, %214 : vector<2x128xf32>
    %216 = vector.extract_strided_slice %215 {offsets = [0, 0], sizes = [2, 32], strides = [1, 1]} : vector<2x128xf32> to vector<2x32xf32>
    %217 = vector.extract_strided_slice %215 {offsets = [0, 32], sizes = [2, 32], strides = [1, 1]} : vector<2x128xf32> to vector<2x32xf32>
    %218 = vector.extract_strided_slice %215 {offsets = [0, 64], sizes = [2, 32], strides = [1, 1]} : vector<2x128xf32> to vector<2x32xf32>
    %219 = vector.extract_strided_slice %215 {offsets = [0, 96], sizes = [2, 32], strides = [1, 1]} : vector<2x128xf32> to vector<2x32xf32>
    %220 = arith.addf %218, %219 : vector<2x32xf32>
    %221 = arith.negf %220 : vector<2x32xf32>
    %222 = math.exp %221 : vector<2x32xf32>
    %cst_49 = arith.constant 1.000000e+00 : f32
    %223 = vector.broadcast %cst_49 : f32 to vector<2x32xf32>
    %224 = arith.addf %223, %222 : vector<2x32xf32>
    %225 = arith.divf %223, %224 : vector<2x32xf32>
    %cst_50 = arith.constant 1.000000e+00 : f32
    %226 = vector.broadcast %cst_50 : f32 to vector<2x32xf32>
    %227 = arith.subf %226, %225 : vector<2x32xf32>
    %228 = arith.mulf %216, %227 : vector<2x32xf32>
    %229 = arith.mulf %225, %217 : vector<2x32xf32>
    %230 = arith.addf %228, %229 : vector<2x32xf32>
    %231 = tpu.concatenate %62, %86, %110, %134, %158, %182, %206, %230 in 1 : vector<2x32xf32>, vector<2x32xf32>, vector<2x32xf32>, vector<2x32xf32>, vector<2x32xf32>, vector<2x32xf32>, vector<2x32xf32>, vector<2x32xf32> -> vector<2x256xf32>
    %c0_51 = arith.constant 0 : index
    %c0_52 = arith.constant 0 : index
    %232 = vector.load %arg5[%c0_51, %c0_52] : memref<2x256xf32, #tpu.memory_space<vmem>>, vector<2x256xf32>
    tpu.vector_store %arg5[%c0_51, %c0_52], %231 {strides = array<i32>} : memref<2x256xf32, #tpu.memory_space<vmem>>, vector<2x256xf32>,
    return
  }
}

</mosaic_0001>

<bundles_post_ra>
// kernel: ncp_cfc_forward.1
= control target key start
LH: loop header
LB: loop body
LE: loop exit
PB: predicated region body
PF: predicated region fallthrough
CT: control target
= control target key end

     0   :  { %vm1248_vm0 = vcmask 64512   ;;  %vm3434_vm1 = vmmov 0   ;;  %vm1409_vm2 = vcmask 130048   ;;  %vm1521_vm3 = vcmask 1040384   ;;  %s3435_s20 = smov 96   ;;  %s3436_s21 = smov 32   ;;  %s5623_s1 = inlined_call_operand.vmem [shape: f32[1024,392], index: 1, kind: input, shape index: {}]   ;;  %s5624_s0 = inlined_call_operand.vmem [shape: f32[16,1024], index: 0, kind: input, shape index: {}]   ;;  %s5625_s3 = inlined_call_operand.vmem [shape: f32[392,16], index: 3, kind: input, shape index: {}]   ;;  %s5626_s2 = inlined_call_operand.vmem [shape: f32[1,392], index: 2, kind: input, shape index: {}]   ;;  %s5627_s4 = inlined_call_operand.vmem [shape: f32[88,128], index: 4, kind: input, shape index: {}]   ;;  %s5628_s5 = inlined_call_operand.vmem [shape: f32[2,256], index: 5, kind: output, shape index: {}]  }
   0x1   :  { %v97_v0 = vld [vmem:[%s5623_s1 + $0x1e8] sm:$0xff]  ;;  %v96_v2 = vld [vmem:[%s5623_s1 + $0x1e0] sm:$0xff]  ;;  %vm1523_vm4 = vcmask 1041408   ;;  %vm1525_vm5 = vcmask 1042432   ;;  %vm1527_vm6 = vcmask 1043456   ;;  %vm1529_vm7 = vcmask 1044480  }
   0x2   :  { %v225_v1 = vld [vmem:[%s5623_s1 + $0x5e8] sm:$0xff]  ;;  %570 = vmatprep.subr.mxu0 %v97_v0  ;;  %v224_v3 = vld [vmem:[%s5623_s1 + $0x5e0] sm:$0xff]  ;;  %vm1531_vm8 = vcmask 1045504   ;;  %vm1533_vm9 = vcmask 1046528   ;;  %vm1552_vm10 = vcmask 261120   ;;  %vm3005_vm11 = vcmask 523264  }
   0x3   :  { %647 = vmatprep.subr.mxu1 %v225_v1  ;;  %v93_v4 = vld [vmem:[%s5623_s1 + $0x1c8] sm:$0xff]  ;;  %571 = vmatpush1.msra.mxu0 %v96_v2  ;;  %v92_v6 = vld [vmem:[%s5623_s1 + $0x1c0] sm:$0xff]  ;;  %vm3007_vm12 = vcmask 785408  }
   0x4   :  { %v221_v5 = vld [vmem:[%s5623_s1 + $0x5c8] sm:$0xff]  ;;  %648 = vmatpush1.msra.mxu1 %v224_v3  ;;  %v220_v7 = vld [vmem:[%s5623_s1 + $0x5c0] sm:$0xff]  ;;  %572 = vmatprep.subr.mxu0 %v93_v4 }
   0x5   :  { %v89_v8 = vld [vmem:[%s5623_s1 + $0x1a8] sm:$0xff]  ;;  %649 = vmatprep.subr.mxu1 %v221_v5  ;;  %v88_v10 = vld [vmem:[%s5623_s1 + $0x1a0] sm:$0xff]  ;;  %573 = vmatpush1.msra.mxu0 %v92_v6 }
   0x6   :  { %v217_v9 = vld [vmem:[%s5623_s1 + $0x5a8] sm:$0xff]  ;;  %v216_v11 = vld [vmem:[%s5623_s1 + $0x5a0] sm:$0xff]  ;;  %650 = vmatpush1.msra.mxu1 %v220_v7  ;;  %574 = vmatprep.subr.mxu0 %v89_v8 }
   0x7   :  { %v85_v12 = vld [vmem:[%s5623_s1 + $0x188] sm:$0xff]  ;;  %651 = vmatprep.subr.mxu1 %v217_v9  ;;  %v84_v14 = vld [vmem:[%s5623_s1 + $0x180] sm:$0xff]  ;;  %575 = vmatpush1.msra.mxu0 %v88_v10 }
   0x8   :  { %v213_v13 = vld [vmem:[%s5623_s1 + $0x588] sm:$0xff]  ;;  %v212_v15 = vld [vmem:[%s5623_s1 + $0x580] sm:$0xff]  ;;  %652 = vmatpush1.msra.mxu1 %v216_v11  ;;  %576 = vmatprep.subr.mxu0 %v85_v12 }
   0x9   :  { %v81_v16 = vld [vmem:[%s5623_s1 + $0x168] sm:$0xff]  ;;  %653 = vmatprep.subr.mxu1 %v213_v13  ;;  %v80_v18 = vld [vmem:[%s5623_s1 + $0x160] sm:$0xff]  ;;  %577 = vmatpush1.msra.mxu0 %v84_v14 }
   0xa   :  { %v209_v17 = vld [vmem:[%s5623_s1 + $0x568] sm:$0xff]  ;;  %v208_v19 = vld [vmem:[%s5623_s1 + $0x560] sm:$0xff]  ;;  %654 = vmatpush1.msra.mxu1 %v212_v15  ;;  %578 = vmatprep.subr.mxu0 %v81_v16 }
   0xb   :  { %v77_v20 = vld [vmem:[%s5623_s1 + $0x148] sm:$0xff]  ;;  %655 = vmatprep.subr.mxu1 %v209_v17  ;;  %v76_v22 = vld [vmem:[%s5623_s1 + $0x140] sm:$0xff]  ;;  %579 = vmatpush1.msra.mxu0 %v80_v18 }
   0xc   :  { %v205_v21 = vld [vmem:[%s5623_s1 + $0x548] sm:$0xff]  ;;  %v204_v23 = vld [vmem:[%s5623_s1 + $0x540] sm:$0xff]  ;;  %656 = vmatpush1.msra.mxu1 %v208_v19  ;;  %580 = vmatprep.subr.mxu0 %v77_v20 }
   0xd   :  { %v73_v24 = vld [vmem:[%s5623_s1 + $0x128] sm:$0xff]  ;;  %657 = vmatprep.subr.mxu1 %v205_v21  ;;  %v72_v26 = vld [vmem:[%s5623_s1 + $0x120] sm:$0xff]  ;;  %581 = vmatpush1.msra.mxu0 %v76_v22 }
   0xe   :  { %v201_v25 = vld [vmem:[%s5623_s1 + $0x528] sm:$0xff]  ;;  %v200_v27 = vld [vmem:[%s5623_s1 + $0x520] sm:$0xff]  ;;  %658 = vmatpush1.msra.mxu1 %v204_v23  ;;  %582 = vmatprep.subr.mxu0 %v73_v24 }
   0xf   :  { %v69_v28 = vld [vmem:[%s5623_s1 + $0x108] sm:$0xff]  ;;  %659 = vmatprep.subr.mxu1 %v201_v25  ;;  %v68_v30 = vld [vmem:[%s5623_s1 + $0x100] sm:$0xff]  ;;  %583 = vmatpush1.msra.mxu0 %v72_v26 }
  0x10   :  { %v197_v29 = vld [vmem:[%s5623_s1 + $0x508] sm:$0xff]  ;;  %v196_v31 = vld [vmem:[%s5623_s1 + $0x500] sm:$0xff]  ;;  %660 = vmatpush1.msra.mxu1 %v200_v27  ;;  %584 = vmatprep.subr.mxu0 %v69_v28 }
  0x11   :  { %v65_v32 = vld [vmem:[%s5623_s1 + $0xe8] sm:$0xff]  ;;  %661 = vmatprep.subr.mxu1 %v197_v29  ;;  %v64_v34 = vld [vmem:[%s5623_s1 + $0xe0] sm:$0xff]  ;;  %585 = vmatpush1.msra.mxu0 %v68_v30 }
  0x12   :  { %v193_v33 = vld [vmem:[%s5623_s1 + $0x4e8] sm:$0xff]  ;;  %v192_v35 = vld [vmem:[%s5623_s1 + $0x4e0] sm:$0xff]  ;;  %662 = vmatpush1.msra.mxu1 %v196_v31  ;;  %586 = vmatprep.subr.mxu0 %v65_v32 }
  0x13   :  { %v61_v36 = vld [vmem:[%s5623_s1 + $0xc8] sm:$0xff]  ;;  %663 = vmatprep.subr.mxu1 %v193_v33  ;;  %v60_v38 = vld [vmem:[%s5623_s1 + $0xc0] sm:$0xff]  ;;  %587 = vmatpush1.msra.mxu0 %v64_v34 }
  0x14   :  { %v189_v37 = vld [vmem:[%s5623_s1 + $0x4c8] sm:$0xff]  ;;  %v188_v39 = vld [vmem:[%s5623_s1 + $0x4c0] sm:$0xff]  ;;  %664 = vmatpush1.msra.mxu1 %v192_v35  ;;  %588 = vmatprep.subr.mxu0 %v61_v36 }
  0x15   :  { %v57_v40 = vld [vmem:[%s5623_s1 + $0xa8] sm:$0xff]  ;;  %665 = vmatprep.subr.mxu1 %v189_v37  ;;  %v56_v42 = vld [vmem:[%s5623_s1 + $0xa0] sm:$0xff]  ;;  %589 = vmatpush1.msra.mxu0 %v60_v38 }
  0x16   :  { %v185_v41 = vld [vmem:[%s5623_s1 + $0x4a8] sm:$0xff]  ;;  %v184_v43 = vld [vmem:[%s5623_s1 + $0x4a0] sm:$0xff]  ;;  %666 = vmatpush1.msra.mxu1 %v188_v39  ;;  %590 = vmatprep.subr.mxu0 %v57_v40 }
  0x17   :  { %v53_v44 = vld [vmem:[%s5623_s1 + $0x88] sm:$0xff]  ;;  %667 = vmatprep.subr.mxu1 %v185_v41  ;;  %v52_v46 = vld [vmem:[%s5623_s1 + $0x80] sm:$0xff]  ;;  %591 = vmatpush1.msra.mxu0 %v56_v42 }
  0x18   :  { %v181_v45 = vld [vmem:[%s5623_s1 + $0x488] sm:$0xff]  ;;  %v180_v47 = vld [vmem:[%s5623_s1 + $0x480] sm:$0xff]  ;;  %668 = vmatpush1.msra.mxu1 %v184_v43  ;;  %592 = vmatprep.subr.mxu0 %v53_v44 }
  0x19   :  { %v49_v48 = vld [vmem:[%s5623_s1 + $0x68] sm:$0xff]  ;;  %669 = vmatprep.subr.mxu1 %v181_v45  ;;  %v48_v50 = vld [vmem:[%s5623_s1 + $0x60] sm:$0xff]  ;;  %593 = vmatpush1.msra.mxu0 %v52_v46 }
  0x1a   :  { %v177_v49 = vld [vmem:[%s5623_s1 + $0x468] sm:$0xff]  ;;  %v176_v51 = vld [vmem:[%s5623_s1 + $0x460] sm:$0xff]  ;;  %670 = vmatpush1.msra.mxu1 %v180_v47  ;;  %594 = vmatprep.subr.mxu0 %v49_v48 }
  0x1b   :  { %v45_v52 = vld [vmem:[%s5623_s1 + $0x48] sm:$0xff]  ;;  %671 = vmatprep.subr.mxu1 %v177_v49  ;;  %v44_v54 = vld [vmem:[%s5623_s1 + $0x40] sm:$0xff]  ;;  %595 = vmatpush1.msra.mxu0 %v48_v50 }
  0x1c   :  { %v173_v53 = vld [vmem:[%s5623_s1 + $0x448] sm:$0xff]  ;;  %v172_v55 = vld [vmem:[%s5623_s1 + $0x440] sm:$0xff]  ;;  %672 = vmatpush1.msra.mxu1 %v176_v51  ;;  %596 = vmatprep.subr.mxu0 %v45_v52 }
  0x1d   :  { %v41_v56 = vld [vmem:[%s5623_s1 + $0x28] sm:$0xff]  ;;  %673 = vmatprep.subr.mxu1 %v173_v53  ;;  %v40_v58 = vld [vmem:[%s5623_s1 + $0x20] sm:$0xff]  ;;  %597 = vmatpush1.msra.mxu0 %v44_v54 }
  0x1e   :  { %v169_v57 = vld [vmem:[%s5623_s1 + $0x428] sm:$0xff]  ;;  %v168_v59 = vld [vmem:[%s5623_s1 + $0x420] sm:$0xff]  ;;  %674 = vmatpush1.msra.mxu1 %v172_v55  ;;  %598 = vmatprep.subr.mxu0 %v41_v56 }
  0x1f   :  { %v37_v60 = vld [vmem:[%s5623_s1 + $0x8] sm:$0xff]  ;;  %675 = vmatprep.subr.mxu1 %v169_v57  ;;  %v36_v62 = vld [vmem:[%s5623_s1] sm:$0xff]  ;;  %599 = vmatpush1.msra.mxu0 %v40_v58 }
  0x20   :  { %v165_v61 = vld [vmem:[%s5623_s1 + $0x408] sm:$0xff]  ;;  %v164_v63 = vld [vmem:[%s5623_s1 + $0x400] sm:$0xff]  ;;  %676 = vmatpush1.msra.mxu1 %v168_v59  ;;  %600 = vmatprep.subr.mxu0 %v37_v60 }
  0x21   :  { %v161_v0 = vld [vmem:[%s5623_s1 + $0x3e8] sm:$0xff]  ;;  %677 = vmatprep.subr.mxu1 %v165_v61  ;;  %v160_v2 = vld [vmem:[%s5623_s1 + $0x3e0] sm:$0xff]  ;;  %601 = vmatpush1.msra.mxu0 %v36_v62 }
  0x22   :  { %v289_v1 = vld [vmem:[%s5623_s1 + $0x7e8] sm:$0xff]  ;;  %v288_v3 = vld [vmem:[%s5623_s1 + $0x7e0] sm:$0xff]  ;;  %678 = vmatpush1.msra.mxu1 %v164_v63  ;;  %602 = vmatprep.subr.mxu0 %v161_v0 }
  0x23   :  { %v157_v4 = vld [vmem:[%s5623_s1 + $0x3c8] sm:$0xff]  ;;  %679 = vmatprep.subr.mxu1 %v289_v1  ;;  %v156_v6 = vld [vmem:[%s5623_s1 + $0x3c0] sm:$0xff]  ;;  %603 = vmatpush2.msra.mxu0 %v160_v2  ;;  %v23_v2 = vld [vmem:[%s5624_s0 + $0x18] sm:$0xff] }
  0x24   :  { %v285_v5 = vld [vmem:[%s5623_s1 + $0x7c8] sm:$0xff]  ;;  %v284_v7 = vld [vmem:[%s5623_s1 + $0x7c0] sm:$0xff]  ;;  %680 = vmatpush2.msra.mxu1 %v288_v3  ;;  %604 = vmatprep.subr.mxu0 %v157_v4 }
  0x25   :  { %v153_v8 = vld [vmem:[%s5623_s1 + $0x3a8] sm:$0xff]  ;;  %681 = vmatprep.subr.mxu1 %v285_v5  ;;  %v152_v10 = vld [vmem:[%s5623_s1 + $0x3a0] sm:$0xff]  ;;  %605 = vmatpush2.msra.mxu0 %v156_v6  ;;  %v22_v5 = vld [vmem:[%s5624_s0 + $0x10] sm:$0xff] }
  0x26   :  { %v281_v9 = vld [vmem:[%s5623_s1 + $0x7a8] sm:$0xff]  ;;  %v280_v11 = vld [vmem:[%s5623_s1 + $0x7a0] sm:$0xff]  ;;  %682 = vmatpush2.msra.mxu1 %v284_v7  ;;  %606 = vmatprep.subr.mxu0 %v153_v8 }
  0x27   :  { %v149_v12 = vld [vmem:[%s5623_s1 + $0x388] sm:$0xff]  ;;  %683 = vmatprep.subr.mxu1 %v281_v9  ;;  %v148_v14 = vld [vmem:[%s5623_s1 + $0x380] sm:$0xff]  ;;  %607 = vmatpush2.msra.mxu0 %v152_v10 }
  0x28   :  { %v277_v13 = vld [vmem:[%s5623_s1 + $0x788] sm:$0xff]  ;;  %v276_v15 = vld [vmem:[%s5623_s1 + $0x780] sm:$0xff]  ;;  %684 = vmatpush2.msra.mxu1 %v280_v11  ;;  %608 = vmatprep.subr.mxu0 %v149_v12 }
  0x29   :  { %v145_v16 = vld [vmem:[%s5623_s1 + $0x368] sm:$0xff]  ;;  %685 = vmatprep.subr.mxu1 %v277_v13  ;;  %v144_v18 = vld [vmem:[%s5623_s1 + $0x360] sm:$0xff]  ;;  %609 = vmatpush2.msra.mxu0 %v148_v14 }
  0x2a   :  { %v273_v17 = vld [vmem:[%s5623_s1 + $0x768] sm:$0xff]  ;;  %v272_v19 = vld [vmem:[%s5623_s1 + $0x760] sm:$0xff]  ;;  %686 = vmatpush2.msra.mxu1 %v276_v15  ;;  %610 = vmatprep.subr.mxu0 %v145_v16 }
  0x2b   :  { %v141_v20 = vld [vmem:[%s5623_s1 + $0x348] sm:$0xff]  ;;  %687 = vmatprep.subr.mxu1 %v273_v17  ;;  %v140_v22 = vld [vmem:[%s5623_s1 + $0x340] sm:$0xff]  ;;  %611 = vmatpush2.msra.mxu0 %v144_v18 }
  0x2c   :  { %v269_v21 = vld [vmem:[%s5623_s1 + $0x748] sm:$0xff]  ;;  %v268_v23 = vld [vmem:[%s5623_s1 + $0x740] sm:$0xff]  ;;  %688 = vmatpush2.msra.mxu1 %v272_v19  ;;  %612 = vmatprep.subr.mxu0 %v141_v20 }
  0x2d   :  { %v137_v24 = vld [vmem:[%s5623_s1 + $0x328] sm:$0xff]  ;;  %689 = vmatprep.subr.mxu1 %v269_v21  ;;  %v136_v26 = vld [vmem:[%s5623_s1 + $0x320] sm:$0xff]  ;;  %613 = vmatpush2.msra.mxu0 %v140_v22 }
  0x2e   :  { %v265_v25 = vld [vmem:[%s5623_s1 + $0x728] sm:$0xff]  ;;  %v264_v27 = vld [vmem:[%s5623_s1 + $0x720] sm:$0xff]  ;;  %690 = vmatpush2.msra.mxu1 %v268_v23  ;;  %614 = vmatprep.subr.mxu0 %v137_v24 }
  0x2f   :  { %v133_v28 = vld [vmem:[%s5623_s1 + $0x308] sm:$0xff]  ;;  %691 = vmatprep.subr.mxu1 %v265_v25  ;;  %v132_v30 = vld [vmem:[%s5623_s1 + $0x300] sm:$0xff]  ;;  %615 = vmatpush2.msra.mxu0 %v136_v26 }
  0x30   :  { %v261_v29 = vld [vmem:[%s5623_s1 + $0x708] sm:$0xff]  ;;  %v260_v31 = vld [vmem:[%s5623_s1 + $0x700] sm:$0xff]  ;;  %692 = vmatpush2.msra.mxu1 %v264_v27  ;;  %616 = vmatprep.subr.mxu0 %v133_v28 }
  0x31   :  { %v129_v32 = vld [vmem:[%s5623_s1 + $0x2e8] sm:$0xff]  ;;  %693 = vmatprep.subr.mxu1 %v261_v29  ;;  %v128_v34 = vld [vmem:[%s5623_s1 + $0x2e0] sm:$0xff]  ;;  %617 = vmatpush2.msra.mxu0 %v132_v30 }
  0x32   :  { %v257_v33 = vld [vmem:[%s5623_s1 + $0x6e8] sm:$0xff]  ;;  %v256_v35 = vld [vmem:[%s5623_s1 + $0x6e0] sm:$0xff]  ;;  %694 = vmatpush2.msra.mxu1 %v260_v31  ;;  %618 = vmatprep.subr.mxu0 %v129_v32 }
  0x33   :  { %v125_v36 = vld [vmem:[%s5623_s1 + $0x2c8] sm:$0xff]  ;;  %695 = vmatprep.subr.mxu1 %v257_v33  ;;  %v124_v38 = vld [vmem:[%s5623_s1 + $0x2c0] sm:$0xff]  ;;  %619 = vmatpush2.msra.mxu0 %v128_v34 }
  0x34   :  { %v253_v37 = vld [vmem:[%s5623_s1 + $0x6c8] sm:$0xff]  ;;  %v252_v39 = vld [vmem:[%s5623_s1 + $0x6c0] sm:$0xff]  ;;  %696 = vmatpush2.msra.mxu1 %v256_v35  ;;  %620 = vmatprep.subr.mxu0 %v125_v36 }
  0x35   :  { %v121_v40 = vld [vmem:[%s5623_s1 + $0x2a8] sm:$0xff]  ;;  %697 = vmatprep.subr.mxu1 %v253_v37  ;;  %v120_v42 = vld [vmem:[%s5623_s1 + $0x2a0] sm:$0xff]  ;;  %621 = vmatpush2.msra.mxu0 %v124_v38 }
  0x36   :  { %v249_v41 = vld [vmem:[%s5623_s1 + $0x6a8] sm:$0xff]  ;;  %v248_v43 = vld [vmem:[%s5623_s1 + $0x6a0] sm:$0xff]  ;;  %698 = vmatpush2.msra.mxu1 %v252_v39  ;;  %622 = vmatprep.subr.mxu0 %v121_v40 }
  0x37   :  { %v117_v44 = vld [vmem:[%s5623_s1 + $0x288] sm:$0xff]  ;;  %699 = vmatprep.subr.mxu1 %v249_v41  ;;  %v116_v46 = vld [vmem:[%s5623_s1 + $0x280] sm:$0xff]  ;;  %623 = vmatpush2.msra.mxu0 %v120_v42 }
  0x38   :  { %v245_v45 = vld [vmem:[%s5623_s1 + $0x688] sm:$0xff]  ;;  %v244_v47 = vld [vmem:[%s5623_s1 + $0x680] sm:$0xff]  ;;  %700 = vmatpush2.msra.mxu1 %v248_v43  ;;  %624 = vmatprep.subr.mxu0 %v117_v44 }
  0x39   :  { %v113_v48 = vld [vmem:[%s5623_s1 + $0x268] sm:$0xff]  ;;  %701 = vmatprep.subr.mxu1 %v245_v45  ;;  %v112_v50 = vld [vmem:[%s5623_s1 + $0x260] sm:$0xff]  ;;  %625 = vmatpush2.msra.mxu0 %v116_v46 }
  0x3a   :  { %v241_v49 = vld [vmem:[%s5623_s1 + $0x668] sm:$0xff]  ;;  %v240_v51 = vld [vmem:[%s5623_s1 + $0x660] sm:$0xff]  ;;  %702 = vmatpush2.msra.mxu1 %v244_v47  ;;  %626 = vmatprep.subr.mxu0 %v113_v48 }
  0x3b   :  { %v109_v52 = vld [vmem:[%s5623_s1 + $0x248] sm:$0xff]  ;;  %703 = vmatprep.subr.mxu1 %v241_v49  ;;  %v108_v54 = vld [vmem:[%s5623_s1 + $0x240] sm:$0xff]  ;;  %627 = vmatpush2.msra.mxu0 %v112_v50 }
  0x3c   :  { %v237_v53 = vld [vmem:[%s5623_s1 + $0x648] sm:$0xff]  ;;  %v236_v55 = vld [vmem:[%s5623_s1 + $0x640] sm:$0xff]  ;;  %704 = vmatpush2.msra.mxu1 %v240_v51  ;;  %628 = vmatprep.subr.mxu0 %v109_v52 }
  0x3d   :  { %v105_v56 = vld [vmem:[%s5623_s1 + $0x228] sm:$0xff]  ;;  %705 = vmatprep.subr.mxu1 %v237_v53  ;;  %v104_v58 = vld [vmem:[%s5623_s1 + $0x220] sm:$0xff]  ;;  %629 = vmatpush2.msra.mxu0 %v108_v54 }
  0x3e   :  { %v233_v57 = vld [vmem:[%s5623_s1 + $0x628] sm:$0xff]  ;;  %v232_v59 = vld [vmem:[%s5623_s1 + $0x620] sm:$0xff]  ;;  %706 = vmatpush2.msra.mxu1 %v236_v55  ;;  %630 = vmatprep.subr.mxu0 %v105_v56 }
  0x3f   :  { %v101_v60 = vld [vmem:[%s5623_s1 + $0x208] sm:$0xff]  ;;  %707 = vmatprep.subr.mxu1 %v233_v57  ;;  %v100_v62 = vld [vmem:[%s5623_s1 + $0x200] sm:$0xff]  ;;  %631 = vmatpush2.msra.mxu0 %v104_v58 }
  0x40   :  { %v229_v61 = vld [vmem:[%s5623_s1 + $0x608] sm:$0xff]  ;;  %708 = vmatpush2.msra.mxu1 %v232_v59  ;;  %v228_v0 = vld [vmem:[%s5623_s1 + $0x600] sm:$0xff]  ;;  %632 = vmatprep.subr.mxu0 %v101_v60 }
  0x41   :  { %v21_v63 = vld [vmem:[%s5624_s0 + $0x8] sm:$0xff]  ;;  %v20_v1 = vld [vmem:[%s5624_s0] sm:$0xff]  ;;  %709 = vmatprep.subr.mxu1 %v229_v61  ;;  %633 = vmatpush2.msra.mxu0 %v100_v62 }
  0x42   :  { %v353_v3 = vld [vmem:[%s5623_s1 + $0x9e8] sm:$0xff]  ;;  %634 = vmatprep.mubr.f32.mxu0 %v21_v63  ;;  %710 = vmatpush2.msra.mxu1 %v228_v0  ;;  %v352_v6 = vld [vmem:[%s5623_s1 + $0x9e0] sm:$0xff] }
  0x43   :  { %v481_v4 = vld [vmem:[%s5623_s1 + $0xde8] sm:$0xff]  ;;  %635 = vmatmul.mubr.f32.vlgmr.msra.gmra.mxu0 %v20_v1  ;;  %v480_v7 = vld [vmem:[%s5623_s1 + $0xde0] sm:$0xff]  ;;  %711 = vmatprep.mubr.f32.mxu1 %v23_v2 }
  0x44   :  { %724 = vmatprep.subr.mxu0 %v353_v3  ;;  %v349_v8 = vld [vmem:[%s5623_s1 + $0x9c8] sm:$0xff]  ;;  %801 = vmatprep.subr.mxu1 %v481_v4  ;;  %v348_v10 = vld [vmem:[%s5623_s1 + $0x9c0] sm:$0xff] }
  0x45   :  { %v477_v9 = vld [vmem:[%s5623_s1 + $0xdc8] sm:$0xff]  ;;  %712 = vmatmul.mubr.f32.vlgmr.msra.gmra.mxu1 %v22_v5  ;;  %v476_v11 = vld [vmem:[%s5623_s1 + $0xdc0] sm:$0xff]  ;;  %725 = vmatpush1.msra.mxu0 %v352_v6 }
  0x46   :  { %802 = vmatpush1.msra.mxu1 %v480_v7  ;;  %v345_v12 = vld [vmem:[%s5623_s1 + $0x9a8] sm:$0xff]  ;;  %726 = vmatprep.subr.mxu0 %v349_v8  ;;  %v344_v14 = vld [vmem:[%s5623_s1 + $0x9a0] sm:$0xff] }
  0x47   :  { %v473_v13 = vld [vmem:[%s5623_s1 + $0xda8] sm:$0xff]  ;;  %803 = vmatprep.subr.mxu1 %v477_v9  ;;  %v472_v15 = vld [vmem:[%s5623_s1 + $0xda0] sm:$0xff]  ;;  %727 = vmatpush1.msra.mxu0 %v348_v10 }
  0x48   :  { %804 = vmatpush1.msra.mxu1 %v476_v11  ;;  %v341_v16 = vld [vmem:[%s5623_s1 + $0x988] sm:$0xff]  ;;  %728 = vmatprep.subr.mxu0 %v345_v12  ;;  %v340_v18 = vld [vmem:[%s5623_s1 + $0x980] sm:$0xff] }
  0x49   :  { %v469_v17 = vld [vmem:[%s5623_s1 + $0xd88] sm:$0xff]  ;;  %805 = vmatprep.subr.mxu1 %v473_v13  ;;  %v468_v19 = vld [vmem:[%s5623_s1 + $0xd80] sm:$0xff]  ;;  %729 = vmatpush1.msra.mxu0 %v344_v14 }
  0x4a   :  { %806 = vmatpush1.msra.mxu1 %v472_v15  ;;  %v337_v20 = vld [vmem:[%s5623_s1 + $0x968] sm:$0xff]  ;;  %730 = vmatprep.subr.mxu0 %v341_v16  ;;  %v336_v22 = vld [vmem:[%s5623_s1 + $0x960] sm:$0xff] }
  0x4b   :  { %v465_v21 = vld [vmem:[%s5623_s1 + $0xd68] sm:$0xff]  ;;  %807 = vmatprep.subr.mxu1 %v469_v17  ;;  %v464_v23 = vld [vmem:[%s5623_s1 + $0xd60] sm:$0xff]  ;;  %731 = vmatpush1.msra.mxu0 %v340_v18 }
  0x4c   :  { %808 = vmatpush1.msra.mxu1 %v468_v19  ;;  %v333_v24 = vld [vmem:[%s5623_s1 + $0x948] sm:$0xff]  ;;  %732 = vmatprep.subr.mxu0 %v337_v20  ;;  %v332_v26 = vld [vmem:[%s5623_s1 + $0x940] sm:$0xff] }
  0x4d   :  { %v461_v25 = vld [vmem:[%s5623_s1 + $0xd48] sm:$0xff]  ;;  %809 = vmatprep.subr.mxu1 %v465_v21  ;;  %v460_v27 = vld [vmem:[%s5623_s1 + $0xd40] sm:$0xff]  ;;  %733 = vmatpush1.msra.mxu0 %v336_v22 }
  0x4e   :  { %810 = vmatpush1.msra.mxu1 %v464_v23  ;;  %v329_v28 = vld [vmem:[%s5623_s1 + $0x928] sm:$0xff]  ;;  %734 = vmatprep.subr.mxu0 %v333_v24  ;;  %v328_v30 = vld [vmem:[%s5623_s1 + $0x920] sm:$0xff] }
  0x4f   :  { %v457_v29 = vld [vmem:[%s5623_s1 + $0xd28] sm:$0xff]  ;;  %811 = vmatprep.subr.mxu1 %v461_v25  ;;  %v456_v31 = vld [vmem:[%s5623_s1 + $0xd20] sm:$0xff]  ;;  %735 = vmatpush1.msra.mxu0 %v332_v26 }
  0x50   :  { %812 = vmatpush1.msra.mxu1 %v460_v27  ;;  %v325_v32 = vld [vmem:[%s5623_s1 + $0x908] sm:$0xff]  ;;  %736 = vmatprep.subr.mxu0 %v329_v28  ;;  %v324_v34 = vld [vmem:[%s5623_s1 + $0x900] sm:$0xff] }
  0x51   :  { %v453_v33 = vld [vmem:[%s5623_s1 + $0xd08] sm:$0xff]  ;;  %813 = vmatprep.subr.mxu1 %v457_v29  ;;  %v452_v35 = vld [vmem:[%s5623_s1 + $0xd00] sm:$0xff]  ;;  %737 = vmatpush1.msra.mxu0 %v328_v30 }
  0x52   :  { %814 = vmatpush1.msra.mxu1 %v456_v31  ;;  %v321_v36 = vld [vmem:[%s5623_s1 + $0x8e8] sm:$0xff]  ;;  %738 = vmatprep.subr.mxu0 %v325_v32  ;;  %v320_v38 = vld [vmem:[%s5623_s1 + $0x8e0] sm:$0xff] }
  0x53   :  { %v449_v37 = vld [vmem:[%s5623_s1 + $0xce8] sm:$0xff]  ;;  %815 = vmatprep.subr.mxu1 %v453_v33  ;;  %v448_v39 = vld [vmem:[%s5623_s1 + $0xce0] sm:$0xff]  ;;  %739 = vmatpush1.msra.mxu0 %v324_v34 }
  0x54   :  { %816 = vmatpush1.msra.mxu1 %v452_v35  ;;  %v317_v40 = vld [vmem:[%s5623_s1 + $0x8c8] sm:$0xff]  ;;  %740 = vmatprep.subr.mxu0 %v321_v36  ;;  %v316_v42 = vld [vmem:[%s5623_s1 + $0x8c0] sm:$0xff] }
  0x55   :  { %v445_v41 = vld [vmem:[%s5623_s1 + $0xcc8] sm:$0xff]  ;;  %817 = vmatprep.subr.mxu1 %v449_v37  ;;  %v444_v43 = vld [vmem:[%s5623_s1 + $0xcc0] sm:$0xff]  ;;  %741 = vmatpush1.msra.mxu0 %v320_v38 }
  0x56   :  { %818 = vmatpush1.msra.mxu1 %v448_v39  ;;  %v313_v44 = vld [vmem:[%s5623_s1 + $0x8a8] sm:$0xff]  ;;  %742 = vmatprep.subr.mxu0 %v317_v40  ;;  %v312_v46 = vld [vmem:[%s5623_s1 + $0x8a0] sm:$0xff] }
  0x57   :  { %v441_v45 = vld [vmem:[%s5623_s1 + $0xca8] sm:$0xff]  ;;  %819 = vmatprep.subr.mxu1 %v445_v41  ;;  %v440_v47 = vld [vmem:[%s5623_s1 + $0xca0] sm:$0xff]  ;;  %743 = vmatpush1.msra.mxu0 %v316_v42 }
  0x58   :  { %820 = vmatpush1.msra.mxu1 %v444_v43  ;;  %v309_v48 = vld [vmem:[%s5623_s1 + $0x888] sm:$0xff]  ;;  %744 = vmatprep.subr.mxu0 %v313_v44  ;;  %v308_v50 = vld [vmem:[%s5623_s1 + $0x880] sm:$0xff] }
  0x59   :  { %v437_v49 = vld [vmem:[%s5623_s1 + $0xc88] sm:$0xff]  ;;  %821 = vmatprep.subr.mxu1 %v441_v45  ;;  %v436_v51 = vld [vmem:[%s5623_s1 + $0xc80] sm:$0xff]  ;;  %745 = vmatpush1.msra.mxu0 %v312_v46 }
  0x5a   :  { %822 = vmatpush1.msra.mxu1 %v440_v47  ;;  %v305_v52 = vld [vmem:[%s5623_s1 + $0x868] sm:$0xff]  ;;  %746 = vmatprep.subr.mxu0 %v309_v48  ;;  %v304_v54 = vld [vmem:[%s5623_s1 + $0x860] sm:$0xff] }
  0x5b   :  { %v433_v53 = vld [vmem:[%s5623_s1 + $0xc68] sm:$0xff]  ;;  %823 = vmatprep.subr.mxu1 %v437_v49  ;;  %v432_v55 = vld [vmem:[%s5623_s1 + $0xc60] sm:$0xff]  ;;  %747 = vmatpush1.msra.mxu0 %v308_v50 }
  0x5c   :  { %824 = vmatpush1.msra.mxu1 %v436_v51  ;;  %v301_v56 = vld [vmem:[%s5623_s1 + $0x848] sm:$0xff]  ;;  %748 = vmatprep.subr.mxu0 %v305_v52  ;;  %v300_v58 = vld [vmem:[%s5623_s1 + $0x840] sm:$0xff] }
  0x5d   :  { %v429_v57 = vld [vmem:[%s5623_s1 + $0xc48] sm:$0xff]  ;;  %825 = vmatprep.subr.mxu1 %v433_v53  ;;  %v428_v59 = vld [vmem:[%s5623_s1 + $0xc40] sm:$0xff]  ;;  %749 = vmatpush1.msra.mxu0 %v304_v54 }
  0x5e   :  { %826 = vmatpush1.msra.mxu1 %v432_v55  ;;  %v297_v60 = vld [vmem:[%s5623_s1 + $0x828] sm:$0xff]  ;;  %750 = vmatprep.subr.mxu0 %v301_v56  ;;  %v296_v62 = vld [vmem:[%s5623_s1 + $0x820] sm:$0xff] }
  0x5f   :  { %v425_v61 = vld [vmem:[%s5623_s1 + $0xc28] sm:$0xff]  ;;  %827 = vmatprep.subr.mxu1 %v429_v57  ;;  %v424_v63 = vld [vmem:[%s5623_s1 + $0xc20] sm:$0xff]  ;;  %751 = vmatpush1.msra.mxu0 %v300_v58 }
  0x60   :  { %828 = vmatpush1.msra.mxu1 %v428_v59  ;;  %v293_v0 = vld [vmem:[%s5623_s1 + $0x808] sm:$0xff]  ;;  %752 = vmatprep.subr.mxu0 %v297_v60  ;;  %v292_v2 = vld [vmem:[%s5623_s1 + $0x800] sm:$0xff] }
  0x61   :  { %v421_v1 = vld [vmem:[%s5623_s1 + $0xc08] sm:$0xff]  ;;  %829 = vmatprep.subr.mxu1 %v425_v61  ;;  %v420_v3 = vld [vmem:[%s5623_s1 + $0xc00] sm:$0xff]  ;;  %753 = vmatpush1.msra.mxu0 %v296_v62  ;;  %v31_v62 = vld [vmem:[%s5624_s0 + $0x58] sm:$0xff] }
  0x62   :  { %830 = vmatpush1.msra.mxu1 %v424_v63  ;;  %v417_v4 = vld [vmem:[%s5623_s1 + $0xbe8] sm:$0xff]  ;;  %754 = vmatprep.subr.mxu0 %v293_v0  ;;  %v416_v6 = vld [vmem:[%s5623_s1 + $0xbe0] sm:$0xff] }
  0x63   :  { %v545_v5 = vld [vmem:[%s5623_s1 + $0xfe8] sm:$0xff]  ;;  %831 = vmatprep.subr.mxu1 %v421_v1  ;;  %v544_v7 = vld [vmem:[%s5623_s1 + $0xfe0] sm:$0xff]  ;;  %755 = vmatpush1.msra.mxu0 %v292_v2  ;;  %v30_v1 = vld [vmem:[%s5624_s0 + $0x50] sm:$0xff] }
  0x64   :  { %832 = vmatpush1.msra.mxu1 %v420_v3  ;;  %v413_v8 = vld [vmem:[%s5623_s1 + $0xbc8] sm:$0xff]  ;;  %756 = vmatprep.subr.mxu0 %v417_v4  ;;  %v412_v10 = vld [vmem:[%s5623_s1 + $0xbc0] sm:$0xff] }
  0x65   :  { %v541_v9 = vld [vmem:[%s5623_s1 + $0xfc8] sm:$0xff]  ;;  %833 = vmatprep.subr.mxu1 %v545_v5  ;;  %v540_v11 = vld [vmem:[%s5623_s1 + $0xfc0] sm:$0xff]  ;;  %757 = vmatpush2.msra.mxu0 %v416_v6 }
  0x66   :  { %834 = vmatpush2.msra.mxu1 %v544_v7  ;;  %v409_v12 = vld [vmem:[%s5623_s1 + $0xba8] sm:$0xff]  ;;  %758 = vmatprep.subr.mxu0 %v413_v8  ;;  %v408_v14 = vld [vmem:[%s5623_s1 + $0xba0] sm:$0xff] }
  0x67   :  { %v537_v13 = vld [vmem:[%s5623_s1 + $0xfa8] sm:$0xff]  ;;  %835 = vmatprep.subr.mxu1 %v541_v9  ;;  %v536_v15 = vld [vmem:[%s5623_s1 + $0xfa0] sm:$0xff]  ;;  %759 = vmatpush2.msra.mxu0 %v412_v10  ;;  %v27_v10 = vld [vmem:[%s5624_s0 + $0x38] sm:$0xff] }
  0x68   :  { %836 = vmatpush2.msra.mxu1 %v540_v11  ;;  %v405_v16 = vld [vmem:[%s5623_s1 + $0xb88] sm:$0xff]  ;;  %760 = vmatprep.subr.mxu0 %v409_v12  ;;  %v404_v18 = vld [vmem:[%s5623_s1 + $0xb80] sm:$0xff]  ;;  %v99_v11 = vld [vmem:[%s5623_s1 + $0x1f8] sm:$0xff] }
  0x69   :  { %v533_v17 = vld [vmem:[%s5623_s1 + $0xf88] sm:$0xff]  ;;  %837 = vmatprep.subr.mxu1 %v537_v13  ;;  %v532_v19 = vld [vmem:[%s5623_s1 + $0xf80] sm:$0xff]  ;;  %761 = vmatpush2.msra.mxu0 %v408_v14  ;;  %v227_v12 = vld [vmem:[%s5623_s1 + $0x5f8] sm:$0xff] }
  0x6a   :  { %838 = vmatpush2.msra.mxu1 %v536_v15  ;;  %v401_v20 = vld [vmem:[%s5623_s1 + $0xb68] sm:$0xff]  ;;  %762 = vmatprep.subr.mxu0 %v405_v16  ;;  %v400_v22 = vld [vmem:[%s5623_s1 + $0xb60] sm:$0xff]  ;;  %v26_v13 = vld [vmem:[%s5624_s0 + $0x30] sm:$0xff] }
  0x6b   :  { %v529_v21 = vld [vmem:[%s5623_s1 + $0xf68] sm:$0xff]  ;;  %839 = vmatprep.subr.mxu1 %v533_v17  ;;  %v528_v23 = vld [vmem:[%s5623_s1 + $0xf60] sm:$0xff]  ;;  %763 = vmatpush2.msra.mxu0 %v404_v18  ;;  %v98_v14 = vld [vmem:[%s5623_s1 + $0x1f0] sm:$0xff] }
  0x6c   :  { %840 = vmatpush2.msra.mxu1 %v532_v19  ;;  %v397_v24 = vld [vmem:[%s5623_s1 + $0xb48] sm:$0xff]  ;;  %764 = vmatprep.subr.mxu0 %v401_v20  ;;  %v396_v26 = vld [vmem:[%s5623_s1 + $0xb40] sm:$0xff]  ;;  %v226_v15 = vld [vmem:[%s5623_s1 + $0x5f0] sm:$0xff] }
  0x6d   :  { %v525_v25 = vld [vmem:[%s5623_s1 + $0xf48] sm:$0xff]  ;;  %841 = vmatprep.subr.mxu1 %v529_v21  ;;  %v524_v27 = vld [vmem:[%s5623_s1 + $0xf40] sm:$0xff]  ;;  %765 = vmatpush2.msra.mxu0 %v400_v22  ;;  %v95_v16 = vld [vmem:[%s5623_s1 + $0x1d8] sm:$0xff] }
  0x6e   :  { %842 = vmatpush2.msra.mxu1 %v528_v23  ;;  %v393_v28 = vld [vmem:[%s5623_s1 + $0xb28] sm:$0xff]  ;;  %766 = vmatprep.subr.mxu0 %v397_v24  ;;  %v392_v30 = vld [vmem:[%s5623_s1 + $0xb20] sm:$0xff]  ;;  %v223_v17 = vld [vmem:[%s5623_s1 + $0x5d8] sm:$0xff] }
  0x6f   :  { %v521_v29 = vld [vmem:[%s5623_s1 + $0xf28] sm:$0xff]  ;;  %843 = vmatprep.subr.mxu1 %v525_v25  ;;  %v520_v31 = vld [vmem:[%s5623_s1 + $0xf20] sm:$0xff]  ;;  %767 = vmatpush2.msra.mxu0 %v396_v26  ;;  %v94_v19 = vld [vmem:[%s5623_s1 + $0x1d0] sm:$0xff] }
  0x70   :  { %844 = vmatpush2.msra.mxu1 %v524_v27  ;;  %v389_v32 = vld [vmem:[%s5623_s1 + $0xb08] sm:$0xff]  ;;  %768 = vmatprep.subr.mxu0 %v393_v28  ;;  %v388_v34 = vld [vmem:[%s5623_s1 + $0xb00] sm:$0xff]  ;;  %v222_v20 = vld [vmem:[%s5623_s1 + $0x5d0] sm:$0xff] }
  0x71   :  { %v517_v33 = vld [vmem:[%s5623_s1 + $0xf08] sm:$0xff]  ;;  %845 = vmatprep.subr.mxu1 %v521_v29  ;;  %v516_v35 = vld [vmem:[%s5623_s1 + $0xf00] sm:$0xff]  ;;  %769 = vmatpush2.msra.mxu0 %v392_v30  ;;  %v91_v22 = vld [vmem:[%s5623_s1 + $0x1b8] sm:$0xff] }
  0x72   :  { %846 = vmatpush2.msra.mxu1 %v520_v31  ;;  %v385_v36 = vld [vmem:[%s5623_s1 + $0xae8] sm:$0xff]  ;;  %770 = vmatprep.subr.mxu0 %v389_v32  ;;  %v384_v38 = vld [vmem:[%s5623_s1 + $0xae0] sm:$0xff]  ;;  %v219_v23 = vld [vmem:[%s5623_s1 + $0x5b8] sm:$0xff] }
  0x73   :  { %v513_v37 = vld [vmem:[%s5623_s1 + $0xee8] sm:$0xff]  ;;  %847 = vmatprep.subr.mxu1 %v517_v33  ;;  %v512_v39 = vld [vmem:[%s5623_s1 + $0xee0] sm:$0xff]  ;;  %771 = vmatpush2.msra.mxu0 %v388_v34  ;;  %v35_v24 = vld [vmem:[%s5624_s0 + $0x78] sm:$0xff] }
  0x74   :  { %848 = vmatpush2.msra.mxu1 %v516_v35  ;;  %v381_v40 = vld [vmem:[%s5623_s1 + $0xac8] sm:$0xff]  ;;  %772 = vmatprep.subr.mxu0 %v385_v36  ;;  %v380_v42 = vld [vmem:[%s5623_s1 + $0xac0] sm:$0xff]  ;;  %v90_v25 = vld [vmem:[%s5623_s1 + $0x1b0] sm:$0xff] }
  0x75   :  { %v509_v41 = vld [vmem:[%s5623_s1 + $0xec8] sm:$0xff]  ;;  %849 = vmatprep.subr.mxu1 %v513_v37  ;;  %v508_v43 = vld [vmem:[%s5623_s1 + $0xec0] sm:$0xff]  ;;  %773 = vmatpush2.msra.mxu0 %v384_v38  ;;  %v218_v26 = vld [vmem:[%s5623_s1 + $0x5b0] sm:$0xff] }
  0x76   :  { %850 = vmatpush2.msra.mxu1 %v512_v39  ;;  %v377_v44 = vld [vmem:[%s5623_s1 + $0xaa8] sm:$0xff]  ;;  %774 = vmatprep.subr.mxu0 %v381_v40  ;;  %v376_v46 = vld [vmem:[%s5623_s1 + $0xaa0] sm:$0xff]  ;;  %v87_v27 = vld [vmem:[%s5623_s1 + $0x198] sm:$0xff] }
  0x77   :  { %v505_v45 = vld [vmem:[%s5623_s1 + $0xea8] sm:$0xff]  ;;  %851 = vmatprep.subr.mxu1 %v509_v41  ;;  %v504_v47 = vld [vmem:[%s5623_s1 + $0xea0] sm:$0xff]  ;;  %775 = vmatpush2.msra.mxu0 %v380_v42  ;;  %v34_v28 = vld [vmem:[%s5624_s0 + $0x70] sm:$0xff] }
  0x78   :  { %852 = vmatpush2.msra.mxu1 %v508_v43  ;;  %v373_v48 = vld [vmem:[%s5623_s1 + $0xa88] sm:$0xff]  ;;  %776 = vmatprep.subr.mxu0 %v377_v44  ;;  %v372_v50 = vld [vmem:[%s5623_s1 + $0xa80] sm:$0xff]  ;;  %v215_v29 = vld [vmem:[%s5623_s1 + $0x598] sm:$0xff] }
  0x79   :  { %v501_v49 = vld [vmem:[%s5623_s1 + $0xe88] sm:$0xff]  ;;  %853 = vmatprep.subr.mxu1 %v505_v45  ;;  %v500_v51 = vld [vmem:[%s5623_s1 + $0xe80] sm:$0xff]  ;;  %777 = vmatpush2.msra.mxu0 %v376_v46  ;;  %v86_v30 = vld [vmem:[%s5623_s1 + $0x190] sm:$0xff] }
  0x7a   :  { %854 = vmatpush2.msra.mxu1 %v504_v47  ;;  %v369_v52 = vld [vmem:[%s5623_s1 + $0xa68] sm:$0xff]  ;;  %778 = vmatprep.subr.mxu0 %v373_v48  ;;  %v368_v54 = vld [vmem:[%s5623_s1 + $0xa60] sm:$0xff]  ;;  %v214_v31 = vld [vmem:[%s5623_s1 + $0x590] sm:$0xff] }
  0x7b   :  { %v497_v53 = vld [vmem:[%s5623_s1 + $0xe68] sm:$0xff]  ;;  %855 = vmatprep.subr.mxu1 %v501_v49  ;;  %v496_v55 = vld [vmem:[%s5623_s1 + $0xe60] sm:$0xff]  ;;  %779 = vmatpush2.msra.mxu0 %v372_v50  ;;  %v83_v32 = vld [vmem:[%s5623_s1 + $0x178] sm:$0xff] }
  0x7c   :  { %856 = vmatpush2.msra.mxu1 %v500_v51  ;;  %v29_v56 = vld [vmem:[%s5624_s0 + $0x48] sm:$0xff]  ;;  %780 = vmatprep.subr.mxu0 %v369_v52  ;;  %v28_v59 = vld [vmem:[%s5624_s0 + $0x40] sm:$0xff]  ;;  %v211_v33 = vld [vmem:[%s5623_s1 + $0x578] sm:$0xff] }
  0x7d   :  { %v365_v57 = vld [vmem:[%s5623_s1 + $0xa48] sm:$0xff]  ;;  %857 = vmatprep.subr.mxu1 %v497_v53  ;;  %781 = vmatpush2.msra.mxu0 %v368_v54  ;;  %v364_v60 = vld [vmem:[%s5623_s1 + $0xa40] sm:$0xff]  ;;  %v82_v34 = vld [vmem:[%s5623_s1 + $0x170] sm:$0xff] }
  0x7e   :  { %v493_v58 = vld [vmem:[%s5623_s1 + $0xe48] sm:$0xff]  ;;  %858 = vmatpush2.msra.mxu1 %v496_v55  ;;  %v492_v61 = vld [vmem:[%s5623_s1 + $0xe40] sm:$0xff]  ;;  %640 = vmatprep.mubr.f32.mxu0 %v29_v56  ;;  %v210_v35 = vld [vmem:[%s5623_s1 + $0x570] sm:$0xff] }
  0x7f   :  { %782 = vmatprep.subr.mxu0 %v365_v57  ;;  %v361_v63 = vld [vmem:[%s5623_s1 + $0xa28] sm:$0xff]  ;;  %859 = vmatprep.subr.mxu1 %v493_v58  ;;  %v360_v2 = vld [vmem:[%s5623_s1 + $0xa20] sm:$0xff]  ;;  %v79_v36 = vld [vmem:[%s5623_s1 + $0x158] sm:$0xff] }
  0x80   :  { %641 = vmatmul.mubr.f32.gmra.mxu0 %v28_v59  ;;  %v489_v0 = vld [vmem:[%s5623_s1 + $0xe28] sm:$0xff]  ;;  %860 = vmatpush2.msra.mxu1 %v492_v61  ;;  %v488_v3 = vld [vmem:[%s5623_s1 + $0xe20] sm:$0xff]  ;;  %v207_v37 = vld [vmem:[%s5623_s1 + $0x558] sm:$0xff] }
  0x81   :  { %783 = vmatpush2.msra.mxu0 %v364_v60  ;;  %717 = vmatprep.mubr.f32.mxu1 %v31_v62  ;;  %v357_v4 = vld [vmem:[%s5623_s1 + $0xa08] sm:$0xff]  ;;  %v356_v6 = vld [vmem:[%s5623_s1 + $0xa00] sm:$0xff]  ;;  %v78_v38 = vld [vmem:[%s5623_s1 + $0x150] sm:$0xff] }
  0x82   :  { %784 = vmatprep.subr.mxu0 %v361_v63  ;;  %v485_v5 = vld [vmem:[%s5623_s1 + $0xe08] sm:$0xff]  ;;  %861 = vmatprep.subr.mxu1 %v489_v0  ;;  %v484_v8 = vld [vmem:[%s5623_s1 + $0xe00] sm:$0xff]  ;;  %v206_v39 = vld [vmem:[%s5623_s1 + $0x550] sm:$0xff] }
  0x83   :  { %718 = vmatmul.mubr.f32.gmra.mxu1 %v30_v1  ;;  %v25_v7 = vld [vmem:[%s5624_s0 + $0x28] sm:$0xff]  ;;  %785 = vmatpush2.msra.mxu0 %v360_v2  ;;  %v24_v9 = vld [vmem:[%s5624_s0 + $0x20] sm:$0xff]  ;;  %v75_v40 = vld [vmem:[%s5623_s1 + $0x138] sm:$0xff] }
  0x84   :  { %862 = vmatpush2.msra.mxu1 %v488_v3  ;;  %786 = vmatprep.subr.mxu0 %v357_v4  ;;  %v33_v18 = vld [vmem:[%s5624_s0 + $0x68] sm:$0xff]  ;;  %v32_v21 = vld [vmem:[%s5624_s0 + $0x60] sm:$0xff]  ;;  %v203_v41 = vld [vmem:[%s5623_s1 + $0x538] sm:$0xff] }
  0x85   :  { %863 = vmatprep.subr.mxu1 %v485_v5  ;;  %787 = vmatpush2.msra.mxu0 %v356_v6  ;;  %v74_v42 = vld [vmem:[%s5623_s1 + $0x130] sm:$0xff]  ;;  %v71_v44 = vld [vmem:[%s5623_s1 + $0x118] sm:$0xff] }
  0x86   :  { %788 = vmatprep.mubr.f32.mxu0 %v25_v7  ;;  %864 = vmatpush2.msra.mxu1 %v484_v8  ;;  %v202_v43 = vld [vmem:[%s5623_s1 + $0x530] sm:$0xff]  ;;  %v199_v45 = vld [vmem:[%s5623_s1 + $0x518] sm:$0xff] }
  0x87   :  { %789 = vmatmul.mubr.f32.vlgmr.msra.gmra.mxu0 %v24_v9  ;;  %865 = vmatprep.mubr.f32.mxu1 %v27_v10  ;;  %v70_v46 = vld [vmem:[%s5623_s1 + $0x110] sm:$0xff]  ;;  %v67_v48 = vld [vmem:[%s5623_s1 + $0xf8] sm:$0xff] }
  0x88   :  { %878 = vmatprep.subr.mxu0 %v99_v11  ;;  %955 = vmatprep.subr.mxu1 %v227_v12  ;;  %v198_v47 = vld [vmem:[%s5623_s1 + $0x510] sm:$0xff]  ;;  %v195_v49 = vld [vmem:[%s5623_s1 + $0x4f8] sm:$0xff] }
  0x89   :  { %866 = vmatmul.mubr.f32.vlgmr.msra.gmra.mxu1 %v26_v13  ;;  %879 = vmatpush1.msra.mxu0 %v98_v14  ;;  %v66_v50 = vld [vmem:[%s5623_s1 + $0xf0] sm:$0xff]  ;;  %v63_v52 = vld [vmem:[%s5623_s1 + $0xd8] sm:$0xff] }
  0x8a   :  { %956 = vmatpush1.msra.mxu1 %v226_v15  ;;  %880 = vmatprep.subr.mxu0 %v95_v16  ;;  %v194_v51 = vld [vmem:[%s5623_s1 + $0x4f0] sm:$0xff]  ;;  %v191_v53 = vld [vmem:[%s5623_s1 + $0x4d8] sm:$0xff] }
  0x8b   :  { %957 = vmatprep.subr.mxu1 %v223_v17  ;;  %794 = vmatprep.mubr.f32.mxu0 %v33_v18  ;;  %v62_v54 = vld [vmem:[%s5623_s1 + $0xd0] sm:$0xff]  ;;  %v59_v56 = vld [vmem:[%s5623_s1 + $0xb8] sm:$0xff] }
  0x8c   :  { %881 = vmatpush1.msra.mxu0 %v94_v19  ;;  %958 = vmatpush1.msra.mxu1 %v222_v20  ;;  %v190_v55 = vld [vmem:[%s5623_s1 + $0x4d0] sm:$0xff]  ;;  %v187_v57 = vld [vmem:[%s5623_s1 + $0x4b8] sm:$0xff] }
  0x8d   :  { %795 = vmatmul.mubr.f32.gmra.mxu0 %v32_v21  ;;  %882 = vmatprep.subr.mxu0 %v91_v22  ;;  %v58_v58 = vld [vmem:[%s5623_s1 + $0xb0] sm:$0xff]  ;;  %v55_v60 = vld [vmem:[%s5623_s1 + $0x98] sm:$0xff] }
  0x8e   :  { %959 = vmatprep.subr.mxu1 %v219_v23  ;;  %871 = vmatprep.mubr.f32.mxu1 %v35_v24  ;;  %v186_v59 = vld [vmem:[%s5623_s1 + $0x4b0] sm:$0xff]  ;;  %v183_v61 = vld [vmem:[%s5623_s1 + $0x498] sm:$0xff] }
  0x8f   :  { %883 = vmatpush1.msra.mxu0 %v90_v25  ;;  %960 = vmatpush1.msra.mxu1 %v218_v26  ;;  %v54_v62 = vld [vmem:[%s5623_s1 + $0x90] sm:$0xff]  ;;  %v51_v0 = vld [vmem:[%s5623_s1 + $0x78] sm:$0xff] }
  0x90   :  { %884 = vmatprep.subr.mxu0 %v87_v27  ;;  %872 = vmatmul.mubr.f32.gmra.mxu1 %v34_v28  ;;  %v182_v63 = vld [vmem:[%s5623_s1 + $0x490] sm:$0xff]  ;;  %v179_v1 = vld [vmem:[%s5623_s1 + $0x478] sm:$0xff] }
  0x91   :  { %961 = vmatprep.subr.mxu1 %v215_v29  ;;  %885 = vmatpush1.msra.mxu0 %v86_v30  ;;  %v50_v2 = vld [vmem:[%s5623_s1 + $0x70] sm:$0xff]  ;;  %v47_v4 = vld [vmem:[%s5623_s1 + $0x58] sm:$0xff] }
  0x92   :  { %962 = vmatpush1.msra.mxu1 %v214_v31  ;;  %886 = vmatprep.subr.mxu0 %v83_v32  ;;  %v178_v3 = vld [vmem:[%s5623_s1 + $0x470] sm:$0xff]  ;;  %v175_v5 = vld [vmem:[%s5623_s1 + $0x458] sm:$0xff] }
  0x93   :  { %963 = vmatprep.subr.mxu1 %v211_v33  ;;  %887 = vmatpush1.msra.mxu0 %v82_v34  ;;  %v46_v6 = vld [vmem:[%s5623_s1 + $0x50] sm:$0xff]  ;;  %v43_v8 = vld [vmem:[%s5623_s1 + $0x38] sm:$0xff] }
  0x94   :  { %964 = vmatpush1.msra.mxu1 %v210_v35  ;;  %888 = vmatprep.subr.mxu0 %v79_v36  ;;  %v174_v7 = vld [vmem:[%s5623_s1 + $0x450] sm:$0xff]  ;;  %v171_v9 = vld [vmem:[%s5623_s1 + $0x438] sm:$0xff] }
  0x95   :  { %965 = vmatprep.subr.mxu1 %v207_v37  ;;  %889 = vmatpush1.msra.mxu0 %v78_v38  ;;  %v42_v10 = vld [vmem:[%s5623_s1 + $0x30] sm:$0xff]  ;;  %v39_v12 = vld [vmem:[%s5623_s1 + $0x18] sm:$0xff] }
  0x96   :  { %966 = vmatpush1.msra.mxu1 %v206_v39  ;;  %890 = vmatprep.subr.mxu0 %v75_v40  ;;  %v170_v11 = vld [vmem:[%s5623_s1 + $0x430] sm:$0xff]  ;;  %v167_v13 = vld [vmem:[%s5623_s1 + $0x418] sm:$0xff] }
  0x97   :  { %967 = vmatprep.subr.mxu1 %v203_v41  ;;  %891 = vmatpush1.msra.mxu0 %v74_v42  ;;  %v38_v14 = vld [vmem:[%s5623_s1 + $0x10] sm:$0xff]  ;;  %v163_v16 = vld [vmem:[%s5623_s1 + $0x3f8] sm:$0xff] }
  0x98   :  { %968 = vmatpush1.msra.mxu1 %v202_v43  ;;  %892 = vmatprep.subr.mxu0 %v71_v44  ;;  %v166_v15 = vld [vmem:[%s5623_s1 + $0x410] sm:$0xff]  ;;  %v291_v17 = vld [vmem:[%s5623_s1 + $0x7f8] sm:$0xff] }
  0x99   :  { %969 = vmatprep.subr.mxu1 %v199_v45  ;;  %893 = vmatpush1.msra.mxu0 %v70_v46  ;;  %v162_v18 = vld [vmem:[%s5623_s1 + $0x3f0] sm:$0xff]  ;;  %v159_v20 = vld [vmem:[%s5623_s1 + $0x3d8] sm:$0xff] }
  0x9a   :  { %970 = vmatpush1.msra.mxu1 %v198_v47  ;;  %894 = vmatprep.subr.mxu0 %v67_v48  ;;  %v290_v19 = vld [vmem:[%s5623_s1 + $0x7f0] sm:$0xff]  ;;  %v287_v21 = vld [vmem:[%s5623_s1 + $0x7d8] sm:$0xff] }
  0x9b   :  { %971 = vmatprep.subr.mxu1 %v195_v49  ;;  %895 = vmatpush1.msra.mxu0 %v66_v50  ;;  %v158_v22 = vld [vmem:[%s5623_s1 + $0x3d0] sm:$0xff]  ;;  %v155_v24 = vld [vmem:[%s5623_s1 + $0x3b8] sm:$0xff] }
  0x9c   :  { %972 = vmatpush1.msra.mxu1 %v194_v51  ;;  %896 = vmatprep.subr.mxu0 %v63_v52  ;;  %v286_v23 = vld [vmem:[%s5623_s1 + $0x7d0] sm:$0xff]  ;;  %v283_v25 = vld [vmem:[%s5623_s1 + $0x7b8] sm:$0xff] }
  0x9d   :  { %973 = vmatprep.subr.mxu1 %v191_v53  ;;  %897 = vmatpush1.msra.mxu0 %v62_v54  ;;  %v154_v26 = vld [vmem:[%s5623_s1 + $0x3b0] sm:$0xff]  ;;  %v151_v28 = vld [vmem:[%s5623_s1 + $0x398] sm:$0xff] }
  0x9e   :  { %974 = vmatpush1.msra.mxu1 %v190_v55  ;;  %898 = vmatprep.subr.mxu0 %v59_v56  ;;  %v282_v27 = vld [vmem:[%s5623_s1 + $0x7b0] sm:$0xff]  ;;  %v279_v29 = vld [vmem:[%s5623_s1 + $0x798] sm:$0xff] }
  0x9f   :  { %975 = vmatprep.subr.mxu1 %v187_v57  ;;  %899 = vmatpush1.msra.mxu0 %v58_v58  ;;  %v150_v30 = vld [vmem:[%s5623_s1 + $0x390] sm:$0xff]  ;;  %v147_v32 = vld [vmem:[%s5623_s1 + $0x378] sm:$0xff] }
  0xa0   :  { %976 = vmatpush1.msra.mxu1 %v186_v59  ;;  %900 = vmatprep.subr.mxu0 %v55_v60  ;;  %v278_v31 = vld [vmem:[%s5623_s1 + $0x790] sm:$0xff]  ;;  %v275_v33 = vld [vmem:[%s5623_s1 + $0x778] sm:$0xff] }
  0xa1   :  { %977 = vmatprep.subr.mxu1 %v183_v61  ;;  %901 = vmatpush1.msra.mxu0 %v54_v62  ;;  %v146_v34 = vld [vmem:[%s5623_s1 + $0x370] sm:$0xff]  ;;  %v143_v36 = vld [vmem:[%s5623_s1 + $0x358] sm:$0xff] }
  0xa2   :  { %978 = vmatpush1.msra.mxu1 %v182_v63  ;;  %902 = vmatprep.subr.mxu0 %v51_v0  ;;  %v274_v35 = vld [vmem:[%s5623_s1 + $0x770] sm:$0xff]  ;;  %v271_v37 = vld [vmem:[%s5623_s1 + $0x758] sm:$0xff] }
  0xa3   :  { %979 = vmatprep.subr.mxu1 %v179_v1  ;;  %903 = vmatpush1.msra.mxu0 %v50_v2  ;;  %v142_v38 = vld [vmem:[%s5623_s1 + $0x350] sm:$0xff]  ;;  %v139_v40 = vld [vmem:[%s5623_s1 + $0x338] sm:$0xff] }
  0xa4   :  { %980 = vmatpush1.msra.mxu1 %v178_v3  ;;  %904 = vmatprep.subr.mxu0 %v47_v4  ;;  %v270_v39 = vld [vmem:[%s5623_s1 + $0x750] sm:$0xff]  ;;  %v267_v41 = vld [vmem:[%s5623_s1 + $0x738] sm:$0xff] }
  0xa5   :  { %981 = vmatprep.subr.mxu1 %v175_v5  ;;  %905 = vmatpush1.msra.mxu0 %v46_v6  ;;  %v138_v42 = vld [vmem:[%s5623_s1 + $0x330] sm:$0xff]  ;;  %v135_v44 = vld [vmem:[%s5623_s1 + $0x318] sm:$0xff] }
  0xa6   :  { %982 = vmatpush1.msra.mxu1 %v174_v7  ;;  %906 = vmatprep.subr.mxu0 %v43_v8  ;;  %v266_v43 = vld [vmem:[%s5623_s1 + $0x730] sm:$0xff]  ;;  %v263_v45 = vld [vmem:[%s5623_s1 + $0x718] sm:$0xff] }
  0xa7   :  { %983 = vmatprep.subr.mxu1 %v171_v9  ;;  %907 = vmatpush1.msra.mxu0 %v42_v10  ;;  %v134_v46 = vld [vmem:[%s5623_s1 + $0x310] sm:$0xff]  ;;  %v131_v48 = vld [vmem:[%s5623_s1 + $0x2f8] sm:$0xff] }
  0xa8   :  { %984 = vmatpush1.msra.mxu1 %v170_v11  ;;  %908 = vmatprep.subr.mxu0 %v39_v12  ;;  %v262_v47 = vld [vmem:[%s5623_s1 + $0x710] sm:$0xff]  ;;  %v259_v49 = vld [vmem:[%s5623_s1 + $0x6f8] sm:$0xff] }
  0xa9   :  { %985 = vmatprep.subr.mxu1 %v167_v13  ;;  %909 = vmatpush1.msra.mxu0 %v38_v14  ;;  %v130_v50 = vld [vmem:[%s5623_s1 + $0x2f0] sm:$0xff]  ;;  %v127_v52 = vld [vmem:[%s5623_s1 + $0x2d8] sm:$0xff] }
  0xaa   :  { %986 = vmatpush1.msra.mxu1 %v166_v15  ;;  %910 = vmatprep.subr.mxu0 %v163_v16  ;;  %v258_v51 = vld [vmem:[%s5623_s1 + $0x6f0] sm:$0xff]  ;;  %v255_v53 = vld [vmem:[%s5623_s1 + $0x6d8] sm:$0xff] }
  0xab   :  { %987 = vmatprep.subr.mxu1 %v291_v17  ;;  %911 = vmatpush2.msra.mxu0 %v162_v18  ;;  %v126_v54 = vld [vmem:[%s5623_s1 + $0x2d0] sm:$0xff]  ;;  %v123_v56 = vld [vmem:[%s5623_s1 + $0x2b8] sm:$0xff]  ;;  %v3417_v17 = vld [vmem:[%s5624_s0 + $0x8] sm:$0xff] }
  0xac   :  { %988 = vmatpush2.msra.mxu1 %v290_v19  ;;  %912 = vmatprep.subr.mxu0 %v159_v20  ;;  %v254_v55 = vld [vmem:[%s5623_s1 + $0x6d0] sm:$0xff]  ;;  %v251_v57 = vld [vmem:[%s5623_s1 + $0x6b8] sm:$0xff]  ;;  %v3418_v19 = vld [vmem:[%s5624_s0] sm:$0xff] }
  0xad   :  { %989 = vmatprep.subr.mxu1 %v287_v21  ;;  %913 = vmatpush2.msra.mxu0 %v158_v22  ;;  %v122_v58 = vld [vmem:[%s5623_s1 + $0x2b0] sm:$0xff]  ;;  %v119_v60 = vld [vmem:[%s5623_s1 + $0x298] sm:$0xff] }
  0xae   :  { %990 = vmatpush2.msra.mxu1 %v286_v23  ;;  %914 = vmatprep.subr.mxu0 %v155_v24  ;;  %v250_v59 = vld [vmem:[%s5623_s1 + $0x6b0] sm:$0xff]  ;;  %v247_v61 = vld [vmem:[%s5623_s1 + $0x698] sm:$0xff] }
  0xaf   :  { %991 = vmatprep.subr.mxu1 %v283_v25  ;;  %915 = vmatpush2.msra.mxu0 %v154_v26  ;;  %v118_v62 = vld [vmem:[%s5623_s1 + $0x290] sm:$0xff]  ;;  %v115_v0 = vld [vmem:[%s5623_s1 + $0x278] sm:$0xff] }
  0xb0   :  { %992 = vmatpush2.msra.mxu1 %v282_v27  ;;  %916 = vmatprep.subr.mxu0 %v151_v28  ;;  %v246_v63 = vld [vmem:[%s5623_s1 + $0x690] sm:$0xff]  ;;  %v243_v1 = vld [vmem:[%s5623_s1 + $0x678] sm:$0xff] }
  0xb1   :  { %993 = vmatprep.subr.mxu1 %v279_v29  ;;  %917 = vmatpush2.msra.mxu0 %v150_v30  ;;  %v114_v2 = vld [vmem:[%s5623_s1 + $0x270] sm:$0xff]  ;;  %v111_v4 = vld [vmem:[%s5623_s1 + $0x258] sm:$0xff] }
  0xb2   :  { %994 = vmatpush2.msra.mxu1 %v278_v31  ;;  %918 = vmatprep.subr.mxu0 %v147_v32  ;;  %v242_v3 = vld [vmem:[%s5623_s1 + $0x670] sm:$0xff]  ;;  %v239_v5 = vld [vmem:[%s5623_s1 + $0x658] sm:$0xff] }
  0xb3   :  { %995 = vmatprep.subr.mxu1 %v275_v33  ;;  %919 = vmatpush2.msra.mxu0 %v146_v34  ;;  %v110_v6 = vld [vmem:[%s5623_s1 + $0x250] sm:$0xff]  ;;  %v107_v8 = vld [vmem:[%s5623_s1 + $0x238] sm:$0xff] }
  0xb4   :  { %996 = vmatpush2.msra.mxu1 %v274_v35  ;;  %920 = vmatprep.subr.mxu0 %v143_v36  ;;  %v238_v7 = vld [vmem:[%s5623_s1 + $0x650] sm:$0xff]  ;;  %v235_v9 = vld [vmem:[%s5623_s1 + $0x638] sm:$0xff] }
  0xb5   :  { %997 = vmatprep.subr.mxu1 %v271_v37  ;;  %921 = vmatpush2.msra.mxu0 %v142_v38  ;;  %v106_v10 = vld [vmem:[%s5623_s1 + $0x230] sm:$0xff]  ;;  %v103_v12 = vld [vmem:[%s5623_s1 + $0x218] sm:$0xff] }
  0xb6   :  { %998 = vmatpush2.msra.mxu1 %v270_v39  ;;  %922 = vmatprep.subr.mxu0 %v139_v40  ;;  %v234_v11 = vld [vmem:[%s5623_s1 + $0x630] sm:$0xff]  ;;  %v231_v13 = vld [vmem:[%s5623_s1 + $0x618] sm:$0xff] }
  0xb7   :  { %999 = vmatprep.subr.mxu1 %v267_v41  ;;  %923 = vmatpush2.msra.mxu0 %v138_v42  ;;  %v102_v14 = vld [vmem:[%s5623_s1 + $0x210] sm:$0xff]  ;;  %v355_v16 = vld [vmem:[%s5623_s1 + $0x9f8] sm:$0xff] }
  0xb8   :  { %1000 = vmatpush2.msra.mxu1 %v266_v43  ;;  %924 = vmatprep.subr.mxu0 %v135_v44  ;;  %v230_v15 = vld [vmem:[%s5623_s1 + $0x610] sm:$0xff]  ;;  %v483_v18 = vld [vmem:[%s5623_s1 + $0xdf8] sm:$0xff] }
  0xb9   :  { %1001 = vmatprep.subr.mxu1 %v263_v45  ;;  %925 = vmatpush2.msra.mxu0 %v134_v46  ;;  %v354_v20 = vld [vmem:[%s5623_s1 + $0x9f0] sm:$0xff]  ;;  %v3419_v22 = vld [vmem:[%s5624_s0 + $0x18] sm:$0xff] }
  0xba   :  { %1002 = vmatpush2.msra.mxu1 %v262_v47  ;;  %926 = vmatprep.subr.mxu0 %v131_v48  ;;  %v482_v21 = vld [vmem:[%s5623_s1 + $0xdf0] sm:$0xff]  ;;  %v351_v23 = vld [vmem:[%s5623_s1 + $0x9d8] sm:$0xff] }
  0xbb   :  { %1003 = vmatprep.subr.mxu1 %v259_v49  ;;  %927 = vmatpush2.msra.mxu0 %v130_v50  ;;  %v479_v24 = vld [vmem:[%s5623_s1 + $0xdd8] sm:$0xff]  ;;  %v3420_v25 = vld [vmem:[%s5624_s0 + $0x10] sm:$0xff] }
  0xbc   :  { %1004 = vmatpush2.msra.mxu1 %v258_v51  ;;  %928 = vmatprep.subr.mxu0 %v127_v52  ;;  %v350_v26 = vld [vmem:[%s5623_s1 + $0x9d0] sm:$0xff]  ;;  %v347_v28 = vld [vmem:[%s5623_s1 + $0x9b8] sm:$0xff] }
  0xbd   :  { %1005 = vmatprep.subr.mxu1 %v255_v53  ;;  %929 = vmatpush2.msra.mxu0 %v126_v54  ;;  %v478_v27 = vld [vmem:[%s5623_s1 + $0xdd0] sm:$0xff]  ;;  %v475_v29 = vld [vmem:[%s5623_s1 + $0xdb8] sm:$0xff] }
  0xbe   :  { %1006 = vmatpush2.msra.mxu1 %v254_v55  ;;  %930 = vmatprep.subr.mxu0 %v123_v56  ;;  %v346_v30 = vld [vmem:[%s5623_s1 + $0x9b0] sm:$0xff]  ;;  %v343_v32 = vld [vmem:[%s5623_s1 + $0x998] sm:$0xff] }
  0xbf   :  { %1007 = vmatprep.subr.mxu1 %v251_v57  ;;  %931 = vmatpush2.msra.mxu0 %v122_v58  ;;  %v474_v31 = vld [vmem:[%s5623_s1 + $0xdb0] sm:$0xff]  ;;  %v471_v33 = vld [vmem:[%s5623_s1 + $0xd98] sm:$0xff] }
  0xc0   :  { %1008 = vmatpush2.msra.mxu1 %v250_v59  ;;  %932 = vmatprep.subr.mxu0 %v119_v60  ;;  %v342_v34 = vld [vmem:[%s5623_s1 + $0x990] sm:$0xff]  ;;  %v339_v36 = vld [vmem:[%s5623_s1 + $0x978] sm:$0xff] }
  0xc1   :  { %1009 = vmatprep.subr.mxu1 %v247_v61  ;;  %933 = vmatpush2.msra.mxu0 %v118_v62  ;;  %v470_v35 = vld [vmem:[%s5623_s1 + $0xd90] sm:$0xff]  ;;  %v467_v37 = vld [vmem:[%s5623_s1 + $0xd78] sm:$0xff] }
  0xc2   :  { %1010 = vmatpush2.msra.mxu1 %v246_v63  ;;  %934 = vmatprep.subr.mxu0 %v115_v0  ;;  %v338_v38 = vld [vmem:[%s5623_s1 + $0x970] sm:$0xff]  ;;  %v335_v40 = vld [vmem:[%s5623_s1 + $0x958] sm:$0xff] }
  0xc3   :  { %1011 = vmatprep.subr.mxu1 %v243_v1  ;;  %935 = vmatpush2.msra.mxu0 %v114_v2  ;;  %v466_v39 = vld [vmem:[%s5623_s1 + $0xd70] sm:$0xff]  ;;  %v463_v41 = vld [vmem:[%s5623_s1 + $0xd58] sm:$0xff] }
  0xc4   :  { %1012 = vmatpush2.msra.mxu1 %v242_v3  ;;  %936 = vmatprep.subr.mxu0 %v111_v4  ;;  %v334_v42 = vld [vmem:[%s5623_s1 + $0x950] sm:$0xff]  ;;  %v331_v44 = vld [vmem:[%s5623_s1 + $0x938] sm:$0xff] }
  0xc5   :  { %1013 = vmatprep.subr.mxu1 %v239_v5  ;;  %937 = vmatpush2.msra.mxu0 %v110_v6  ;;  %v462_v43 = vld [vmem:[%s5623_s1 + $0xd50] sm:$0xff]  ;;  %v459_v45 = vld [vmem:[%s5623_s1 + $0xd38] sm:$0xff] }
  0xc6   :  { %1014 = vmatpush2.msra.mxu1 %v238_v7  ;;  %938 = vmatprep.subr.mxu0 %v107_v8  ;;  %v330_v46 = vld [vmem:[%s5623_s1 + $0x930] sm:$0xff]  ;;  %v327_v48 = vld [vmem:[%s5623_s1 + $0x918] sm:$0xff] }
  0xc7   :  { %1015 = vmatprep.subr.mxu1 %v235_v9  ;;  %939 = vmatpush2.msra.mxu0 %v106_v10  ;;  %v458_v47 = vld [vmem:[%s5623_s1 + $0xd30] sm:$0xff]  ;;  %v455_v49 = vld [vmem:[%s5623_s1 + $0xd18] sm:$0xff] }
  0xc8   :  { %1016 = vmatpush2.msra.mxu1 %v234_v11  ;;  %940 = vmatprep.subr.mxu0 %v103_v12  ;;  %v326_v50 = vld [vmem:[%s5623_s1 + $0x910] sm:$0xff]  ;;  %v323_v52 = vld [vmem:[%s5623_s1 + $0x8f8] sm:$0xff] }
  0xc9   :  { %1017 = vmatprep.subr.mxu1 %v231_v13  ;;  %941 = vmatpush2.msra.mxu0 %v102_v14  ;;  %v454_v51 = vld [vmem:[%s5623_s1 + $0xd10] sm:$0xff]  ;;  %v451_v53 = vld [vmem:[%s5623_s1 + $0xcf8] sm:$0xff] }
  0xca   :  { %942 = vmatprep.mubr.f32.mxu0 %v3417_v17  ;;  %1018 = vmatpush2.msra.mxu1 %v230_v15  ;;  %v322_v54 = vld [vmem:[%s5623_s1 + $0x8f0] sm:$0xff]  ;;  %v319_v56 = vld [vmem:[%s5623_s1 + $0x8d8] sm:$0xff] }
  0xcb   :  { %943 = vmatmul.mubr.f32.vlgmr.msra.gmra.mxu0 %v3418_v19  ;;  %1019 = vmatprep.mubr.f32.mxu1 %v3419_v22  ;;  %v450_v55 = vld [vmem:[%s5623_s1 + $0xcf0] sm:$0xff]  ;;  %v447_v57 = vld [vmem:[%s5623_s1 + $0xcd8] sm:$0xff] }
  0xcc   :  { %1032 = vmatprep.subr.mxu0 %v355_v16  ;;  %1109 = vmatprep.subr.mxu1 %v483_v18  ;;  %v318_v58 = vld [vmem:[%s5623_s1 + $0x8d0] sm:$0xff]  ;;  %v315_v60 = vld [vmem:[%s5623_s1 + $0x8b8] sm:$0xff] }
  0xcd   :  { %1020 = vmatmul.mubr.f32.vlgmr.msra.gmra.mxu1 %v3420_v25  ;;  %1033 = vmatpush1.msra.mxu0 %v354_v20  ;;  %v446_v59 = vld [vmem:[%s5623_s1 + $0xcd0] sm:$0xff]  ;;  %v443_v61 = vld [vmem:[%s5623_s1 + $0xcb8] sm:$0xff] }
  0xce   :  { %1110 = vmatpush1.msra.mxu1 %v482_v21  ;;  %1034 = vmatprep.subr.mxu0 %v351_v23  ;;  %v314_v62 = vld [vmem:[%s5623_s1 + $0x8b0] sm:$0xff]  ;;  %v311_v0 = vld [vmem:[%s5623_s1 + $0x898] sm:$0xff] }
  0xcf   :  { %1111 = vmatprep.subr.mxu1 %v479_v24  ;;  %1035 = vmatpush1.msra.mxu0 %v350_v26  ;;  %v442_v63 = vld [vmem:[%s5623_s1 + $0xcb0] sm:$0xff]  ;;  %v439_v1 = vld [vmem:[%s5623_s1 + $0xc98] sm:$0xff] }
  0xd0   :  { %1112 = vmatpush1.msra.mxu1 %v478_v27  ;;  %1036 = vmatprep.subr.mxu0 %v347_v28  ;;  %v310_v2 = vld [vmem:[%s5623_s1 + $0x890] sm:$0xff]  ;;  %v307_v4 = vld [vmem:[%s5623_s1 + $0x878] sm:$0xff] }
  0xd1   :  { %1113 = vmatprep.subr.mxu1 %v475_v29  ;;  %1037 = vmatpush1.msra.mxu0 %v346_v30  ;;  %v438_v3 = vld [vmem:[%s5623_s1 + $0xc90] sm:$0xff]  ;;  %v435_v5 = vld [vmem:[%s5623_s1 + $0xc78] sm:$0xff] }
  0xd2   :  { %1114 = vmatpush1.msra.mxu1 %v474_v31  ;;  %1038 = vmatprep.subr.mxu0 %v343_v32  ;;  %v306_v6 = vld [vmem:[%s5623_s1 + $0x870] sm:$0xff]  ;;  %v303_v8 = vld [vmem:[%s5623_s1 + $0x858] sm:$0xff] }
  0xd3   :  { %1115 = vmatprep.subr.mxu1 %v471_v33  ;;  %1039 = vmatpush1.msra.mxu0 %v342_v34  ;;  %v434_v7 = vld [vmem:[%s5623_s1 + $0xc70] sm:$0xff]  ;;  %v431_v9 = vld [vmem:[%s5623_s1 + $0xc58] sm:$0xff] }
  0xd4   :  { %1116 = vmatpush1.msra.mxu1 %v470_v35  ;;  %1040 = vmatprep.subr.mxu0 %v339_v36  ;;  %v302_v10 = vld [vmem:[%s5623_s1 + $0x850] sm:$0xff]  ;;  %v299_v12 = vld [vmem:[%s5623_s1 + $0x838] sm:$0xff] }
  0xd5   :  { %1117 = vmatprep.subr.mxu1 %v467_v37  ;;  %1041 = vmatpush1.msra.mxu0 %v338_v38  ;;  %v430_v11 = vld [vmem:[%s5623_s1 + $0xc50] sm:$0xff]  ;;  %v427_v13 = vld [vmem:[%s5623_s1 + $0xc38] sm:$0xff] }
  0xd6   :  { %1118 = vmatpush1.msra.mxu1 %v466_v39  ;;  %1042 = vmatprep.subr.mxu0 %v335_v40  ;;  %v298_v14 = vld [vmem:[%s5623_s1 + $0x830] sm:$0xff]  ;;  %v295_v16 = vld [vmem:[%s5623_s1 + $0x818] sm:$0xff] }
  0xd7   :  { %1119 = vmatprep.subr.mxu1 %v463_v41  ;;  %1043 = vmatpush1.msra.mxu0 %v334_v42  ;;  %v426_v15 = vld [vmem:[%s5623_s1 + $0xc30] sm:$0xff]  ;;  %v423_v17 = vld [vmem:[%s5623_s1 + $0xc18] sm:$0xff] }
  0xd8   :  { %1120 = vmatpush1.msra.mxu1 %v462_v43  ;;  %1044 = vmatprep.subr.mxu0 %v331_v44  ;;  %v294_v18 = vld [vmem:[%s5623_s1 + $0x810] sm:$0xff]  ;;  %v419_v20 = vld [vmem:[%s5623_s1 + $0xbf8] sm:$0xff] }
  0xd9   :  { %1121 = vmatprep.subr.mxu1 %v459_v45  ;;  %1045 = vmatpush1.msra.mxu0 %v330_v46  ;;  %v422_v19 = vld [vmem:[%s5623_s1 + $0xc10] sm:$0xff]  ;;  %v547_v21 = vld [vmem:[%s5623_s1 + $0xff8] sm:$0xff] }
  0xda   :  { %1122 = vmatpush1.msra.mxu1 %v458_v47  ;;  %1046 = vmatprep.subr.mxu0 %v327_v48  ;;  %v418_v22 = vld [vmem:[%s5623_s1 + $0xbf0] sm:$0xff]  ;;  %v415_v24 = vld [vmem:[%s5623_s1 + $0xbd8] sm:$0xff] }
  0xdb   :  { %1123 = vmatprep.subr.mxu1 %v455_v49  ;;  %1047 = vmatpush1.msra.mxu0 %v326_v50  ;;  %v546_v23 = vld [vmem:[%s5623_s1 + $0xff0] sm:$0xff]  ;;  %v543_v25 = vld [vmem:[%s5623_s1 + $0xfd8] sm:$0xff] }
  0xdc   :  { %1124 = vmatpush1.msra.mxu1 %v454_v51  ;;  %1048 = vmatprep.subr.mxu0 %v323_v52  ;;  %v414_v26 = vld [vmem:[%s5623_s1 + $0xbd0] sm:$0xff]  ;;  %v411_v28 = vld [vmem:[%s5623_s1 + $0xbb8] sm:$0xff] }
  0xdd   :  { %1125 = vmatprep.subr.mxu1 %v451_v53  ;;  %1049 = vmatpush1.msra.mxu0 %v322_v54  ;;  %v542_v27 = vld [vmem:[%s5623_s1 + $0xfd0] sm:$0xff]  ;;  %v539_v29 = vld [vmem:[%s5623_s1 + $0xfb8] sm:$0xff] }
  0xde   :  { %1126 = vmatpush1.msra.mxu1 %v450_v55  ;;  %1050 = vmatprep.subr.mxu0 %v319_v56  ;;  %v410_v30 = vld [vmem:[%s5623_s1 + $0xbb0] sm:$0xff]  ;;  %v407_v32 = vld [vmem:[%s5623_s1 + $0xb98] sm:$0xff] }
  0xdf   :  { %1127 = vmatprep.subr.mxu1 %v447_v57  ;;  %1051 = vmatpush1.msra.mxu0 %v318_v58  ;;  %v538_v31 = vld [vmem:[%s5623_s1 + $0xfb0] sm:$0xff]  ;;  %v535_v33 = vld [vmem:[%s5623_s1 + $0xf98] sm:$0xff] }
  0xe0   :  { %1128 = vmatpush1.msra.mxu1 %v446_v59  ;;  %1052 = vmatprep.subr.mxu0 %v315_v60  ;;  %v406_v34 = vld [vmem:[%s5623_s1 + $0xb90] sm:$0xff]  ;;  %v403_v36 = vld [vmem:[%s5623_s1 + $0xb78] sm:$0xff] }
  0xe1   :  { %1129 = vmatprep.subr.mxu1 %v443_v61  ;;  %1053 = vmatpush1.msra.mxu0 %v314_v62  ;;  %v534_v35 = vld [vmem:[%s5623_s1 + $0xf90] sm:$0xff]  ;;  %v531_v37 = vld [vmem:[%s5623_s1 + $0xf78] sm:$0xff] }
  0xe2   :  { %1130 = vmatpush1.msra.mxu1 %v442_v63  ;;  %1054 = vmatprep.subr.mxu0 %v311_v0  ;;  %v402_v38 = vld [vmem:[%s5623_s1 + $0xb70] sm:$0xff]  ;;  %v399_v40 = vld [vmem:[%s5623_s1 + $0xb58] sm:$0xff] }
  0xe3   :  { %1131 = vmatprep.subr.mxu1 %v439_v1  ;;  %1055 = vmatpush1.msra.mxu0 %v310_v2  ;;  %v530_v39 = vld [vmem:[%s5623_s1 + $0xf70] sm:$0xff]  ;;  %v527_v41 = vld [vmem:[%s5623_s1 + $0xf58] sm:$0xff] }
  0xe4   :  { %1132 = vmatpush1.msra.mxu1 %v438_v3  ;;  %1056 = vmatprep.subr.mxu0 %v307_v4  ;;  %v398_v42 = vld [vmem:[%s5623_s1 + $0xb50] sm:$0xff]  ;;  %v395_v44 = vld [vmem:[%s5623_s1 + $0xb38] sm:$0xff] }
  0xe5   :  { %1133 = vmatprep.subr.mxu1 %v435_v5  ;;  %1057 = vmatpush1.msra.mxu0 %v306_v6  ;;  %v526_v43 = vld [vmem:[%s5623_s1 + $0xf50] sm:$0xff]  ;;  %v523_v45 = vld [vmem:[%s5623_s1 + $0xf38] sm:$0xff] }
  0xe6   :  { %1134 = vmatpush1.msra.mxu1 %v434_v7  ;;  %1058 = vmatprep.subr.mxu0 %v303_v8  ;;  %v394_v46 = vld [vmem:[%s5623_s1 + $0xb30] sm:$0xff]  ;;  %v391_v48 = vld [vmem:[%s5623_s1 + $0xb18] sm:$0xff] }
  0xe7   :  { %1135 = vmatprep.subr.mxu1 %v431_v9  ;;  %1059 = vmatpush1.msra.mxu0 %v302_v10  ;;  %v522_v47 = vld [vmem:[%s5623_s1 + $0xf30] sm:$0xff]  ;;  %v519_v49 = vld [vmem:[%s5623_s1 + $0xf18] sm:$0xff]  ;;  %v3421_v10 = vld [vmem:[%s5624_s0 + $0x48] sm:$0xff] }
  0xe8   :  { %1136 = vmatpush1.msra.mxu1 %v430_v11  ;;  %1060 = vmatprep.subr.mxu0 %v299_v12  ;;  %v390_v50 = vld [vmem:[%s5623_s1 + $0xb10] sm:$0xff]  ;;  %v387_v52 = vld [vmem:[%s5623_s1 + $0xaf8] sm:$0xff]  ;;  %v3422_v12 = vld [vmem:[%s5624_s0 + $0x40] sm:$0xff] }
  0xe9   :  { %1137 = vmatprep.subr.mxu1 %v427_v13  ;;  %1061 = vmatpush1.msra.mxu0 %v298_v14  ;;  %v518_v51 = vld [vmem:[%s5623_s1 + $0xf10] sm:$0xff]  ;;  %v515_v53 = vld [vmem:[%s5623_s1 + $0xef8] sm:$0xff] }
  0xea   :  { %1138 = vmatpush1.msra.mxu1 %v426_v15  ;;  %1062 = vmatprep.subr.mxu0 %v295_v16  ;;  %v386_v54 = vld [vmem:[%s5623_s1 + $0xaf0] sm:$0xff]  ;;  %v383_v56 = vld [vmem:[%s5623_s1 + $0xad8] sm:$0xff] }
  0xeb   :  { %1139 = vmatprep.subr.mxu1 %v423_v17  ;;  %1063 = vmatpush1.msra.mxu0 %v294_v18  ;;  %v514_v55 = vld [vmem:[%s5623_s1 + $0xef0] sm:$0xff]  ;;  %v511_v57 = vld [vmem:[%s5623_s1 + $0xed8] sm:$0xff] }
  0xec   :  { %1140 = vmatpush1.msra.mxu1 %v422_v19  ;;  %1064 = vmatprep.subr.mxu0 %v419_v20  ;;  %v382_v58 = vld [vmem:[%s5623_s1 + $0xad0] sm:$0xff]  ;;  %v379_v60 = vld [vmem:[%s5623_s1 + $0xab8] sm:$0xff] }
  0xed   :  { %1141 = vmatprep.subr.mxu1 %v547_v21  ;;  %1065 = vmatpush2.msra.mxu0 %v418_v22  ;;  %v510_v59 = vld [vmem:[%s5623_s1 + $0xed0] sm:$0xff]  ;;  %v507_v61 = vld [vmem:[%s5623_s1 + $0xeb8] sm:$0xff] }
  0xee   :  { %1142 = vmatpush2.msra.mxu1 %v546_v23  ;;  %1066 = vmatprep.subr.mxu0 %v415_v24  ;;  %v378_v62 = vld [vmem:[%s5623_s1 + $0xab0] sm:$0xff]  ;;  %v375_v0 = vld [vmem:[%s5623_s1 + $0xa98] sm:$0xff]  ;;  %v3425_v24 = vld [vmem:[%s5624_s0 + $0x28] sm:$0xff] }
  0xef   :  { %1143 = vmatprep.subr.mxu1 %v543_v25  ;;  %1067 = vmatpush2.msra.mxu0 %v414_v26  ;;  %v506_v63 = vld [vmem:[%s5623_s1 + $0xeb0] sm:$0xff]  ;;  %v503_v1 = vld [vmem:[%s5623_s1 + $0xe98] sm:$0xff] }
  0xf0   :  { %1144 = vmatpush2.msra.mxu1 %v542_v27  ;;  %1068 = vmatprep.subr.mxu0 %v411_v28  ;;  %v374_v2 = vld [vmem:[%s5623_s1 + $0xa90] sm:$0xff]  ;;  %v371_v4 = vld [vmem:[%s5623_s1 + $0xa78] sm:$0xff]  ;;  %v3427_v27 = vld [vmem:[%s5624_s0 + $0x20] sm:$0xff] }
  0xf1   :  { %1145 = vmatprep.subr.mxu1 %v539_v29  ;;  %1069 = vmatpush2.msra.mxu0 %v410_v30  ;;  %v502_v3 = vld [vmem:[%s5623_s1 + $0xe90] sm:$0xff]  ;;  %v499_v5 = vld [vmem:[%s5623_s1 + $0xe78] sm:$0xff] }
  0xf2   :  { %1146 = vmatpush2.msra.mxu1 %v538_v31  ;;  %1070 = vmatprep.subr.mxu0 %v407_v32  ;;  %v370_v6 = vld [vmem:[%s5623_s1 + $0xa70] sm:$0xff]  ;;  %v367_v8 = vld [vmem:[%s5623_s1 + $0xa58] sm:$0xff]  ;;  %v3429_v31 = vld [vmem:[%s5624_s0 + $0x68] sm:$0xff] }
  0xf3   :  { %1147 = vmatprep.subr.mxu1 %v535_v33  ;;  %1071 = vmatpush2.msra.mxu0 %v406_v34  ;;  %v498_v7 = vld [vmem:[%s5623_s1 + $0xe70] sm:$0xff]  ;;  %v495_v9 = vld [vmem:[%s5623_s1 + $0xe58] sm:$0xff]  ;;  %v3433_v34 = vmov 0.0  }
  0xf4   :  { %1148 = vmatpush2.msra.mxu1 %v534_v35  ;;  %1072 = vmatprep.subr.mxu0 %v403_v36  ;;  %v366_v11 = vld [vmem:[%s5623_s1 + $0xa50] sm:$0xff]  ;;  %v363_v14 = vld [vmem:[%s5623_s1 + $0xa38] sm:$0xff] }
  0xf5   :  { %1149 = vmatprep.subr.mxu1 %v531_v37  ;;  %1073 = vmatpush2.msra.mxu0 %v402_v38  ;;  %v494_v13 = vld [vmem:[%s5623_s1 + $0xe50] sm:$0xff]  ;;  %v491_v15 = vld [vmem:[%s5623_s1 + $0xe38] sm:$0xff]  ;;  %v3431_v37 = vld [vmem:[%s5624_s0 + $0x60] sm:$0xff] }
  0xf6   :  { %1150 = vmatpush2.msra.mxu1 %v530_v39  ;;  %1074 = vmatprep.subr.mxu0 %v399_v40  ;;  %v3423_v16 = vld [vmem:[%s5624_s0 + $0x58] sm:$0xff]  ;;  %v362_v17 = vld [vmem:[%s5623_s1 + $0xa30] sm:$0xff]  ;;  %v1224_v39 = vld [vmem:[%s5625_s3 + $0xe8] sm:$0xff] }
  0xf7   :  { %1151 = vmatprep.subr.mxu1 %v527_v41  ;;  %1075 = vmatpush2.msra.mxu0 %v398_v42  ;;  %v490_v18 = vld [vmem:[%s5623_s1 + $0xe30] sm:$0xff]  ;;  %v359_v19 = vld [vmem:[%s5623_s1 + $0xa18] sm:$0xff]  ;;  %v1208_v40 = vld [vmem:[%s5625_s3 + $0x68] sm:$0xff] }
  0xf8   :  { %1152 = vmatpush2.msra.mxu1 %v526_v43  ;;  %1076 = vmatprep.subr.mxu0 %v395_v44  ;;  %v487_v20 = vld [vmem:[%s5623_s1 + $0xe18] sm:$0xff]  ;;  %v3424_v21 = vld [vmem:[%s5624_s0 + $0x50] sm:$0xff]  ;;  %v1240_v41 = vld [vmem:[%s5625_s3 + $0x168] sm:$0xff] }
  0xf9   :  { %1153 = vmatprep.subr.mxu1 %v523_v45  ;;  %1077 = vmatpush2.msra.mxu0 %v394_v46  ;;  %v358_v22 = vld [vmem:[%s5623_s1 + $0xa10] sm:$0xff]  ;;  %v3426_v25 = vld [vmem:[%s5624_s0 + $0x38] sm:$0xff]  ;;  %v1223_v42 = vld [vmem:[%s5625_s3 + $0xe0] sm:$0xff] }
  0xfa   :  { %1154 = vmatpush2.msra.mxu1 %v522_v47  ;;  %1078 = vmatprep.subr.mxu0 %v391_v48  ;;  %v486_v23 = vld [vmem:[%s5623_s1 + $0xe10] sm:$0xff]  ;;  %v1226_v26 = vld [vmem:[%s5625_s3 + $0xf8] sm:$0xff]  ;;  %v1207_v43 = vld [vmem:[%s5625_s3 + $0x60] sm:$0xff] }
  0xfb   :  { %1155 = vmatprep.subr.mxu1 %v519_v49  ;;  %1079 = vmatpush2.msra.mxu0 %v390_v50  ;;  %v3428_v28 = vld [vmem:[%s5624_s0 + $0x30] sm:$0xff]  ;;  %v1210_v29 = vld [vmem:[%s5625_s3 + $0x78] sm:$0xff]  ;;  %v1239_v44 = vld [vmem:[%s5625_s3 + $0x160] sm:$0xff] }
  0xfc   :  { %1156 = vmatpush2.msra.mxu1 %v518_v51  ;;  %1080 = vmatprep.subr.mxu0 %v387_v52  ;;  %v1242_v30 = vld [vmem:[%s5625_s3 + $0x178] sm:$0xff]  ;;  %v1225_v33 = vld [vmem:[%s5625_s3 + $0xf0] sm:$0xff]  ;;  %v1220_v51 = vld [vmem:[%s5625_s3 + $0xc8] sm:$0xff] }
  0xfd   :  { %1157 = vmatprep.subr.mxu1 %v515_v53  ;;  %1081 = vmatpush2.msra.mxu0 %v386_v54  ;;  %v3430_v32 = vld [vmem:[%s5624_s0 + $0x78] sm:$0xff]  ;;  %v1209_v35 = vld [vmem:[%s5625_s3 + $0x70] sm:$0xff]  ;;  %v1204_v52 = vld [vmem:[%s5625_s3 + $0x48] sm:$0xff] }
  0xfe   :  { %1158 = vmatpush2.msra.mxu1 %v514_v55  ;;  %1082 = vmatprep.subr.mxu0 %v383_v56  ;;  %v1241_v36 = vld [vmem:[%s5625_s3 + $0x170] sm:$0xff]  ;;  %v1222_v45 = vld [vmem:[%s5625_s3 + $0xd8] sm:$0xff]  ;;  %v1236_v53 = vld [vmem:[%s5625_s3 + $0x148] sm:$0xff] }
  0xff   :  { %1159 = vmatprep.subr.mxu1 %v511_v57  ;;  %1083 = vmatpush2.msra.mxu0 %v382_v58  ;;  %v3432_v38 = vld [vmem:[%s5624_s0 + $0x70] sm:$0xff]  ;;  %v1206_v46 = vld [vmem:[%s5625_s3 + $0x58] sm:$0xff]  ;;  %v1219_v54 = vld [vmem:[%s5625_s3 + $0xc0] sm:$0xff] }
 0x100   :  { %1160 = vmatpush2.msra.mxu1 %v510_v59  ;;  %1084 = vmatprep.subr.mxu0 %v379_v60  ;;  %v1238_v47 = vld [vmem:[%s5625_s3 + $0x158] sm:$0xff]  ;;  %v1221_v48 = vld [vmem:[%s5625_s3 + $0xd0] sm:$0xff]  ;;  %v1203_v55 = vld [vmem:[%s5625_s3 + $0x40] sm:$0xff] }
 0x101   :  { %1161 = vmatprep.subr.mxu1 %v507_v61  ;;  %1085 = vmatpush2.msra.mxu0 %v378_v62  ;;  %v1205_v49 = vld [vmem:[%s5625_s3 + $0x50] sm:$0xff]  ;;  %v1235_v56 = vld [vmem:[%s5625_s3 + $0x140] sm:$0xff]  ;;  %v1218_v57 = vld [vmem:[%s5625_s3 + $0xb8] sm:$0xff] }
 0x102   :  { %1162 = vmatpush2.msra.mxu1 %v506_v63  ;;  %1086 = vmatprep.subr.mxu0 %v375_v0  ;;  %v1237_v50 = vld [vmem:[%s5625_s3 + $0x150] sm:$0xff]  ;;  %v1202_v58 = vld [vmem:[%s5625_s3 + $0x38] sm:$0xff]  ;;  %v1216_v62 = vld [vmem:[%s5625_s3 + $0xa8] sm:$0xff] }
 0x103   :  { %1163 = vmatprep.subr.mxu1 %v503_v1  ;;  %1087 = vmatpush2.msra.mxu0 %v374_v2  ;;  %v1234_v59 = vld [vmem:[%s5625_s3 + $0x138] sm:$0xff]  ;;  %v1217_v60 = vld [vmem:[%s5625_s3 + $0xb0] sm:$0xff]  ;;  %v1200_v63 = vld [vmem:[%s5625_s3 + $0x28] sm:$0xff] }
 0x104   :  { %1164 = vmatpush2.msra.mxu1 %v502_v3  ;;  %1088 = vmatprep.subr.mxu0 %v371_v4  ;;  %v1201_v61 = vld [vmem:[%s5625_s3 + $0x30] sm:$0xff]  ;;  %v1215_v0 = vld [vmem:[%s5625_s3 + $0xa0] sm:$0xff]  ;;  %v1214_v2 = vld [vmem:[%s5625_s3 + $0x98] sm:$0xff] }
 0x105   :  { %1165 = vmatprep.subr.mxu1 %v499_v5  ;;  %948 = vmatprep.mubr.f32.mxu0 %v3421_v10  ;;  %v1199_v1 = vld [vmem:[%s5625_s3 + $0x20] sm:$0xff]  ;;  %v1198_v3 = vld [vmem:[%s5625_s3 + $0x18] sm:$0xff]  ;;  %v1213_v4 = vld [vmem:[%s5625_s3 + $0x90] sm:$0xff]  ;;  %v550_v10 = vlaneseq }
 0x106   :  { %1089 = vmatpush2.msra.mxu0 %v370_v6  ;;  %1166 = vmatpush2.msra.mxu1 %v498_v7  ;;  %v1197_v5 = vld [vmem:[%s5625_s3 + $0x10] sm:$0xff]  ;;  %v1212_v6 = vld [vmem:[%s5625_s3 + $0x88] sm:$0xff] }
 0x107   :  { %949 = vmatmul.mubr.f32.gmra.mxu0 %v3422_v12  ;;  %1090 = vmatprep.subr.mxu0 %v367_v8  ;;  %v1196_v7 = vld [vmem:[%s5625_s3 + $0x8] sm:$0xff]  ;;  %v1211_v8 = vld [vmem:[%s5625_s3 + $0x80] sm:$0xff] }
 0x108   :  { %1167 = vmatprep.subr.mxu1 %v495_v9  ;;  %1025 = vmatprep.mubr.f32.mxu1 %v3423_v16  ;;  %v1195_v9 = vld [vmem:[%s5625_s3] sm:$0xff]  ;;  %v713_v16 = vpop.f32.mrf.mxu1 }
 0x109   :  { %1091 = vmatpush2.msra.mxu0 %v366_v11  ;;  %1168 = vmatpush2.msra.mxu1 %v494_v13  ;;  %v5233_v11 = vshrl.u32 %v550_v10, 7  ;;  %v636_v13 = vpop.f32.mrf.mxu0 }
 0x10a   :  { %1092 = vmatprep.subr.mxu0 %v363_v14  ;;  %1026 = vmatmul.mubr.f32.gmra.mxu1 %v3424_v21  ;;  %v5239_v14 = vld [vmem:[%s5626_s2] sm:$0xf]  ;;  %v715_v21 = vpop.f32.mrf.mxu1 }
 0x10b   :  { %1169 = vmatprep.subr.mxu1 %v491_v15  ;;  %1093 = vmatpush2.msra.mxu0 %v362_v17  ;;  %v552_v12 = vsub.s32 0, %v5233_v11  ;;  %v556_v15 = vsub.s32 1, %v5233_v11 }
 0x10c   :  { %1170 = vmatpush2.msra.mxu1 %v490_v18  ;;  %1094 = vmatprep.subr.mxu0 %v359_v19  ;;  %v638_v18 = vpop.f32.mrf.mxu0 }
 0x10d   :  { %1171 = vmatprep.subr.mxu1 %v487_v20  ;;  %1095 = vmatpush2.msra.mxu0 %v358_v22  ;;  %v553_v17 = vrot.slane %v5239_v14, %v552_v12  ;;  %v557_v19 = vrot.slane %v5239_v14, %v556_v15 }
 0x10e   :  { %1096 = vmatprep.mubr.f32.mxu0 %v3425_v24  ;;  %1172 = vmatpush2.msra.mxu1 %v486_v23 }
 0x10f   :  { %1173 = vmatprep.mubr.f32.mxu1 %v3426_v25  ;;  %1097 = vmatmul.mubr.f32.vlgmr.msra.gmra.mxu0 %v3427_v27  ;;  %v637_v22 = vadd.f32 %v636_v13, %v553_v17  ;;  %v639_v25 = vadd.f32 %v638_v18, %v557_v19 }
 0x110   :  { %1174 = vmatmul.mubr.f32.vlgmr.msra.gmra.mxu1 %v3428_v28  ;;  %1102 = vmatprep.mubr.f32.mxu0 %v3429_v31  ;;  %v1233_v31 = vld [vmem:[%s5625_s3 + $0x130] sm:$0xff] }
 0x111   :  { %1179 = vmatprep.mubr.f32.mxu1 %v3430_v32  ;;  %3059 = vmatprep.subr.mxu0 %v1226_v26  ;;  %v714_v27 = vadd.f32 %v713_v16, %v637_v22 }
 0x112   :  { %1330 = vmatprep.subr.mxu1 %v3433_v34  ;;  %3060 = vmatpush3.msra.mxu0 %v1210_v29  ;;  %v716_v29 = vadd.f32 %v715_v21, %v639_v25 }
 0x113   :  { %1331 = vmatpush1.msra.mxu1 %v1242_v30  ;;  %1103 = vmatmul.mubr.f32.gmra.mxu0 %v3431_v37 }
 0x114   :  { %1180 = vmatmul.mubr.f32.gmra.mxu1 %v3432_v38  ;;  %3061 = vmatprep.subr.mxu0 %v1225_v33 }
 0x115   :  { %1332 = vmatprep.subr.mxu1 %v3433_v34  ;;  %3062 = vmatpush3.msra.mxu0 %v1209_v35 }
 0x116   :  { %1333 = vmatpush1.msra.mxu1 %v1241_v36  ;;  %3063 = vmatprep.subr.mxu0 %v1224_v39 }
 0x117   :  { %1334 = vmatprep.subr.mxu1 %v3433_v34  ;;  %3064 = vmatpush3.msra.mxu0 %v1208_v40 }
 0x118   :  { %1335 = vmatpush1.msra.mxu1 %v1240_v41  ;;  %3065 = vmatprep.subr.mxu0 %v1223_v42  ;;  %v1232_v41 = vld [vmem:[%s5625_s3 + $0x128] sm:$0xff] }
 0x119   :  { %1336 = vmatprep.subr.mxu1 %v3433_v34  ;;  %3066 = vmatpush3.msra.mxu0 %v1207_v43 }
 0x11a   :  { %1337 = vmatpush1.msra.mxu1 %v1239_v44  ;;  %3067 = vmatprep.subr.mxu0 %v1222_v45 }
 0x11b   :  { %1338 = vmatprep.subr.mxu1 %v3433_v34  ;;  %3068 = vmatpush3.msra.mxu0 %v1206_v46  ;;  %v1231_v46 = vld [vmem:[%s5625_s3 + $0x120] sm:$0xff] }
 0x11c   :  { %1339 = vmatpush1.msra.mxu1 %v1238_v47  ;;  %3069 = vmatprep.subr.mxu0 %v1221_v48 }
 0x11d   :  { %1340 = vmatprep.subr.mxu1 %v3433_v34  ;;  %3070 = vmatpush3.msra.mxu0 %v1205_v49 }
 0x11e   :  { %1341 = vmatpush1.msra.mxu1 %v1237_v50  ;;  %3071 = vmatprep.subr.mxu0 %v1220_v51  ;;  %v1230_v51 = vld [vmem:[%s5625_s3 + $0x118] sm:$0xff] }
 0x11f   :  { %1342 = vmatprep.subr.mxu1 %v3433_v34  ;;  %3072 = vmatpush3.msra.mxu0 %v1204_v52 }
 0x120   :  { %1343 = vmatpush1.msra.mxu1 %v1236_v53  ;;  %3073 = vmatprep.subr.mxu0 %v1219_v54  ;;  %v1229_v53 = vld [vmem:[%s5625_s3 + $0x110] sm:$0xff] }
 0x121   :  { %1344 = vmatprep.subr.mxu1 %v3433_v34  ;;  %3074 = vmatpush3.msra.mxu0 %v1203_v55 }
 0x122   :  { %1345 = vmatpush1.msra.mxu1 %v1235_v56  ;;  %3075 = vmatprep.subr.mxu0 %v1218_v57  ;;  %v1228_v57 = vld [vmem:[%s5625_s3 + $0x108] sm:$0xff] }
 0x123   :  { %1346 = vmatprep.subr.mxu1 %v3433_v34  ;;  %3076 = vmatpush3.msra.mxu0 %v1202_v58 }
 0x124   :  { %1347 = vmatpush1.msra.mxu1 %v1234_v59  ;;  %3077 = vmatprep.subr.mxu0 %v1217_v60  ;;  %v1227_v59 = vld [vmem:[%s5625_s3 + $0x100] sm:$0xff] }
 0x125   :  { %1348 = vmatprep.subr.mxu1 %v3433_v34  ;;  %3078 = vmatpush3.msra.mxu0 %v1201_v61  ;;  %v1243_v61 = vld [vmem:[%s5625_s3 + $0x180] sm:$0xff] }
 0x126   :  { %3079 = vmatprep.subr.mxu0 %v1216_v62  ;;  %1349 = vmatpush1.msra.mxu1 %v1233_v31  ;;  %v560_v62 = vsub.s32 2, %v5233_v11 }
 0x127   :  { %3080 = vmatpush3.msra.mxu0 %v1200_v63  ;;  %1350 = vmatprep.subr.mxu1 %v3433_v34 }
 0x128   :  { %3081 = vmatprep.subr.mxu0 %v1215_v0  ;;  %1351 = vmatpush1.msra.mxu1 %v1232_v41  ;;  %v5289_v41 = vld [vmem:[%s5627_s4 + $0x50] sm:$0xff] }
 0x129   :  { %3082 = vmatpush3.msra.mxu0 %v1199_v1  ;;  %1352 = vmatprep.subr.mxu1 %v3433_v34  ;;  %v564_v1 = vsub.s32 3, %v5233_v11 }
 0x12a   :  { %3083 = vmatprep.subr.mxu0 %v1214_v2  ;;  %1353 = vmatpush1.msra.mxu1 %v1231_v46  ;;  %v561_v2 = vrot.slane %v5239_v14, %v560_v62 }
 0x12b   :  { %3084 = vmatpush3.msra.mxu0 %v1198_v3  ;;  %1354 = vmatprep.subr.mxu1 %v3433_v34 }
 0x12c   :  { %3085 = vmatprep.subr.mxu0 %v1213_v4  ;;  %1355 = vmatpush1.msra.mxu1 %v1230_v51  ;;  %v565_v4 = vrot.slane %v5239_v14, %v564_v1  ;;  %v5341_v1 = vld [vmem:[%s5627_s4 + $0x10] sm:$0xff] }
 0x12d   :  { %3086 = vmatpush3.msra.mxu0 %v1197_v5  ;;  %1356 = vmatprep.subr.mxu1 %v3433_v34 }
 0x12e   :  { %3087 = vmatprep.subr.mxu0 %v1212_v6  ;;  %1357 = vmatpush1.msra.mxu1 %v1229_v53 }
 0x12f   :  { %3088 = vmatpush3.msra.mxu0 %v1196_v7  ;;  %1358 = vmatprep.subr.mxu1 %v3433_v34 }
 0x130   :  { %3089 = vmatprep.subr.mxu0 %v1211_v8  ;;  %1359 = vmatpush1.msra.mxu1 %v1228_v57 }
 0x131   :  { %3090 = vmatpush3.msra.mxu0 %v1195_v9  ;;  %1360 = vmatprep.subr.mxu1 %v3433_v34 }
 0x132   :  { %1361 = vmatpush1.msra.mxu1 %v1227_v59 }
 0x133   :  { %1392 = vmatprep.subr.mxu1 %v3433_v34 }
 0x134   :  { %1393 = vmatpush2.msra.mxu1 %v1243_v61 }
 0x135   :  { %3188 = vmatprep.subr.mxu1 %v3433_v34 }
 0x140   :  { %v642_v20 = vpop.f32.mrf.mxu0 }
 0x141   :  { %v643_v32 = vadd.f32 %v642_v20, %v553_v17 }
 0x142   :  { %v644_v23 = vpop.f32.mrf.mxu0 }
 0x143   :  { %v719_v24 = vpop.f32.mrf.mxu1  ;;  %v645_v36 = vadd.f32 %v644_v23, %v557_v19 }
 0x144   :  { %v720_v42 = vadd.f32 %v719_v24, %v643_v32 }
 0x145   :  { %v721_v26 = vpop.f32.mrf.mxu1 }
 0x146   :  { %v722_v44 = vadd.f32 %v721_v26, %v645_v36 }
 0x147   :  { %v790_v28 = vpop.f32.mrf.mxu0 }
 0x148   :  { %v791_v30 = vadd.f32 %v790_v28, %v714_v27 }
 0x149   :  { %v867_v33 = vpop.f32.mrf.mxu1  ;;  %v792_v35 = vpop.f32.mrf.mxu0 }
 0x14a   :  { %v793_v37 = vadd.f32 %v792_v35, %v716_v29  ;;  %v868_v38 = vadd.f32 %v867_v33, %v791_v30 }
 0x14b   :  { %v869_v39 = vpop.f32.mrf.mxu1 }
 0x14c   :  { %v870_v40 = vadd.f32 %v869_v39, %v793_v37  ;;  %v1186_v47 = vmax.f32 %v868_v38, 0.0  ;;  %v1408_v39 = vld [vmem:[%s5627_s4 + $0x30] sm:$0xff] }
 0x14d   :  { %v796_v43 = vpop.f32.mrf.mxu0  ;;  %3181 = vmatprep.subr.mxu0 %v1408_v39 }
 0x14e   :  { %v1187_v45 = vmax.f32 %v870_v40, 0.0  ;;  %v797_v48 = vadd.f32 %v796_v43, %v720_v42  ;;  %v1407_v40 = vld [vmem:[%s5627_s4 + $0x28] sm:$0xff]  ;;  %v5304_v43 = vld [vmem:[%s5627_s4 + $0x40] sm:$0xff] }
 0x14f   :  { %v798_v49 = vpop.f32.mrf.mxu0  ;;  %v5294_v42 = vld [vmem:[%s5627_s4 + $0x48] sm:$0xff] }
 0x150   :  { %v799_v50 = vadd.f32 %v798_v49, %v722_v44  ;;  %1319 = vmatprep.mubr.f32.mxu0 %v1187_v45  ;;  %v873_v52 = vpop.f32.mrf.mxu1  ;;  %v5311_v44 = vld [vmem:[%s5627_s4 + $0x38] sm:$0xff] }
 0x151   :  { %1320 = vmatmul.mubr.f32.vlgmr.msra.gmra.mxu0 %v1186_v47  ;;  %v874_v54 = vadd.f32 %v873_v52, %v797_v48 }
 0x152   :  { %v875_v55 = vpop.f32.mrf.mxu1  ;;  %3182 = vmatpush3.msra.mxu0 %v1408_v39  ;;  %v5400_v39 = vld [vmem:[%s5627_s4 + $0x20] ss:$0 sm:$0xff] }
 0x153   :  { %v876_v56 = vadd.f32 %v875_v55, %v799_v50  ;;  %v1190_v60 = vmax.f32 %v874_v54, 0.0  ;;  %3183 = vmatprep.subr.mxu0 %v1407_v40  ;;  %v3028_v50 = vld [vmem:[%s5627_s4 + $0x22] ss:$0 sm:$0xff] }
 0x154   :  { %3184 = vmatpush3.msra.mxu0 %v1407_v40 }
 0x155   :  { %v1191_v58 = vmax.f32 %v876_v56, 0.0  ;;  %3199 = vmatprep.subr.mxu0 %v3433_v34 }
 0x157   :  { %1324 = vmatprep.mubr.f32.mxu0 %v1191_v58 }
 0x158   :  { %1325 = vmatmul.mubr.f32.gmra.mxu0 %v1190_v60 }
 0x18b   :  { %v944_v63 = vpop.f32.mrf.mxu0 }
 0x18c   :  { %v945_v7 = vadd.f32 %v944_v63, %v561_v2 }
 0x18d   :  { %v1021_v0 = vpop.f32.mrf.mxu1  ;;  %v946_v3 = vpop.f32.mrf.mxu0 }
 0x18e   :  { %v947_v9 = vadd.f32 %v946_v3, %v565_v4  ;;  %v1022_v13 = vadd.f32 %v1021_v0, %v945_v7  ;;  %v5336_v0 = vld [vmem:[%s5627_s4 + $0x18] sm:$0xff]  ;;  %v5355_v3 = vld [vmem:[%s5627_s4] sm:$0xff] }
 0x18f   :  { %v1023_v5 = vpop.f32.mrf.mxu1 }
 0x190   :  { %v1024_v18 = vadd.f32 %v1023_v5, %v947_v9 }
 0x1c7   :  { %v950_v6 = vpop.f32.mrf.mxu0 }
 0x1c8   :  { %v951_v15 = vadd.f32 %v950_v6, %v561_v2  ;;  %v5348_v2 = vld [vmem:[%s5627_s4 + $0x8] sm:$0xff] }
 0x1c9   :  { %v952_v12 = vpop.f32.mrf.mxu0 }
 0x1ca   :  { %v1027_v8 = vpop.f32.mrf.mxu1  ;;  %v953_v19 = vadd.f32 %v952_v12, %v565_v4 }
 0x1cb   :  { %v1028_v22 = vadd.f32 %v1027_v8, %v951_v15 }
 0x1cc   :  { %v1029_v10 = vpop.f32.mrf.mxu1 }
 0x1cd   :  { %v1030_v26 = vadd.f32 %v1029_v10, %v953_v19 }
 0x1cf   :  { %v1098_v16 = vpop.f32.mrf.mxu0 }
 0x1d0   :  { %v1175_v17 = vpop.f32.mrf.mxu1  ;;  %v1099_v20 = vadd.f32 %v1098_v16, %v1022_v13 }
 0x1d1   :  { %v1100_v11 = vpop.f32.mrf.mxu0 }
 0x1d2   :  { %v1177_v21 = vpop.f32.mrf.mxu1  ;;  %v1101_v23 = vadd.f32 %v1100_v11, %v1024_v18  ;;  %v1176_v24 = vadd.f32 %v1175_v17, %v1099_v20 }
 0x1d3   :  { %v1104_v14 = vpop.f32.mrf.mxu0 }
 0x1d4   :  { %v1181_v25 = vpop.f32.mrf.mxu1  ;;  %v1178_v27 = vadd.f32 %v1177_v21, %v1101_v23  ;;  %v1105_v28 = vadd.f32 %v1104_v14, %v1028_v22  ;;  %v1188_v32 = vmax.f32 %v1176_v24, 0.0 }
 0x1d5   :  { %v1106_v29 = vpop.f32.mrf.mxu0 }
 0x1d6   :  { %v1189_v30 = vmax.f32 %v1178_v27, 0.0  ;;  %v1107_v31 = vadd.f32 %v1106_v29, %v1030_v26  ;;  %v1182_v33 = vadd.f32 %v1181_v25, %v1105_v28  ;;  %v1183_v35 = vpop.f32.mrf.mxu1 }
 0x1d8   :  { %v1184_v36 = vadd.f32 %v1183_v35, %v1107_v31  ;;  %3029 = vmatprep.mubr.msk.f32.mxu1 %vm1248_vm0, %v1189_v30  ;;  %v1192_v38 = vmax.f32 %v1182_v33, 0.0 }
 0x1d9   :  { %1395 = vmatmul.mubr.f32.vlgmr.msra.gmra.mxu1 %v1188_v32  ;;  %v5378_v32 = vld [vmem:[%s5627_s4 + $0x21] ss:$0 sm:$0xff]  ;;  %s3437_s4 = smov 64  }
 0x1da   :  { %v1193_v37 = vmax.f32 %v1184_v36, 0.0  ;;  %3189 = vmatpush3.msra.mxu1 %v5289_v41 }
 0x1db   :  { %3190 = vmatprep.subr.mxu1 %v3433_v34 }
 0x1dc   :  { %3030 = vmatprep.mubr.msk.f32.mxu1 %vm1248_vm0, %v1193_v37  ;;  %3191 = vmatpush3.msra.mxu1 %v5294_v42 }
 0x1dd   :  { %1400 = vmatmul.mubr.f32.gmra.mxu1 %v1192_v38  ;;  %3192 = vmatprep.subr.mxu1 %v3433_v34 }
 0x1de   :  { %3196 = vmatprep.mubr.msk.f32.mxu1 %vm3434_vm1, %v3433_v34  ;;  %3193 = vmatpush3.msra.mxu1 %v5304_v43 }
 0x1df   :  { %3194 = vmatprep.subr.mxu1 %v3433_v34 }
 0x1e0   :  { %3195 = vmatpush3.msra.mxu1 %v5311_v44 }
 0x1e1   :  { %3197 = vmatmul.mubr.f32.vlgmr.msra.gmra.mxu1 %v3433_v34  ;;  %3210 = vmatprep.subr.mxu1 %v3433_v34 }
 0x1e2   :  { %3211 = vmatpush3.msra.mxu1 %v5289_v41  ;;  %3218 = vmatprep.mubr.msk.f32.mxu1 %vm3434_vm1, %v3433_v34 }
 0x1e3   :  { %3212 = vmatprep.subr.mxu1 %v3433_v34 }
 0x1e4   :  { %3213 = vmatpush3.msra.mxu1 %v5294_v42 }
 0x1e5   :  { %3214 = vmatprep.subr.mxu1 %v3433_v34 }
 0x1e6   :  { %3215 = vmatpush3.msra.mxu1 %v5304_v43 }
 0x1e7   :  { %3216 = vmatprep.subr.mxu1 %v3433_v34 }
 0x1e8   :  { %3217 = vmatpush3.msra.mxu1 %v5311_v44 }
 0x1e9   :  { %3232 = vmatprep.subr.mxu1 %v3433_v34 }
 0x211   :  { %v3091_v45 = vpop.f32.mrf.mxu0 }
 0x213   :  { %v3092_v46 = vpop.f32.mrf.mxu0 }
 0x214   :  { %v3093_v48 = vadd.f32 %v3092_v46, %v3091_v45 }
 0x216   :  { %v1322_v52 = vadd.f32 %v3093_v48, %v3028_v50 }
 0x218   :  { %v3094_v47 = vpop.f32.mrf.mxu0 }
 0x21a   :  { %v3095_v49 = vpop.f32.mrf.mxu0 }
 0x21b   :  { %v3096_v51 = vadd.f32 %v3095_v49, %v3094_v47 }
 0x21d   :  { %v1327_v57 = vadd.f32 %v3096_v51, %v3028_v50 }
 0x299   :  { %v1396_v53 = vpop.f32.mrf.mxu1 }
 0x29a   :  { %v1397_v54 = vadd.f32 %v1396_v53, %v1322_v52 }
 0x29b   :  { %v1398_v55 = vpop.f32.mrf.mxu1 }
 0x29c   :  { %v1405_v56 = vmax.f32 %v1397_v54, 0.0 }
 0x29d   :  { %v1401_v58 = vpop.f32.mrf.mxu1 }
 0x29e   :  { %v1402_v59 = vadd.f32 %v1401_v58, %v1327_v57  ;;  %3185 = vmatprep.mubr.msk.f32.mxu0 %vm1409_vm2, %v1405_v56 }
 0x29f   :  { %v1403_v60 = vpop.f32.mrf.mxu1 }
 0x2a0   :  { %v1406_v61 = vmax.f32 %v1402_v59, 0.0 }
 0x2a1   :  { %v1622_v62 = vpop.f32.mrf.mxu1 }
 0x2a2   :  { %3186 = vmatmul.mubr.msk.f32.vlgmr.msra.gmra.mxu0 %vm1409_vm2, %v1406_v61 }
 0x2a3   :  { %3207 = vmatprep.mubr.msk.f32.mxu0 %vm3434_vm1, %v3433_v34  ;;  %v3198_v63 = vpop.f32.mrf.mxu1  ;;  %3200 = vmatpush3.msra.mxu0 %v5336_v0 }
 0x2a4   :  { %3201 = vmatprep.subr.mxu0 %v3433_v34 }
 0x2a5   :  { %3202 = vmatpush3.msra.mxu0 %v5341_v1 }
 0x2a6   :  { %3203 = vmatprep.subr.mxu0 %v3433_v34 }
 0x2a7   :  { %3204 = vmatpush3.msra.mxu0 %v5348_v2 }
 0x2a8   :  { %3205 = vmatprep.subr.mxu0 %v3433_v34 }
 0x2a9   :  { %3206 = vmatpush3.msra.mxu0 %v5355_v3 }
 0x2aa   :  { %3221 = vmatprep.subr.mxu0 %v3433_v34 }
 0x362   :  { %v3187_v4 = vpop.f32.mrf.mxu0 }
 0x363   :  { %v1492_v5 = vrot.slane %v3187_v4, 7  ;;  %v1509_v7 = vrot.slane %v3187_v4, 3  ;;  %v1497_v12 = vrot.slane %v3187_v4, 6  ;;  %v1513_v17 = vrot.slane %v3187_v4, 2 }
 0x364   :  { %v1482_v6 = vpop.f32.mrf.mxu0  ;;  %v1501_v19 = vrot.slane %v3187_v4, 5  ;;  %v1517_v24 = vrot.slane %v3187_v4, 1  ;;  %v1505_v25 = vrot.slane %v3187_v4, 4 }
 0x365   :  { %v1495_v8 = vrot.slane %v1482_v6, 7  ;;  %v1507_v9 = vrot.slane %v1482_v6, 4  ;;  %v1511_v10 = vrot.slane %v1482_v6, 3  ;;  %v1522_v13 = vsel %vm1521_vm3, %v1482_v6, %v1492_v5 }
 0x366   :  { %v1499_v15 = vrot.slane %v1482_v6, 6  ;;  %v1515_v11 = vrot.slane %v1482_v6, 2  ;;  %v1503_v22 = vrot.slane %v1482_v6, 5  ;;  %v1519_v27 = vrot.slane %v1482_v6, 1 }
 0x367   :  { %v1524_v16 = vsel %vm1523_vm4, %v1522_v13, %v1495_v8  ;;  %v1535_v18 = vsel %vm1521_vm3, %v1507_v9, %v1509_v7 }
 0x368   :  { %v1526_v20 = vsel %vm1525_vm5, %v1524_v16, %v1497_v12  ;;  %v1536_v21 = vsel %vm1523_vm4, %v1535_v18, %v1511_v10 }
 0x369   :  { %v1528_v23 = vsel %vm1527_vm6, %v1526_v20, %v1499_v15  ;;  %v1537_v14 = vsel %vm1525_vm5, %v1536_v21, %v1513_v17 }
 0x36a   :  { %v1530_v26 = vsel %vm1529_vm7, %v1528_v23, %v1501_v19  ;;  %v1538_v28 = vsel %vm1527_vm6, %v1537_v14, %v1515_v11 }
 0x36b   :  { %v1532_v29 = vsel %vm1531_vm8, %v1530_v26, %v1503_v22  ;;  %v1539_v30 = vsel %vm1529_vm7, %v1538_v28, %v1517_v24 }
 0x36c   :  { %v5373_v31 = vsel %vm1533_vm9, %v1532_v29, %v1505_v25  ;;  %v1540_v33 = vsel %vm1531_vm8, %v1539_v30, %v1519_v27 }
 0x36d   :  { %v1626_v35 = vadd.f32 %v1622_v62, %v5373_v31  ;;  %v5383_v36 = vsel %vm1533_vm9, %v1540_v33, %v3187_v4 }
 0x36f   :  { %v1631_v37 = vadd.f32 %v5378_v32, %v1626_v35 }
 0x371   :  { %3369 = vtanh.f32 %v1631_v37 }
 0x37e   :  { %v3370_v38 = vpop.eup %3369 }
 0x37f   :  { %3208 = vmatmul.mubr.msk.f32.vlgmr.msra.gmra.mxu0 %vm1552_vm10, %v3370_v38 }
 0x380   :  { %3222 = vmatpush3.msra.mxu0 %v5336_v0  ;;  %3229 = vmatprep.mubr.msk.f32.mxu0 %vm3434_vm1, %v3433_v34 }
 0x381   :  { %3223 = vmatprep.subr.mxu0 %v3433_v34 }
 0x382   :  { %3224 = vmatpush3.msra.mxu0 %v5341_v1 }
 0x383   :  { %3225 = vmatprep.subr.mxu0 %v3433_v34 }
 0x384   :  { %3226 = vmatpush3.msra.mxu0 %v5348_v2 }
 0x385   :  { %3227 = vmatprep.subr.mxu0 %v3433_v34 }
 0x386   :  { %3228 = vmatpush3.msra.mxu0 %v5355_v3 }
 0x387   :  { %3243 = vmatprep.subr.mxu0 %v3433_v34 }
 0x43f   :  { %v1706_v40 = vpop.f32.mrf.mxu0 }
 0x440   :  { %v1707_v45 = vadd.f32 %v5400_v39, %v1706_v40 }
 0x441   :  { %v3209_v46 = vpop.f32.mrf.mxu0 }
 0x442   :  { %1711 = vrot.lane.b32.xlu0 %v1707_v45, %s3435_s20 }
 0x446   :  { %1727 = vrot.lane.b32.xlu0 %v1707_v45, %s3436_s21 }
 0x4b4   :  { %v1712_v47 = vpop.permute.xlu0 %1711 }
 0x4b5   :  { %v1714_v48 = vadd.f32 %v1712_v47, %v1707_v45 }
 0x4b7   :  { %v3036_v49 = vmul.f32 -1.442695, %v1714_v48 }
 0x4b8   :  { %v1728_v54 = vpop.permute.xlu0 %1727 }
 0x4b9   :  { %3371 = vpow2.f32 %v3036_v49 }
 0x4c6   :  { %v3372_v50 = vpop.eup %3371 }
 0x4c7   :  { %v1718_v51 = vadd.f32 1.0, %v3372_v50 }
 0x4c9   :  { %3373 = vrcp.f32 %v1718_v51 }
 0x4d6   :  { %v3374_v52 = vpop.eup %3373 }
 0x4d7   :  { %v1721_v53 = vsub.f32 1.0, %v3374_v52  ;;  %v1730_v55 = vmul.f32 %v3374_v52, %v1728_v54 }
 0x4d9   :  { %1723 = vrot.lane.b32.xlu1 %v1721_v53, %s3437_s4 }
 0x4dd   :  { %1732 = vrot.lane.b32.xlu1 %v1730_v55, %s3437_s4 }
 0x54b   :  { %v1724_v56 = vpop.permute.xlu1 %1723 }
 0x54c   :  { %v1726_v57 = vmul.f32 %v1724_v56, %v1707_v45 }
 0x54f   :  { %v1733_v58 = vpop.permute.xlu1 %1732 }
 0x550   :  { %v5407_v59 = vadd.f32 %v1733_v58, %v1726_v57 }
 0x552   :  { %3219 = vmatmul.mubr.msk.f32.vlgmr.msra.gmra.mxu1 %vm1552_vm10, %v5407_v59 }
 0x553   :  { %3233 = vmatpush3.msra.mxu1 %v5289_v41  ;;  %3240 = vmatprep.mubr.msk.f32.mxu1 %vm3434_vm1, %v3433_v34 }
 0x554   :  { %3234 = vmatprep.subr.mxu1 %v3433_v34 }
 0x555   :  { %3235 = vmatpush3.msra.mxu1 %v5294_v42 }
 0x556   :  { %3236 = vmatprep.subr.mxu1 %v3433_v34 }
 0x557   :  { %3237 = vmatpush3.msra.mxu1 %v5304_v43 }
 0x558   :  { %3238 = vmatprep.subr.mxu1 %v3433_v34 }
 0x559   :  { %3239 = vmatpush3.msra.mxu1 %v5311_v44 }
 0x55a   :  { %3254 = vmatprep.subr.mxu1 %v3433_v34 }
 0x612   :  { %v1805_v60 = vpop.f32.mrf.mxu1 }
 0x613   :  { %v1810_v61 = vrot.slane %v1805_v60, 6 }
 0x614   :  { %v3220_v62 = vpop.f32.mrf.mxu1 }
 0x615   :  { %v1812_v63 = vadd.f32 %v1810_v61, %v5373_v31 }
 0x617   :  { %v1813_v4 = vadd.f32 %v5378_v32, %v1812_v63 }
 0x619   :  { %3375 = vtanh.f32 %v1813_v4 }
 0x626   :  { %v3376_v5 = vpop.eup %3375 }
 0x627   :  { %v1816_v6 = vrot.slane %v3376_v5, 2 }
 0x629   :  { %3230 = vmatmul.mubr.msk.f32.vlgmr.msra.gmra.mxu0 %vm1552_vm10, %v1816_v6 }
 0x62a   :  { %3244 = vmatpush3.msra.mxu0 %v5336_v0  ;;  %3251 = vmatprep.mubr.msk.f32.mxu0 %vm3434_vm1, %v3433_v34 }
 0x62b   :  { %3245 = vmatprep.subr.mxu0 %v3433_v34 }
 0x62c   :  { %3246 = vmatpush3.msra.mxu0 %v5341_v1 }
 0x62d   :  { %3247 = vmatprep.subr.mxu0 %v3433_v34 }
 0x62e   :  { %3248 = vmatpush3.msra.mxu0 %v5348_v2 }
 0x62f   :  { %3249 = vmatprep.subr.mxu0 %v3433_v34 }
 0x630   :  { %3250 = vmatpush3.msra.mxu0 %v5355_v3 }
 0x631   :  { %3265 = vmatprep.subr.mxu0 %v3433_v34 }
 0x6e9   :  { %v1885_v7 = vpop.f32.mrf.mxu0 }
 0x6ea   :  { %v1886_v8 = vadd.f32 %v5400_v39, %v1885_v7 }
 0x6eb   :  { %v3231_v9 = vpop.f32.mrf.mxu0 }
 0x6ec   :  { %1906 = vrot.lane.b32.xlu1 %v1886_v8, %s3436_s21  ;;  %1890 = vrot.lane.b32.xlu0 %v1886_v8, %s3435_s20 }
 0x75e   :  { %v1891_v10 = vpop.permute.xlu0 %1890  ;;  %v1907_v18 = vpop.permute.xlu1 %1906 }
 0x75f   :  { %v1893_v12 = vadd.f32 %v1891_v10, %v1886_v8 }
 0x761   :  { %v3039_v13 = vmul.f32 -1.442695, %v1893_v12 }
 0x763   :  { %3377 = vpow2.f32 %v3039_v13 }
 0x770   :  { %v3378_v15 = vpop.eup %3377 }
 0x771   :  { %v1897_v16 = vadd.f32 1.0, %v3378_v15 }
 0x773   :  { %3379 = vrcp.f32 %v1897_v16 }
 0x780   :  { %v3380_v17 = vpop.eup %3379 }
 0x781   :  { %v1909_v19 = vmul.f32 %v3380_v17, %v1907_v18  ;;  %v1900_v20 = vsub.f32 1.0, %v3380_v17 }
 0x783   :  { %1911 = vrot.lane.b32.xlu1 %v1909_v19, %s3437_s4  ;;  %1902 = vrot.lane.b32.xlu0 %v1900_v20, %s3437_s4 }
 0x7f5   :  { %v1903_v11 = vpop.permute.xlu0 %1902  ;;  %v1912_v22 = vpop.permute.xlu1 %1911 }
 0x7f6   :  { %v1905_v21 = vmul.f32 %v1903_v11, %v1886_v8 }
 0x7f8   :  { %v5439_v23 = vadd.f32 %v1912_v22, %v1905_v21 }
 0x7fa   :  { %3241 = vmatmul.mubr.msk.f32.vlgmr.msra.gmra.mxu1 %vm1552_vm10, %v5439_v23 }
 0x7fb   :  { %3255 = vmatpush3.msra.mxu1 %v5289_v41  ;;  %3262 = vmatprep.mubr.msk.f32.mxu1 %vm3434_vm1, %v3433_v34 }
 0x7fc   :  { %3256 = vmatprep.subr.mxu1 %v3433_v34 }
 0x7fd   :  { %3257 = vmatpush3.msra.mxu1 %v5294_v42 }
 0x7fe   :  { %3258 = vmatprep.subr.mxu1 %v3433_v34 }
 0x7ff   :  { %3259 = vmatpush3.msra.mxu1 %v5304_v43 }
 0x800   :  { %3260 = vmatprep.subr.mxu1 %v3433_v34 }
 0x801   :  { %3261 = vmatpush3.msra.mxu1 %v5311_v44 }
 0x802   :  { %3276 = vmatprep.subr.mxu1 %v3433_v34 }
 0x8ba   :  { %v1984_v24 = vpop.f32.mrf.mxu1 }
 0x8bb   :  { %v1989_v14 = vrot.slane %v1984_v24, 4 }
 0x8bc   :  { %v3242_v25 = vpop.f32.mrf.mxu1 }
 0x8bd   :  { %v1991_v26 = vadd.f32 %v1989_v14, %v5373_v31 }
 0x8bf   :  { %v1992_v27 = vadd.f32 %v5378_v32, %v1991_v26 }
 0x8c1   :  { %3381 = vtanh.f32 %v1992_v27 }
 0x8ce   :  { %v3382_v28 = vpop.eup %3381 }
 0x8cf   :  { %v1995_v29 = vrot.slane %v3382_v28, 4 }
 0x8d1   :  { %3252 = vmatmul.mubr.msk.f32.vlgmr.msra.gmra.mxu0 %vm1552_vm10, %v1995_v29 }
 0x8d2   :  { %3266 = vmatpush3.msra.mxu0 %v5336_v0  ;;  %3273 = vmatprep.mubr.msk.f32.mxu0 %vm3434_vm1, %v3433_v34 }
 0x8d3   :  { %3267 = vmatprep.subr.mxu0 %v3433_v34 }
 0x8d4   :  { %3268 = vmatpush3.msra.mxu0 %v5341_v1 }
 0x8d5   :  { %3269 = vmatprep.subr.mxu0 %v3433_v34 }
 0x8d6   :  { %3270 = vmatpush3.msra.mxu0 %v5348_v2 }
 0x8d7   :  { %3271 = vmatprep.subr.mxu0 %v3433_v34 }
 0x8d8   :  { %3272 = vmatpush3.msra.mxu0 %v5355_v3 }
 0x8d9   :  { %3287 = vmatprep.subr.mxu0 %v3433_v34 }
 0x991   :  { %v2064_v30 = vpop.f32.mrf.mxu0 }
 0x992   :  { %v2065_v33 = vadd.f32 %v5400_v39, %v2064_v30 }
 0x993   :  { %v3253_v35 = vpop.f32.mrf.mxu0 }
 0x994   :  { %2085 = vrot.lane.b32.xlu1 %v2065_v33, %s3436_s21  ;;  %2069 = vrot.lane.b32.xlu0 %v2065_v33, %s3435_s20 }
 0xa06   :  { %v2070_v37 = vpop.permute.xlu0 %2069  ;;  %v2086_v48 = vpop.permute.xlu1 %2085 }
 0xa07   :  { %v2072_v38 = vadd.f32 %v2070_v37, %v2065_v33 }
 0xa09   :  { %v3042_v40 = vmul.f32 -1.442695, %v2072_v38 }
 0xa0b   :  { %3383 = vpow2.f32 %v3042_v40 }
 0xa18   :  { %v3384_v45 = vpop.eup %3383 }
 0xa19   :  { %v2076_v46 = vadd.f32 1.0, %v3384_v45 }
 0xa1b   :  { %3385 = vrcp.f32 %v2076_v46 }
 0xa28   :  { %v3386_v47 = vpop.eup %3385 }
 0xa29   :  { %v2088_v49 = vmul.f32 %v3386_v47, %v2086_v48  ;;  %v2079_v50 = vsub.f32 1.0, %v3386_v47 }
 0xa2b   :  { %2090 = vrot.lane.b32.xlu1 %v2088_v49, %s3437_s4  ;;  %2081 = vrot.lane.b32.xlu0 %v2079_v50, %s3437_s4 }
 0xa9d   :  { %v2082_v51 = vpop.permute.xlu0 %2081  ;;  %v2091_v53 = vpop.permute.xlu1 %2090 }
 0xa9e   :  { %v2084_v52 = vmul.f32 %v2082_v51, %v2065_v33 }
 0xaa0   :  { %v5471_v54 = vadd.f32 %v2091_v53, %v2084_v52 }
 0xaa2   :  { %3263 = vmatmul.mubr.msk.f32.vlgmr.msra.gmra.mxu1 %vm1552_vm10, %v5471_v54 }
 0xaa3   :  { %3277 = vmatpush3.msra.mxu1 %v5289_v41  ;;  %3284 = vmatprep.mubr.msk.f32.mxu1 %vm3434_vm1, %v3433_v34 }
 0xaa4   :  { %3278 = vmatprep.subr.mxu1 %v3433_v34 }
 0xaa5   :  { %3279 = vmatpush3.msra.mxu1 %v5294_v42 }
 0xaa6   :  { %3280 = vmatprep.subr.mxu1 %v3433_v34 }
 0xaa7   :  { %3281 = vmatpush3.msra.mxu1 %v5304_v43 }
 0xaa8   :  { %3282 = vmatprep.subr.mxu1 %v3433_v34 }
 0xaa9   :  { %3283 = vmatpush3.msra.mxu1 %v5311_v44 }
 0xaaa   :  { %3298 = vmatprep.subr.mxu1 %v3433_v34 }
 0xb62   :  { %v2163_v55 = vpop.f32.mrf.mxu1 }
 0xb63   :  { %v2168_v56 = vrot.slane %v2163_v55, 2 }
 0xb64   :  { %v3264_v57 = vpop.f32.mrf.mxu1 }
 0xb65   :  { %v2170_v58 = vadd.f32 %v2168_v56, %v5373_v31 }
 0xb67   :  { %v2171_v60 = vadd.f32 %v5378_v32, %v2170_v58 }
 0xb69   :  { %3387 = vtanh.f32 %v2171_v60 }
 0xb76   :  { %v3388_v61 = vpop.eup %3387 }
 0xb77   :  { %v2174_v62 = vrot.slane %v3388_v61, 6 }
 0xb79   :  { %3274 = vmatmul.mubr.msk.f32.vlgmr.msra.gmra.mxu0 %vm1552_vm10, %v2174_v62 }
 0xb7a   :  { %3288 = vmatpush3.msra.mxu0 %v5336_v0  ;;  %3295 = vmatprep.mubr.msk.f32.mxu0 %vm3434_vm1, %v3433_v34 }
 0xb7b   :  { %3289 = vmatprep.subr.mxu0 %v3433_v34 }
 0xb7c   :  { %3290 = vmatpush3.msra.mxu0 %v5341_v1 }
 0xb7d   :  { %3291 = vmatprep.subr.mxu0 %v3433_v34 }
 0xb7e   :  { %3292 = vmatpush3.msra.mxu0 %v5348_v2 }
 0xb7f   :  { %3293 = vmatprep.subr.mxu0 %v3433_v34 }
 0xb80   :  { %3294 = vmatpush3.msra.mxu0 %v5355_v3 }
 0xb81   :  { %3309 = vmatprep.subr.mxu0 %v3433_v34 }
 0xc39   :  { %v2243_v31 = vpop.f32.mrf.mxu0 }
 0xc3a   :  { %v2244_v63 = vadd.f32 %v5400_v39, %v2243_v31 }
 0xc3b   :  { %v3275_v4 = vpop.f32.mrf.mxu0 }
 0xc3c   :  { %2264 = vrot.lane.b32.xlu1 %v2244_v63, %s3436_s21  ;;  %2248 = vrot.lane.b32.xlu0 %v2244_v63, %s3435_s20 }
 0xcae   :  { %v2249_v5 = vpop.permute.xlu0 %2248  ;;  %v2265_v12 = vpop.permute.xlu1 %2264 }
 0xcaf   :  { %v2251_v6 = vadd.f32 %v2249_v5, %v2244_v63 }
 0xcb1   :  { %v3045_v7 = vmul.f32 -1.442695, %v2251_v6 }
 0xcb3   :  { %3389 = vpow2.f32 %v3045_v7 }
 0xcc0   :  { %v3390_v8 = vpop.eup %3389 }
 0xcc1   :  { %v2255_v9 = vadd.f32 1.0, %v3390_v8 }
 0xcc3   :  { %3391 = vrcp.f32 %v2255_v9 }
 0xcd0   :  { %v3392_v10 = vpop.eup %3391 }
 0xcd1   :  { %v2267_v13 = vmul.f32 %v3392_v10, %v2265_v12  ;;  %v2258_v15 = vsub.f32 1.0, %v3392_v10 }
 0xcd3   :  { %2269 = vrot.lane.b32.xlu1 %v2267_v13, %s3437_s4  ;;  %2260 = vrot.lane.b32.xlu0 %v2258_v15, %s3437_s4 }
 0xd45   :  { %v2261_v16 = vpop.permute.xlu0 %2260  ;;  %v2270_v18 = vpop.permute.xlu1 %2269 }
 0xd46   :  { %v2263_v17 = vmul.f32 %v2261_v16, %v2244_v63 }
 0xd48   :  { %v5503_v19 = vadd.f32 %v2270_v18, %v2263_v17 }
 0xd4a   :  { %3285 = vmatmul.mubr.msk.f32.vlgmr.msra.gmra.mxu1 %vm1552_vm10, %v5503_v19 }
 0xd4b   :  { %3299 = vmatpush3.msra.mxu1 %v5289_v41  ;;  %3306 = vmatprep.mubr.msk.f32.mxu1 %vm3434_vm1, %v3433_v34 }
 0xd4c   :  { %3300 = vmatprep.subr.mxu1 %v3433_v34 }
 0xd4d   :  { %3301 = vmatpush3.msra.mxu1 %v5294_v42 }
 0xd4e   :  { %3302 = vmatprep.subr.mxu1 %v3433_v34 }
 0xd4f   :  { %3303 = vmatpush3.msra.mxu1 %v5304_v43 }
 0xd50   :  { %3304 = vmatprep.subr.mxu1 %v3433_v34 }
 0xd51   :  { %3305 = vmatpush3.msra.mxu1 %v5311_v44 }
 0xd52   :  { %3320 = vmatprep.subr.mxu1 %v3433_v34 }
 0xe0a   :  { %v2342_v20 = vpop.f32.mrf.mxu1 }
 0xe0b   :  { %v2346_v11 = vadd.f32 %v2342_v20, %v5383_v36 }
 0xe0c   :  { %v3286_v21 = vpop.f32.mrf.mxu1 }
 0xe0d   :  { %v2347_v22 = vadd.f32 %v5378_v32, %v2346_v11 }
 0xe0f   :  { %3393 = vtanh.f32 %v2347_v22 }
 0xe1c   :  { %v3394_v24 = vpop.eup %3393 }
 0xe1d   :  { %3296 = vmatmul.mubr.msk.f32.vlgmr.msra.gmra.mxu0 %vm1552_vm10, %v3394_v24 }
 0xe1e   :  { %3310 = vmatpush3.msra.mxu0 %v5336_v0  ;;  %3317 = vmatprep.mubr.msk.f32.mxu0 %vm3434_vm1, %v3433_v34 }
 0xe1f   :  { %3311 = vmatprep.subr.mxu0 %v3433_v34 }
 0xe20   :  { %3312 = vmatpush3.msra.mxu0 %v5341_v1 }
 0xe21   :  { %3313 = vmatprep.subr.mxu0 %v3433_v34 }
 0xe22   :  { %3314 = vmatpush3.msra.mxu0 %v5348_v2 }
 0xe23   :  { %3315 = vmatprep.subr.mxu0 %v3433_v34 }
 0xe24   :  { %3316 = vmatpush3.msra.mxu0 %v5355_v3 }
 0xe25   :  { %3331 = vmatprep.subr.mxu0 %v3433_v34 }
 0xedd   :  { %v2418_v14 = vpop.f32.mrf.mxu0 }
 0xede   :  { %v2419_v25 = vadd.f32 %v5400_v39, %v2418_v14 }
 0xedf   :  { %v3297_v26 = vpop.f32.mrf.mxu0 }
 0xee0   :  { %2439 = vrot.lane.b32.xlu1 %v2419_v25, %s3436_s21  ;;  %2423 = vrot.lane.b32.xlu0 %v2419_v25, %s3435_s20 }
 0xf52   :  { %v2424_v27 = vpop.permute.xlu0 %2423  ;;  %v2440_v37 = vpop.permute.xlu1 %2439 }
 0xf53   :  { %v2426_v28 = vadd.f32 %v2424_v27, %v2419_v25 }
 0xf55   :  { %v3048_v29 = vmul.f32 -1.442695, %v2426_v28 }
 0xf57   :  { %3395 = vpow2.f32 %v3048_v29 }
 0xf64   :  { %v3396_v30 = vpop.eup %3395 }
 0xf65   :  { %v2430_v33 = vadd.f32 1.0, %v3396_v30 }
 0xf67   :  { %3397 = vrcp.f32 %v2430_v33 }
 0xf74   :  { %v3398_v35 = vpop.eup %3397 }
 0xf75   :  { %v2442_v38 = vmul.f32 %v3398_v35, %v2440_v37  ;;  %v2433_v40 = vsub.f32 1.0, %v3398_v35 }
 0xf77   :  { %2444 = vrot.lane.b32.xlu1 %v2442_v38, %s3437_s4  ;;  %2435 = vrot.lane.b32.xlu0 %v2433_v40, %s3437_s4 }
 0xfe9   :  { %v2436_v45 = vpop.permute.xlu0 %2435  ;;  %v2445_v47 = vpop.permute.xlu1 %2444 }
 0xfea   :  { %v2438_v46 = vmul.f32 %v2436_v45, %v2419_v25 }
 0xfec   :  { %v5535_v48 = vadd.f32 %v2445_v47, %v2438_v46 }
 0xfee   :  { %3307 = vmatmul.mubr.msk.f32.vlgmr.msra.gmra.mxu1 %vm1552_vm10, %v5535_v48 }
 0xfef   :  { %3321 = vmatpush3.msra.mxu1 %v5289_v41  ;;  %3328 = vmatprep.mubr.msk.f32.mxu1 %vm3434_vm1, %v3433_v34 }
 0xff0   :  { %3322 = vmatprep.subr.mxu1 %v3433_v34 }
 0xff1   :  { %3323 = vmatpush3.msra.mxu1 %v5294_v42 }
 0xff2   :  { %3324 = vmatprep.subr.mxu1 %v3433_v34 }
 0xff3   :  { %3325 = vmatpush3.msra.mxu1 %v5304_v43 }
 0xff4   :  { %3326 = vmatprep.subr.mxu1 %v3433_v34 }
 0xff5   :  { %3327 = vmatpush3.msra.mxu1 %v5311_v44 }
 0xff6   :  { %3342 = vmatprep.subr.mxu1 %v3433_v34 }
0x10ae   :  { %v2517_v49 = vpop.f32.mrf.mxu1 }
0x10af   :  { %v2522_v50 = vrot.slane %v2517_v49, 6 }
0x10b0   :  { %v3308_v51 = vpop.f32.mrf.mxu1 }
0x10b1   :  { %v2524_v52 = vadd.f32 %v2522_v50, %v5383_v36 }
0x10b3   :  { %v2525_v53 = vadd.f32 %v5378_v32, %v2524_v52 }
0x10b5   :  { %3399 = vtanh.f32 %v2525_v53 }
0x10c2   :  { %v3400_v55 = vpop.eup %3399 }
0x10c3   :  { %v2528_v56 = vrot.slane %v3400_v55, 2 }
0x10c5   :  { %3318 = vmatmul.mubr.msk.f32.vlgmr.msra.gmra.mxu0 %vm1552_vm10, %v2528_v56 }
0x10c6   :  { %3332 = vmatpush3.msra.mxu0 %v5336_v0  ;;  %3339 = vmatprep.mubr.msk.f32.mxu0 %vm3434_vm1, %v3433_v34 }
0x10c7   :  { %3333 = vmatprep.subr.mxu0 %v3433_v34 }
0x10c8   :  { %3334 = vmatpush3.msra.mxu0 %v5341_v1 }
0x10c9   :  { %3335 = vmatprep.subr.mxu0 %v3433_v34 }
0x10ca   :  { %3336 = vmatpush3.msra.mxu0 %v5348_v2 }
0x10cb   :  { %3337 = vmatprep.subr.mxu0 %v3433_v34 }
0x10cc   :  { %3338 = vmatpush3.msra.mxu0 %v5355_v3 }
0x10cd   :  { %3353 = vmatprep.subr.mxu0 %v3433_v34 }
0x1185   :  { %v2597_v57 = vpop.f32.mrf.mxu0 }
0x1186   :  { %v2598_v58 = vadd.f32 %v5400_v39, %v2597_v57 }
0x1187   :  { %v3319_v60 = vpop.f32.mrf.mxu0 }
0x1188   :  { %2618 = vrot.lane.b32.xlu1 %v2598_v58, %s3436_s21  ;;  %2602 = vrot.lane.b32.xlu0 %v2598_v58, %s3435_s20 }
0x11fa   :  { %v2603_v61 = vpop.permute.xlu0 %2602  ;;  %v2619_v6 = vpop.permute.xlu1 %2618 }
0x11fb   :  { %v2605_v62 = vadd.f32 %v2603_v61, %v2598_v58 }
0x11fd   :  { %v3051_v31 = vmul.f32 -1.442695, %v2605_v62 }
0x11ff   :  { %3401 = vpow2.f32 %v3051_v31 }
0x120c   :  { %v3402_v63 = vpop.eup %3401 }
0x120d   :  { %v2609_v4 = vadd.f32 1.0, %v3402_v63 }
0x120f   :  { %3403 = vrcp.f32 %v2609_v4 }
0x121c   :  { %v3404_v5 = vpop.eup %3403 }
0x121d   :  { %v2621_v7 = vmul.f32 %v3404_v5, %v2619_v6  ;;  %v2612_v8 = vsub.f32 1.0, %v3404_v5 }
0x121f   :  { %2623 = vrot.lane.b32.xlu1 %v2621_v7, %s3437_s4  ;;  %2614 = vrot.lane.b32.xlu0 %v2612_v8, %s3437_s4 }
0x1291   :  { %v2615_v9 = vpop.permute.xlu0 %2614  ;;  %v2624_v12 = vpop.permute.xlu1 %2623 }
0x1292   :  { %v2617_v10 = vmul.f32 %v2615_v9, %v2598_v58 }
0x1294   :  { %v5567_v13 = vadd.f32 %v2624_v12, %v2617_v10 }
0x1296   :  { %3329 = vmatmul.mubr.msk.f32.vlgmr.msra.gmra.mxu1 %vm1552_vm10, %v5567_v13 }
0x1297   :  { %3343 = vmatpush3.msra.mxu1 %v5289_v41  ;;  %3350 = vmatprep.mubr.msk.f32.mxu1 %vm3434_vm1, %v3433_v34 }
0x1298   :  { %3344 = vmatprep.subr.mxu1 %v3433_v34 }
0x1299   :  { %3345 = vmatpush3.msra.mxu1 %v5294_v42 }
0x129a   :  { %3346 = vmatprep.subr.mxu1 %v3433_v34 }
0x129b   :  { %3347 = vmatpush3.msra.mxu1 %v5304_v43 }
0x129c   :  { %3348 = vmatprep.subr.mxu1 %v3433_v34 }
0x129d   :  { %3349 = vmatpush3.msra.mxu1 %v5311_v44 }
0x1356   :  { %v2696_v15 = vpop.f32.mrf.mxu1 }
0x1357   :  { %v2701_v16 = vrot.slane %v2696_v15, 4 }
0x1358   :  { %v3330_v17 = vpop.f32.mrf.mxu1 }
0x1359   :  { %v2703_v41 = vadd.f32 %v2701_v16, %v5383_v36 }
0x135b   :  { %v2704_v18 = vadd.f32 %v5378_v32, %v2703_v41 }
0x135d   :  { %3405 = vtanh.f32 %v2704_v18 }
0x136a   :  { %v3406_v20 = vpop.eup %3405 }
0x136b   :  { %v2707_v11 = vrot.slane %v3406_v20, 4 }
0x136d   :  { %3340 = vmatmul.mubr.msk.f32.vlgmr.msra.gmra.mxu0 %vm1552_vm10, %v2707_v11 }
0x136e   :  { %3354 = vmatpush3.msra.mxu0 %v5336_v0  ;;  %3361 = vmatprep.mubr.msk.f32.mxu0 %vm3434_vm1, %v3433_v34 }
0x136f   :  { %3355 = vmatprep.subr.mxu0 %v3433_v34 }
0x1370   :  { %3356 = vmatpush3.msra.mxu0 %v5341_v1 }
0x1371   :  { %3357 = vmatprep.subr.mxu0 %v3433_v34 }
0x1372   :  { %3358 = vmatpush3.msra.mxu0 %v5348_v2 }
0x1373   :  { %3359 = vmatprep.subr.mxu0 %v3433_v34 }
0x1374   :  { %3360 = vmatpush3.msra.mxu0 %v5355_v3 }
0x142d   :  { %v2776_v42 = vpop.f32.mrf.mxu0 }
0x142e   :  { %v2777_v43 = vadd.f32 %v5400_v39, %v2776_v42 }
0x142f   :  { %v3341_v44 = vpop.f32.mrf.mxu0 }
0x1430   :  { %2797 = vrot.lane.b32.xlu1 %v2777_v43, %s3436_s21  ;;  %2781 = vrot.lane.b32.xlu0 %v2777_v43, %s3435_s20 }
0x14a2   :  { %v2782_v0 = vpop.permute.xlu0 %2781  ;;  %v2798_v14 = vpop.permute.xlu1 %2797 }
0x14a3   :  { %v2784_v21 = vadd.f32 %v2782_v0, %v2777_v43 }
0x14a5   :  { %v3054_v22 = vmul.f32 -1.442695, %v2784_v21 }
0x14a7   :  { %3407 = vpow2.f32 %v3054_v22 }
0x14b4   :  { %v3408_v1 = vpop.eup %3407 }
0x14b5   :  { %v2788_v24 = vadd.f32 1.0, %v3408_v1 }
0x14b7   :  { %3409 = vrcp.f32 %v2788_v24 }
0x14c4   :  { %v3410_v2 = vpop.eup %3409 }
0x14c5   :  { %v2800_v34 = vmul.f32 %v3410_v2, %v2798_v14  ;;  %v2791_v25 = vsub.f32 1.0, %v3410_v2 }
0x14c7   :  { %2802 = vrot.lane.b32.xlu1 %v2800_v34, %s3437_s4  ;;  %2793 = vrot.lane.b32.xlu0 %v2791_v25, %s3437_s4 }
0x1539   :  { %v2794_v3 = vpop.permute.xlu0 %2793  ;;  %v2803_v27 = vpop.permute.xlu1 %2802 }
0x153a   :  { %v2796_v26 = vmul.f32 %v2794_v3, %v2777_v43 }
0x153c   :  { %v2805_v28 = vadd.f32 %v2803_v27, %v2796_v26 }
0x153e   :  { %3351 = vmatmul.mubr.msk.f32.vlgmr.msra.gmra.mxu1 %vm1552_vm10, %v2805_v28 }
0x15fe   :  { %v2875_v29 = vpop.f32.mrf.mxu1 }
0x15ff   :  { %v2880_v30 = vrot.slane %v2875_v29, 2 }
0x1600   :  { %v3352_v33 = vpop.f32.mrf.mxu1 }
0x1601   :  { %v2882_v35 = vadd.f32 %v2880_v30, %v5383_v36 }
0x1603   :  { %v2883_v37 = vadd.f32 %v5378_v32, %v2882_v35 }
0x1605   :  { %3411 = vtanh.f32 %v2883_v37 }
0x1612   :  { %v3412_v38 = vpop.eup %3411 }
0x1613   :  { %v2886_v40 = vrot.slane %v3412_v38, 6 }
0x1615   :  { %3362 = vmatmul.mubr.msk.f32.vlgmr.msra.gmra.mxu0 %vm1552_vm10, %v2886_v40 }
0x16d5   :  { %v2955_v45 = vpop.f32.mrf.mxu0 }
0x16d6   :  { %v2956_v46 = vadd.f32 %v5400_v39, %v2955_v45 }
0x16d7   :  { %v3363_v47 = vpop.f32.mrf.mxu0 }
0x16d8   :  { %2976 = vrot.lane.b32.xlu1 %v2956_v46, %s3436_s21  ;;  %2960 = vrot.lane.b32.xlu0 %v2956_v46, %s3435_s20 }
0x174a   :  { %v2961_v49 = vpop.permute.xlu0 %2960  ;;  %v2977_v53 = vpop.permute.xlu1 %2976 }
0x174b   :  { %v2963_v50 = vadd.f32 %v2961_v49, %v2956_v46 }
0x174d   :  { %v3057_v51 = vmul.f32 -1.442695, %v2963_v50 }
0x174f   :  { %3413 = vpow2.f32 %v3057_v51 }
0x175c   :  { %v3414_v36 = vpop.eup %3413 }
0x175d   :  { %v2967_v52 = vadd.f32 1.0, %v3414_v36 }
0x175f   :  { %3415 = vrcp.f32 %v2967_v52 }
0x176c   :  { %v3416_v32 = vpop.eup %3415 }
0x176d   :  { %v2979_v55 = vmul.f32 %v3416_v32, %v2977_v53  ;;  %v2970_v56 = vsub.f32 1.0, %v3416_v32 }
0x176f   :  { %2981 = vrot.lane.b32.xlu1 %v2979_v55, %s3437_s4  ;;  %2972 = vrot.lane.b32.xlu0 %v2970_v56, %s3437_s4 }
0x1773   :  { %2994 = vrot.lane.b32.xlu1 %v5567_v13, %s3436_s21  ;;  %2985 = vrot.lane.b32.xlu0 %v5439_v23, %s3436_s21 }
0x1777   :  { %2997 = vrot.lane.b32.xlu1 %v2805_v28, %s3437_s4  ;;  %2988 = vrot.lane.b32.xlu0 %v5471_v54, %s3437_s4 }
0x177b   :  { %2991 = vrot.lane.b32.xlu0 %v5503_v19, %s3435_s20 }
0x17e1   :  { %v2973_v39 = vpop.permute.xlu0 %2972  ;;  %v2982_v58 = vpop.permute.xlu1 %2981 }
0x17e2   :  { %v2975_v57 = vmul.f32 %v2973_v39, %v2956_v46 }
0x17e4   :  { %v2984_v60 = vadd.f32 %v2982_v58, %v2975_v57 }
0x17e5   :  { %v2986_v61 = vpop.permute.xlu0 %2985  ;;  %v2995_v62 = vpop.permute.xlu1 %2994 }
0x17e6   :  { %3001 = vrot.lane.b32.xlu1 %v2984_v60, %s3435_s20  ;;  %v3009_v4 = vsel %vm1552_vm10, %v5535_v48, %v2995_v62  ;;  %v3004_v54 = vsel %vm1552_vm10, %v5407_v59, %v2986_v61 }
0x17e9   :  { %v2989_v31 = vpop.permute.xlu0 %2988  ;;  %v2998_v63 = vpop.permute.xlu1 %2997 }
0x17ea   :  { %v3010_v19 = vsel %vm3005_vm11, %v3009_v4, %v2998_v63  ;;  %v3006_v5 = vsel %vm3005_vm11, %v3004_v54, %v2989_v31 }
0x17ed   :  { %v2992_v23 = vpop.permute.xlu0 %2991 }
0x17ee   :  { %v3008_v7 = vsel %vm3007_vm12, %v3006_v5, %v2992_v23 }
0x1858   :  { %v3002_v6 = vpop.permute.xlu1 %3001 }
0x1859   :  { %v3011_v8 = vsel %vm3007_vm12, %v3010_v19, %v3002_v6 }
0x185a   :  { %v3014_v9 = vcombine.low %v3008_v7, %v3011_v8 }
0x185c   :  { %3058 = vst.sshfl [vmem:[%s5628_s5] sm:$0x33 pattern:$0x76325410] %v3014_v9 }

</bundles_post_ra>
